<compile_context>
chip_gen: v5e
topology: v5e:2x2
jax: 0.10.0
libtpu: 0.0.40
codegen_flags: <defaults>
</compile_context>

<pallas_src>
import functools

import jax
import jax.numpy as jnp
from jax.experimental import pallas as pl
from jax.experimental.pallas import tpu as pltpu


def _round_up(x, m):
    return (x + m - 1) // m * m


def _psconv_kernel(xp_ref, wbr_ref, wcat_ref, bbr_ref, bcat_ref, out_ref, *,
                   k, th, wpad, wsl, wout, tap_dtype, mxu_dtype):
    f32 = jnp.float32
    c4 = bbr_ref.shape[1]
    c2 = bcat_ref.shape[1]
    kc4 = k * c4
    tr = th + 2 * k            # padded input rows needed by this H tile (incl. halo)
    h1 = th + 1                # "ycat" rows produced by this H tile

    h0 = pl.program_id(1) * th
    if th % 8 == 0:
        h0 = pl.multiple_of(h0, 8)

    # ---- stage 1: every tap of both asymmetric branch convs in ONE bf16 MXU matmul.
    # wbr packs the k (1,k)-taps and the k (k,1)-taps side by side along N (with the
    # per-branch BN scale already folded in), so the padded row-tile is multiplied
    # once and each tap is a channel block of the f32-accumulated result.
    xt = xp_ref[pl.ds(h0, tr)]                                  # (tr, wpad, c1)
    x2 = xt.reshape(tr * wpad, xt.shape[-1])                    # layout-trivial: wpad % 8 == 0
    t = jnp.dot(x2, wbr_ref[...], preferred_element_type=f32)   # (tr*wpad, 2k*c4)
    t3 = t.astype(tap_dtype).reshape(tr, wpad, 2 * kc4)

    # Branch windows of the symmetrically padded input, order [yw0, yw1, yh0, yh1]:
    #   (row0, col0, taps shift rows?)  -- (1,k) taps shift columns, (k,1) taps rows.
    windows = ((k - 1, 0, False),   # pad (left=k, top=1)     -> yw0
               (k, k, False),       # pad (right=k, bottom=1) -> yw1
               (0, k, True),        # pad (right=1, top=k)    -> yh0
               (k, k - 1, True))    # pad (left=1, bottom=k)  -> yh1

    # ---- stage 2: tap shift-and-add + folded-BN bias + SiLU per branch, then the
    # four branches are lane-concatenated so the 2x2 "cat" conv is a single K=c2
    # matmul with all four 2x2 taps fused along the output axis.
    ys = []
    for b, (r0, c0, shift_rows) in enumerate(windows):
        ch0 = kc4 if shift_rows else 0
        yb = None
        for d in range(k):                       # full-tensor shift-and-add per tap
            rd = r0 + (d if shift_rows else 0)
            cd = c0 + (0 if shift_rows else d)
            tap = t3[rd:rd + h1, cd:cd + wsl, ch0 + d * c4:ch0 + (d + 1) * c4]
            yb = tap if yb is None else yb + tap
        yb = yb.reshape(h1 * wsl, c4).astype(f32) + bbr_ref[b:b + 1, :]
        yb = yb * pl.reciprocal(1.0 + jnp.exp(-yb), approx=True)        # SiLU (EUP)
        ys.append(yb.astype(mxu_dtype))
    ycat = jnp.concatenate(ys, axis=-1)                                 # (h1*wsl, c2)

    u = jnp.dot(ycat, wcat_ref[...], preferred_element_type=f32)        # (h1*wsl, 4*c2)
    u3 = u.reshape(h1, wsl, 4 * c2)                                     # wsl % 8 == 0

    # 2x2 shift-and-add of the fused cat-conv taps, folded-BN bias + exact SiLU,
    # one lane-dense bulk store per tile.
    o = (u3[0:th, 0:wout, 0 * c2:1 * c2]
         + u3[0:th, 1:1 + wout, 1 * c2:2 * c2]
         + u3[1:1 + th, 0:wout, 2 * c2:3 * c2]
         + u3[1:1 + th, 1:1 + wout, 3 * c2:4 * c2])
    o = o.reshape(th * wout, c2) + bcat_ref[...]                        # wout % 8 == 0
    o = o / (1.0 + jnp.exp(-o))                                         # exact SiLU
    out_ref[...] = o.astype(out_ref.dtype)


def make_params(c1, c2, k, key, eps=1e-5):
    """Deterministic synthetic parameters (conv weights + folded eval-mode BN)."""
    c4 = c2 // 4
    ks = jax.random.split(key, 15)

    wcw = 0.1 * jax.random.normal(ks[0], (k, c1, c4), jnp.float32)      # (1,k) conv taps
    wch = 0.1 * jax.random.normal(ks[1], (k, c1, c4), jnp.float32)      # (k,1) conv taps
    wcat = 0.1 * jax.random.normal(ks[2], (2, 2, c2, c2), jnp.float32)  # 2x2 conv (HWIO)

    def bn_fold(kg, kb, km, kv, c):
        gamma = 1.0 + 0.1 * jax.random.normal(kg, (1, c), jnp.float32)
        beta = 0.1 * jax.random.normal(kb, (1, c), jnp.float32)
        mean = 0.1 * jax.random.normal(km, (1, c), jnp.float32)
        var = 1.0 + 0.1 * jax.random.uniform(kv, (1, c), jnp.float32)
        scale = gamma * jax.lax.rsqrt(var + eps)
        return scale, beta - mean * scale

    scw, bcw = bn_fold(ks[3], ks[4], ks[5], ks[6], c4)
    sch, bch = bn_fold(ks[7], ks[8], ks[9], ks[10], c4)
    scat, bcat = bn_fold(ks[11], ks[12], ks[13], ks[14], c2)
    return dict(wcw=wcw, wch=wch, wcat=wcat, scw=scw, bcw=bcw,
                sch=sch, bch=bch, scat=scat, bcat=bcat)


def psconv_forward(x_nchw, params, k=3, row_tile=None,
                   mxu_dtype=jnp.bfloat16, tap_dtype=None):
    """PSConv forward.  mxu_dtype: matmul-operand dtype (bf16 on all TPU gens);
    tap_dtype: dtype of the stage-1 tap intermediate (bf16 on v6e/v7x, pass
    jnp.float32 on v5e whose VPU has no native bf16)."""
    if tap_dtype is None:
        tap_dtype = mxu_dtype

    wcw, wch, wcat = params["wcw"], params["wch"], params["wcat"]
    scw, bcw = params["scw"], params["bcw"]
    sch, bch = params["sch"], params["bch"]
    scat, bcat = params["scat"], params["bcat"]

    x = jnp.transpose(x_nchw, (0, 2, 3, 1)).astype(mxu_dtype)    # NCHW -> NHWC, bf16 slab
    N, H, W, c1 = x.shape
    c2 = wcat.shape[-1]
    c4 = c2 // 4

    # H tiling (grid axis 1): bounds VMEM use of the big intermediates and gives the
    # v7x megacore a second parallel axis.  Falls back to a single tile if H is odd.
    if row_tile is None:
        row_tile = min(H, 64)
    if row_tile % 8 != 0 or H % row_tile != 0:
        row_tile = H
    n_ht = H // row_tile

    # Spatial geometry: one symmetric pad replaces the four asymmetric pinwheel pads.
    # Widths are multiples of 8 so all in-kernel reshapes preserve (sublane, lane)
    # layout.  For odd W the trailing wout-W junk columns are sliced off below.
    wout = _round_up(W, 8)                       # flattened-output row width
    wsl = wout + 8                               # branch-slice width (>= wout+1, mult of 8)
    hp = H + 2 * k
    wpad = _round_up(max(W + 2 * k, 2 * k - 1 + wsl), 8)

    xp = jnp.pad(x, ((0, 0), (k, k), (k, wpad - W - k), (0, 0)))  # (N, hp, wpad, c1)

    # Fused weights (layout glue): all 2k branch-conv taps side by side along the
    # output axis with the per-branch BN scale folded in; the 2x2 cat-conv taps
    # fused the same way with its BN scale folded in.  Operands cast to bf16.
    wbr = jnp.concatenate(
        [(jnp.transpose(wcw, (1, 0, 2)) * scw[0]).reshape(c1, k * c4),
         (jnp.transpose(wch, (1, 0, 2)) * sch[0]).reshape(c1, k * c4)],
        axis=1).astype(mxu_dtype)                                        # (c1, 2*k*c4)
    wcat_f = (jnp.transpose(wcat, (2, 0, 1, 3)).reshape(c2, 4 * c2)
              * jnp.tile(scat, (1, 4))).astype(mxu_dtype)                # (c2, 4*c2)

    # Folded-BN biases stay in f32 (added in f32 inside the kernel).
    bbr = jnp.concatenate([bcw, bcw, bch, bch], axis=0).astype(jnp.float32)  # (4, c4)
    bcat_f = bcat.astype(jnp.float32)                                        # (1, c2)

    kernel = functools.partial(_psconv_kernel, k=k, th=row_tile,
                               wpad=wpad, wsl=wsl, wout=wout,
                               tap_dtype=tap_dtype, mxu_dtype=mxu_dtype)

    def full_spec(a):
        zeros = (0,) * a.ndim
        return pl.BlockSpec(a.shape, lambda n, h: zeros)

    out = pl.pallas_call(
        kernel,
        out_shape=jax.ShapeDtypeStruct((N, H * wout, c2), jnp.float32),
        grid=(N, n_ht),
        in_specs=[pl.BlockSpec((None, hp, wpad, c1), lambda n, h: (n, 0, 0, 0)),
                  full_spec(wbr), full_spec(wcat_f),
                  full_spec(bbr), full_spec(bcat_f)],
        out_specs=pl.BlockSpec((None, row_tile * wout, c2), lambda n, h: (n, h, 0)),
        compiler_params=pltpu.CompilerParams(
            dimension_semantics=("parallel", "parallel")),
    )(xp, wbr, wcat_f, bbr, bcat_f)

    out = out.reshape(N, H, wout, c2)[:, :, :W, :]
    return jnp.transpose(out, (0, 3, 1, 2))      # NHWC -> NCHW


def psconv_reference(x_nchw, params, k=3):
    """Pure-JAX (XLA, f32) reference mirroring the PyTorch forward exactly."""
    x = jnp.transpose(x_nchw, (0, 2, 3, 1)).astype(jnp.float32)

    def conv_bn_silu(xp, w_hwio, scale, bias):
        y = jax.lax.conv_general_dilated(
            xp, w_hwio, window_strides=(1, 1), padding="VALID",
            dimension_numbers=("NHWC", "HWIO", "NHWC"))
        y = y * scale + bias
        return y * jax.nn.sigmoid(y)

    xw0 = jnp.pad(x, ((0, 0), (1, 0), (k, 0), (0, 0)))
    xw1 = jnp.pad(x, ((0, 0), (0, 1), (0, k), (0, 0)))
    xh0 = jnp.pad(x, ((0, 0), (k, 0), (0, 1), (0, 0)))
    xh1 = jnp.pad(x, ((0, 0), (0, k), (1, 0), (0, 0)))

    wcw_hwio = params["wcw"][None]        # (1, k, c1, c4)
    wch_hwio = params["wch"][:, None]     # (k, 1, c1, c4)

    yw0 = conv_bn_silu(xw0, wcw_hwio, params["scw"], params["bcw"])
    yw1 = conv_bn_silu(xw1, wcw_hwio, params["scw"], params["bcw"])
    yh0 = conv_bn_silu(xh0, wch_hwio, params["sch"], params["bch"])
    yh1 = conv_bn_silu(xh1, wch_hwio, params["sch"], params["bch"])

    ycat = jnp.concatenate([yw0, yw1, yh0, yh1], axis=-1)
    out = conv_bn_silu(ycat, params["wcat"], params["scat"], params["bcat"])
    return jnp.transpose(out, (0, 3, 1, 2))


if __name__ == "__main__":
    key = jax.random.PRNGKey(0)
    kx, kp = jax.random.split(key)
    N, c1, H, W = 2, 4, 16, 16
    c2, k = 16, 3

    x = jax.random.normal(kx, (N, c1, H, W), jnp.float32)
    params = make_params(c1, c2, k, kp)

    # row_tile=8 exercises the H-tiled (2-tile) path even at this small spatial size.
    out = jax.block_until_ready(psconv_forward(x, params, k=k, row_tile=8))
    assert out.shape == (N, c2, H, W), out.shape

    ref = jax.block_until_ready(psconv_reference(x, params, k=k))
    max_diff = float(jnp.max(jnp.abs(out - ref)))
    # Tolerance re-baselined for bf16 MXU operands + bf16 tap intermediates
    # (reference is full f32).
    if not bool(jnp.allclose(out, ref, atol=5e-2, rtol=5e-2)):
        raise AssertionError(f"mismatch vs reference: max abs diff = {max_diff}")
    print("KERNEL_OK")
</pallas_src>

<mosaic_0001>
module attributes {stable_mosaic.version = 11 : i64} {
  func.func @_psconv_kernel(%arg0: i32, %arg1: i32, %arg2: memref<1x22x32x4xbf16, #tpu.memory_space<vmem>>, %arg3: memref<4x24xbf16, #tpu.memory_space<vmem>>, %arg4: memref<16x64xbf16, #tpu.memory_space<vmem>>, %arg5: memref<4x4xf32, #tpu.memory_space<vmem>>, %arg6: memref<1x16xf32, #tpu.memory_space<vmem>>, %arg7: memref<1x128x16xf32, #tpu.memory_space<vmem>>) attributes {dimension_semantics = [#tpu.dimension_semantics<parallel>, #tpu.dimension_semantics<parallel>], iteration_bounds = array<i64: 2, 2>, scalar_prefetch = 0 : i64, scratch_operands = 0 : i64, tpu.core_type = #tpu.core_type<tc>, window_params = [{transform_indices = @transform_0, window_bounds = array<i64: 1, 22, 32, 4>}, {pipeline_mode = #tpu.pipeline_mode<synchronous>, transform_indices = @transform_1, window_bounds = array<i64: 4, 24>}, {pipeline_mode = #tpu.pipeline_mode<synchronous>, transform_indices = @transform_2, window_bounds = array<i64: 16, 64>}, {pipeline_mode = #tpu.pipeline_mode<synchronous>, transform_indices = @transform_3, window_bounds = array<i64: 4, 4>}, {pipeline_mode = #tpu.pipeline_mode<synchronous>, transform_indices = @transform_4, window_bounds = array<i64: 1, 16>}, {transform_indices = @transform_5, window_bounds = array<i64: 1, 128, 16>}]} {
    %c8_i32 = arith.constant 8 : i32
    %0 = arith.muli %arg1, %c8_i32 : i32
    %1 = tpu.assume_multiple %0, 8 : i32
    %c0 = arith.constant 0 : index
    %2 = arith.index_cast %1 : i32 to index
    %c0_0 = arith.constant 0 : index
    %c0_1 = arith.constant 0 : index
    %3 = vector.load %arg2[%c0, %2, %c0_0, %c0_1] : memref<1x22x32x4xbf16, #tpu.memory_space<vmem>>, vector<1x14x32x4xbf16>
    %4 = vector.shape_cast %3 : vector<1x14x32x4xbf16> to vector<14x32x4xbf16>
    %5 = vector.shape_cast %4 : vector<14x32x4xbf16> to vector<448x4xbf16>
    %c0_2 = arith.constant 0 : index
    %c0_3 = arith.constant 0 : index
    %6 = vector.load %arg3[%c0_2, %c0_3] : memref<4x24xbf16, #tpu.memory_space<vmem>>, vector<4x24xbf16>
    %cst = arith.constant dense<0.000000e+00> : vector<448x24xf32>
    %7 = tpu.matmul %5, %6, %cst {dimension_numbers = #tpu.dot_dimension_numbers<[1], [0], [0], [1], [0, 0, 1, 1], [], []>} : vector<448x4xbf16>, vector<4x24xbf16>, vector<448x24xf32> -> vector<448x24xf32>
    %8 = arith.truncf %7 : vector<448x24xf32> to vector<448x24xbf16>
    %9 = vector.shape_cast %8 : vector<448x24xbf16> to vector<14x32x24xbf16>
    %10 = vector.extract_strided_slice %9 {offsets = [2, 0, 0], sizes = [9, 24, 4], strides = [1, 1, 1]} : vector<14x32x24xbf16> to vector<9x24x4xbf16>
    %11 = vector.extract_strided_slice %9 {offsets = [2, 1, 4], sizes = [9, 24, 4], strides = [1, 1, 1]} : vector<14x32x24xbf16> to vector<9x24x4xbf16>
    %12 = arith.addf %10, %11 : vector<9x24x4xbf16>
    %13 = vector.extract_strided_slice %9 {offsets = [2, 2, 8], sizes = [9, 24, 4], strides = [1, 1, 1]} : vector<14x32x24xbf16> to vector<9x24x4xbf16>
    %14 = arith.addf %12, %13 : vector<9x24x4xbf16>
    %15 = vector.shape_cast %14 : vector<9x24x4xbf16> to vector<216x4xbf16>
    %16 = arith.extf %15 : vector<216x4xbf16> to vector<216x4xf32>
    %c0_4 = arith.constant 0 : index
    %c0_5 = arith.constant 0 : index
    %17 = vector.load %arg5[%c0_4, %c0_5] : memref<4x4xf32, #tpu.memory_space<vmem>>, vector<1x4xf32>
    %18 = vector.broadcast %17 : vector<1x4xf32> to vector<216x4xf32>
    %19 = arith.addf %16, %18 : vector<216x4xf32>
    %cst_6 = arith.constant 0.000000e+00 : f32
    %20 = vector.broadcast %cst_6 : f32 to vector<216x4xf32>
    %21 = arith.subf %20, %19 : vector<216x4xf32>
    %22 = math.exp %21 : vector<216x4xf32>
    %cst_7 = arith.constant 1.000000e+00 : f32
    %23 = vector.broadcast %cst_7 : f32 to vector<216x4xf32>
    %24 = arith.addf %23, %22 : vector<216x4xf32>
    %25 = tpu.reciprocal %24 {approx = true} : vector<216x4xf32> -> vector<216x4xf32>
    %26 = arith.mulf %19, %25 : vector<216x4xf32>
    %27 = arith.truncf %26 : vector<216x4xf32> to vector<216x4xbf16>
    %28 = vector.extract_strided_slice %9 {offsets = [3, 3, 0], sizes = [9, 24, 4], strides = [1, 1, 1]} : vector<14x32x24xbf16> to vector<9x24x4xbf16>
    %29 = vector.extract_strided_slice %9 {offsets = [3, 4, 4], sizes = [9, 24, 4], strides = [1, 1, 1]} : vector<14x32x24xbf16> to vector<9x24x4xbf16>
    %30 = arith.addf %28, %29 : vector<9x24x4xbf16>
    %31 = vector.extract_strided_slice %9 {offsets = [3, 5, 8], sizes = [9, 24, 4], strides = [1, 1, 1]} : vector<14x32x24xbf16> to vector<9x24x4xbf16>
    %32 = arith.addf %30, %31 : vector<9x24x4xbf16>
    %33 = vector.shape_cast %32 : vector<9x24x4xbf16> to vector<216x4xbf16>
    %34 = arith.extf %33 : vector<216x4xbf16> to vector<216x4xf32>
    %c1 = arith.constant 1 : index
    %c0_8 = arith.constant 0 : index
    %35 = vector.load %arg5[%c1, %c0_8] : memref<4x4xf32, #tpu.memory_space<vmem>>, vector<1x4xf32>
    %36 = vector.broadcast %35 : vector<1x4xf32> to vector<216x4xf32>
    %37 = arith.addf %34, %36 : vector<216x4xf32>
    %cst_9 = arith.constant 0.000000e+00 : f32
    %38 = vector.broadcast %cst_9 : f32 to vector<216x4xf32>
    %39 = arith.subf %38, %37 : vector<216x4xf32>
    %40 = math.exp %39 : vector<216x4xf32>
    %cst_10 = arith.constant 1.000000e+00 : f32
    %41 = vector.broadcast %cst_10 : f32 to vector<216x4xf32>
    %42 = arith.addf %41, %40 : vector<216x4xf32>
    %43 = tpu.reciprocal %42 {approx = true} : vector<216x4xf32> -> vector<216x4xf32>
    %44 = arith.mulf %37, %43 : vector<216x4xf32>
    %45 = arith.truncf %44 : vector<216x4xf32> to vector<216x4xbf16>
    %46 = vector.extract_strided_slice %9 {offsets = [0, 3, 12], sizes = [9, 24, 4], strides = [1, 1, 1]} : vector<14x32x24xbf16> to vector<9x24x4xbf16>
    %47 = vector.extract_strided_slice %9 {offsets = [1, 3, 16], sizes = [9, 24, 4], strides = [1, 1, 1]} : vector<14x32x24xbf16> to vector<9x24x4xbf16>
    %48 = arith.addf %46, %47 : vector<9x24x4xbf16>
    %49 = vector.extract_strided_slice %9 {offsets = [2, 3, 20], sizes = [9, 24, 4], strides = [1, 1, 1]} : vector<14x32x24xbf16> to vector<9x24x4xbf16>
    %50 = arith.addf %48, %49 : vector<9x24x4xbf16>
    %51 = vector.shape_cast %50 : vector<9x24x4xbf16> to vector<216x4xbf16>
    %52 = arith.extf %51 : vector<216x4xbf16> to vector<216x4xf32>
    %c2 = arith.constant 2 : index
    %c0_11 = arith.constant 0 : index
    %53 = vector.load %arg5[%c2, %c0_11] : memref<4x4xf32, #tpu.memory_space<vmem>>, vector<1x4xf32>
    %54 = vector.broadcast %53 : vector<1x4xf32> to vector<216x4xf32>
    %55 = arith.addf %52, %54 : vector<216x4xf32>
    %cst_12 = arith.constant 0.000000e+00 : f32
    %56 = vector.broadcast %cst_12 : f32 to vector<216x4xf32>
    %57 = arith.subf %56, %55 : vector<216x4xf32>
    %58 = math.exp %57 : vector<216x4xf32>
    %cst_13 = arith.constant 1.000000e+00 : f32
    %59 = vector.broadcast %cst_13 : f32 to vector<216x4xf32>
    %60 = arith.addf %59, %58 : vector<216x4xf32>
    %61 = tpu.reciprocal %60 {approx = true} : vector<216x4xf32> -> vector<216x4xf32>
    %62 = arith.mulf %55, %61 : vector<216x4xf32>
    %63 = arith.truncf %62 : vector<216x4xf32> to vector<216x4xbf16>
    %64 = vector.extract_strided_slice %9 {offsets = [3, 2, 12], sizes = [9, 24, 4], strides = [1, 1, 1]} : vector<14x32x24xbf16> to vector<9x24x4xbf16>
    %65 = vector.extract_strided_slice %9 {offsets = [4, 2, 16], sizes = [9, 24, 4], strides = [1, 1, 1]} : vector<14x32x24xbf16> to vector<9x24x4xbf16>
    %66 = arith.addf %64, %65 : vector<9x24x4xbf16>
    %67 = vector.extract_strided_slice %9 {offsets = [5, 2, 20], sizes = [9, 24, 4], strides = [1, 1, 1]} : vector<14x32x24xbf16> to vector<9x24x4xbf16>
    %68 = arith.addf %66, %67 : vector<9x24x4xbf16>
    %69 = vector.shape_cast %68 : vector<9x24x4xbf16> to vector<216x4xbf16>
    %70 = arith.extf %69 : vector<216x4xbf16> to vector<216x4xf32>
    %c3 = arith.constant 3 : index
    %c0_14 = arith.constant 0 : index
    %71 = vector.load %arg5[%c3, %c0_14] : memref<4x4xf32, #tpu.memory_space<vmem>>, vector<1x4xf32>
    %72 = vector.broadcast %71 : vector<1x4xf32> to vector<216x4xf32>
    %73 = arith.addf %70, %72 : vector<216x4xf32>
    %cst_15 = arith.constant 0.000000e+00 : f32
    %74 = vector.broadcast %cst_15 : f32 to vector<216x4xf32>
    %75 = arith.subf %74, %73 : vector<216x4xf32>
    %76 = math.exp %75 : vector<216x4xf32>
    %cst_16 = arith.constant 1.000000e+00 : f32
    %77 = vector.broadcast %cst_16 : f32 to vector<216x4xf32>
    %78 = arith.addf %77, %76 : vector<216x4xf32>
    %79 = tpu.reciprocal %78 {approx = true} : vector<216x4xf32> -> vector<216x4xf32>
    %80 = arith.mulf %73, %79 : vector<216x4xf32>
    %81 = arith.truncf %80 : vector<216x4xf32> to vector<216x4xbf16>
    %82 = tpu.concatenate %27, %45, %63, %81 in 1 : vector<216x4xbf16>, vector<216x4xbf16>, vector<216x4xbf16>, vector<216x4xbf16> -> vector<216x16xbf16>
    %c0_17 = arith.constant 0 : index
    %c0_18 = arith.constant 0 : index
    %83 = vector.load %arg4[%c0_17, %c0_18] : memref<16x64xbf16, #tpu.memory_space<vmem>>, vector<16x64xbf16>
    %cst_19 = arith.constant dense<0.000000e+00> : vector<216x64xf32>
    %84 = tpu.matmul %82, %83, %cst_19 {dimension_numbers = #tpu.dot_dimension_numbers<[1], [0], [0], [1], [0, 0, 1, 1], [], []>} : vector<216x16xbf16>, vector<16x64xbf16>, vector<216x64xf32> -> vector<216x64xf32>
    %85 = vector.shape_cast %84 : vector<216x64xf32> to vector<9x24x64xf32>
    %86 = vector.extract_strided_slice %85 {offsets = [0, 0, 0], sizes = [8, 16, 16], strides = [1, 1, 1]} : vector<9x24x64xf32> to vector<8x16x16xf32>
    %87 = vector.extract_strided_slice %85 {offsets = [0, 1, 16], sizes = [8, 16, 16], strides = [1, 1, 1]} : vector<9x24x64xf32> to vector<8x16x16xf32>
    %88 = arith.addf %86, %87 : vector<8x16x16xf32>
    %89 = vector.extract_strided_slice %85 {offsets = [1, 0, 32], sizes = [8, 16, 16], strides = [1, 1, 1]} : vector<9x24x64xf32> to vector<8x16x16xf32>
    %90 = arith.addf %88, %89 : vector<8x16x16xf32>
    %91 = vector.extract_strided_slice %85 {offsets = [1, 1, 48], sizes = [8, 16, 16], strides = [1, 1, 1]} : vector<9x24x64xf32> to vector<8x16x16xf32>
    %92 = arith.addf %90, %91 : vector<8x16x16xf32>
    %93 = vector.shape_cast %92 : vector<8x16x16xf32> to vector<128x16xf32>
    %c0_20 = arith.constant 0 : index
    %c0_21 = arith.constant 0 : index
    %94 = vector.load %arg6[%c0_20, %c0_21] : memref<1x16xf32, #tpu.memory_space<vmem>>, vector<1x16xf32>
    %95 = vector.broadcast %94 : vector<1x16xf32> to vector<128x16xf32>
    %96 = arith.addf %93, %95 : vector<128x16xf32>
    %cst_22 = arith.constant 0.000000e+00 : f32
    %97 = vector.broadcast %cst_22 : f32 to vector<128x16xf32>
    %98 = arith.subf %97, %96 : vector<128x16xf32>
    %99 = math.exp %98 : vector<128x16xf32>
    %cst_23 = arith.constant 1.000000e+00 : f32
    %100 = vector.broadcast %cst_23 : f32 to vector<128x16xf32>
    %101 = arith.addf %100, %99 : vector<128x16xf32>
    %102 = arith.divf %96, %101 : vector<128x16xf32>
    %c0_24 = arith.constant 0 : index
    %c0_25 = arith.constant 0 : index
    %c0_26 = arith.constant 0 : index
    %103 = vector.load %arg7[%c0_24, %c0_25, %c0_26] : memref<1x128x16xf32, #tpu.memory_space<vmem>>, vector<1x128x16xf32>
    %104 = vector.shape_cast %103 : vector<1x128x16xf32> to vector<128x16xf32>
    %105 = vector.shape_cast %102 : vector<128x16xf32> to vector<1x128x16xf32>
    tpu.vector_store %arg7[%c0_24, %c0_25, %c0_26], %105 {strides = array<i32>} : memref<1x128x16xf32, #tpu.memory_space<vmem>>, vector<1x128x16xf32>,
    return
  }
  func.func @transform_0(%arg0: i32, %arg1: i32) -> (i32, i32, i32, i32) {
    %c0_i32 = arith.constant 0 : i32
    %c0_i32_0 = arith.constant 0 : i32
    %c0_i32_1 = arith.constant 0 : i32
    %c0_i32_2 = arith.constant 0 : i32
    return %arg0, %c0_i32, %c0_i32_0, %c0_i32_1 : i32, i32, i32, i32
  }
  func.func @transform_1(%arg0: i32, %arg1: i32) -> (i32, i32) {
    %c0_i32 = arith.constant 0 : i32
    %c0_i32_0 = arith.constant 0 : i32
    %c0_i32_1 = arith.constant 0 : i32
    return %c0_i32, %c0_i32_0 : i32, i32
  }
  func.func @transform_2(%arg0: i32, %arg1: i32) -> (i32, i32) {
    %c0_i32 = arith.constant 0 : i32
    %c0_i32_0 = arith.constant 0 : i32
    %c0_i32_1 = arith.constant 0 : i32
    return %c0_i32, %c0_i32_0 : i32, i32
  }
  func.func @transform_3(%arg0: i32, %arg1: i32) -> (i32, i32) {
    %c0_i32 = arith.constant 0 : i32
    %c0_i32_0 = arith.constant 0 : i32
    %c0_i32_1 = arith.constant 0 : i32
    return %c0_i32, %c0_i32_0 : i32, i32
  }
  func.func @transform_4(%arg0: i32, %arg1: i32) -> (i32, i32) {
    %c0_i32 = arith.constant 0 : i32
    %c0_i32_0 = arith.constant 0 : i32
    %c0_i32_1 = arith.constant 0 : i32
    return %c0_i32, %c0_i32_0 : i32, i32
  }
  func.func @transform_5(%arg0: i32, %arg1: i32) -> (i32, i32, i32) {
    %c0_i32 = arith.constant 0 : i32
    %c0_i32_0 = arith.constant 0 : i32
    return %arg0, %arg1, %c0_i32 : i32, i32, i32
  }
}

</mosaic_0001>

<bundles_post_ra>
// kernel: tpu_custom_call.1
= control target key start
LH: loop header
LB: loop body
LE: loop exit
PB: predicated region body
PF: predicated region fallthrough
CT: control target
= control target key end

     0   :  { %s6345_s18 = smov 0   ;;  %s6347_s19 = smov 0   ;;  %s9557_s0 = inlined_call_operand.vmem [shape: bf16[2,22,32,4], index: 0, kind: input, shape index: {}]   ;;  %s9558_s1 = inlined_call_operand.vmem [shape: bf16[4,24], index: 1, kind: input, shape index: {}]   ;;  %s9559_s2 = inlined_call_operand.vmem [shape: bf16[16,64], index: 2, kind: input, shape index: {}]   ;;  %s9560_s3 = inlined_call_operand.vmem [shape: f32[4,4], index: 3, kind: input, shape index: {}]   ;;  %s9561_s4 = inlined_call_operand.vmem [shape: f32[1,16], index: 4, kind: input, shape index: {}]   ;;  %s9562_s5 = inlined_call_operand.vmem [shape: f32[2,256,16], index: 5, kind: output, shape index: {}]  }
   0x1   :  { %s6349_s20 = smov 0   ;;  %s6351_s21 = smov 0  }
   0x2   :  { %s6353_s22 = smov 0  }
   0x3 LB: > { %s24_s23 = sadd.s32 1, %s6298_s20  ;;  %s27_s24 = sadd.s32 1, %s6302_s21  ;;  %s6306_s22 = sphi %s6353_s22, %s15_s22   ;;  %s6302_s21 = sphi %s6351_s21, %s10232_s21   ;;  %s6298_s20 = sphi %s6349_s20, %s10231_s20   ;;  %s6294_s19 = sphi %s6347_s19, %s10230_s19   ;;  %s6290_s18 = sphi %s6345_s18, %s10229_s18  }
   0x4   : > { %p25_p0 = scmp.ge.s32.totalorder %s24_s23, 2  ;;  %p5073_p1 = scmp.ge.s32.totalorder %s6306_s22, 1 }
   0x5   : > { %p201_p2 = scmp.lt.s32.totalorder %s6306_s22, 5 }
   0x6   : > { %s10234_s23 = smov (%p25_p0, %s24_s23), 0  ;;  %s10236_s24 = smov (!%p25_p0, %s27_s24), %s6302_s21 }
   0x7   : > { %p202_p3 = pnand %p5073_p1, %p201_p2  ;;  %p29_p4 = scmp.ge.s32.totalorder %s10236_s24, 2 }
   0x9   : > { %s10238_s24 = smov (%p29_p4, %s10236_s24), 0  ;;  %205 = sbr.rel (%p202_p3) target bundleno = 1366 (0x556), region = 40 }
   0xe   : > { %v309_v0 = vld [vmem:[%s9558_s1] sm:$0x3]  ;;  %vm535_vm0 = vcmask 1041408   ;;  %p233_p5 = scmp.lt.s32.totalorder %s6294_s19, 1  ;;  %s5251_s28 = sshll.u32 %s6290_s18, 7  ;;  %vm450_vm1 = vcmask 31744  }
   0xf   : > { %v537_v1 = vsel %vm535_vm0, %v309_v0, 0  ;;  %v5762_v23 = vld [vmem:[%s9560_s3 + $0x2] ss:$0 sm:$0xff]  ;;  %s6308_s10 = smov 12   ;;  %vm816_vm2 = vcmask 1046528   ;;  %s6309_s11 = smov 124  }
  0x10   : > { %546 = vmatpush.bf16.msra.mxu0 %v537_v1  ;;  %5281 = vmatpush.bf16.msra.mxu2 %v537_v1  ;;  %s10240_s19 = smov (!%p233_p5, %s6294_s19), 1  ;;  %vm1042_vm3 = vcmask 1045504   ;;  %s6310_s12 = smov 120   ;;  %vm1640_vm4 = vsmask.f32 2304  ;;  %vm3467_vm7 = vcmask 1042432  }
  0x11   : > { %5282 = vmatpush.bf16.msra.mxu3 %v537_v1  ;;  %s5284_s27 = smul.u32 352, %s10240_s19  ;;  %3064 = vrot.lane.b32.xlu0 %v5762_v23, %s6308_s10  ;;  %vm1641_vm5 = vsmask.f32 6416  ;;  %s6311_s26 = smov 4   ;;  %vm3468_vm8 = vcmask 1046532   ;;  %vm4206_vm10 = vcmask 64512  }
  0x12   : > { %vm6921_vm6 = vmor %vm1640_vm4, %vm1641_vm5  ;;  %vm4235_vm11 = vcmask 97280   ;;  %vm4272_vm12 = vcmask 130048   ;;  %s6313_s13 = smov 96   ;;  %s6314_s16 = smov 80  }
  0x13   : > { %s237_s6 = scalar_lea.vmem %s9557_s0, %s5284_s27  ;;  %vm7518_vm9 = vmor %vm3467_vm7, %vm3468_vm8  ;;  %s5076_s27 = sshll.u32 %s10240_s19, 5 }
  0x14   : > { %s6387_s7 = scalar_lea.vmem %s237_s6, %s5251_s28 }
  0x15   : > { %v5252_v2 = vld [vmem:[%s6387_s7] sm:$0xff]  ;;  %v5263_v3 = vld [vmem:[%s6387_s7 + $0x58] sm:$0xff]  ;;  %v5274_v4 = vld [vmem:[%s6387_s7 + $0xb0] sm:$0xff] }
  0x16   : > { %5193 = vmatmul.msk.bf16.vlgmr.msra.gmra.mxu0 %vm450_vm1, %v5252_v2  ;;  %5204 = vmatmul.msk.bf16.vlgmr.msra.gmra.mxu2 %vm450_vm1, %v5263_v3  ;;  %v5253_v5 = vld [vmem:[%s6387_s7 + $0x8] sm:$0xff]  ;;  %v5264_v6 = vld [vmem:[%s6387_s7 + $0x60] sm:$0xff]  ;;  %v5275_v7 = vld [vmem:[%s6387_s7 + $0xb8] sm:$0xff] }
  0x17   : > { %5215 = vmatmul.msk.bf16.vlgmr.msra.gmra.mxu3 %vm450_vm1, %v5274_v4  ;;  %v5254_v8 = vld [vmem:[%s6387_s7 + $0x10] sm:$0xff]  ;;  %v5265_v9 = vld [vmem:[%s6387_s7 + $0x68] sm:$0xff]  ;;  %v5276_v10 = vld [vmem:[%s6387_s7 + $0xc0] sm:$0xff] }
  0x18   : > { %v5255_v11 = vld [vmem:[%s6387_s7 + $0x18] sm:$0xff]  ;;  %v5266_v12 = vld [vmem:[%s6387_s7 + $0x70] sm:$0xff]  ;;  %v5277_v13 = vld [vmem:[%s6387_s7 + $0xc8] sm:$0xff] }
  0x19   : > { %v5256_v14 = vld [vmem:[%s6387_s7 + $0x20] sm:$0xff]  ;;  %v5267_v15 = vld [vmem:[%s6387_s7 + $0x78] sm:$0xff]  ;;  %v5278_v16 = vld [vmem:[%s6387_s7 + $0xd0] sm:$0xff] }
  0x1a   : > { %v5257_v17 = vld [vmem:[%s6387_s7 + $0x28] sm:$0xff]  ;;  %v5268_v18 = vld [vmem:[%s6387_s7 + $0x80] sm:$0xff]  ;;  %v5258_v19 = vld [vmem:[%s6387_s7 + $0x30] sm:$0xff] }
  0x1b   : > { %v5269_v20 = vld [vmem:[%s6387_s7 + $0x88] sm:$0xff]  ;;  %v5259_v21 = vld [vmem:[%s6387_s7 + $0x38] sm:$0xff]  ;;  %v5270_v22 = vld [vmem:[%s6387_s7 + $0x90] sm:$0xff] }
  0x1c   : > { %v5260_v24 = vld [vmem:[%s6387_s7 + $0x40] sm:$0xff]  ;;  %v5271_v25 = vld [vmem:[%s6387_s7 + $0x98] sm:$0xff]  ;;  %v5261_v32 = vld [vmem:[%s6387_s7 + $0x48] sm:$0xff] }
  0x1d   : > { %v5272_v33 = vld [vmem:[%s6387_s7 + $0xa0] sm:$0xff]  ;;  %v5262_v44 = vld [vmem:[%s6387_s7 + $0x50] sm:$0xff]  ;;  %v5273_v45 = vld [vmem:[%s6387_s7 + $0xa8] sm:$0xff] }
  0x26   : > { %5194 = vmatmul.msk.bf16.gmra.mxu0 %vm450_vm1, %v5253_v5  ;;  %5205 = vmatmul.msk.bf16.gmra.mxu2 %vm450_vm1, %v5264_v6 }
  0x27   : > { %5216 = vmatmul.msk.bf16.gmra.mxu3 %vm450_vm1, %v5275_v7 }
  0x36   : > { %5195 = vmatmul.msk.bf16.gmra.mxu0 %vm450_vm1, %v5254_v8  ;;  %5206 = vmatmul.msk.bf16.gmra.mxu2 %vm450_vm1, %v5265_v9 }
  0x37   : > { %5217 = vmatmul.msk.bf16.gmra.mxu3 %vm450_vm1, %v5276_v10 }
  0x46   : > { %5196 = vmatmul.msk.bf16.gmra.mxu0 %vm450_vm1, %v5255_v11  ;;  %5207 = vmatmul.msk.bf16.gmra.mxu2 %vm450_vm1, %v5266_v12 }
  0x47   : > { %5218 = vmatmul.msk.bf16.gmra.mxu3 %vm450_vm1, %v5277_v13 }
  0x56   : > { %5197 = vmatmul.msk.bf16.gmra.mxu0 %vm450_vm1, %v5256_v14  ;;  %5208 = vmatmul.msk.bf16.gmra.mxu2 %vm450_vm1, %v5267_v15 }
  0x57   : > { %5219 = vmatmul.msk.bf16.gmra.mxu3 %vm450_vm1, %v5278_v16 }
  0x66   : > { %5198 = vmatmul.msk.bf16.gmra.mxu0 %vm450_vm1, %v5257_v17  ;;  %5209 = vmatmul.msk.bf16.gmra.mxu2 %vm450_vm1, %v5268_v18 }
  0x76   : > { %5199 = vmatmul.msk.bf16.gmra.mxu0 %vm450_vm1, %v5258_v19  ;;  %5210 = vmatmul.msk.bf16.gmra.mxu2 %vm450_vm1, %v5269_v20 }
  0x86   : > { %5200 = vmatmul.msk.bf16.gmra.mxu0 %vm450_vm1, %v5259_v21  ;;  %5211 = vmatmul.msk.bf16.gmra.mxu2 %vm450_vm1, %v5270_v22 }
  0x93   : > { %v6436_v26 = vpop.f32.mrf.mxu0 }
  0x96   : > { %5201 = vmatmul.msk.bf16.gmra.mxu0 %vm450_vm1, %v5260_v24  ;;  %5212 = vmatmul.msk.bf16.gmra.mxu2 %vm450_vm1, %v5271_v25 }
  0x99   : > { %v6441_v27 = vpop.f32.mrf.mxu2 }
  0x9a   : > { %v6443_v28 = vpop.f32.mrf.mxu3 }
  0x9b   : > { %v6445_v29 = vpop.f32.mrf.mxu0 }
  0xa1   : > { %v6447_v30 = vpop.f32.mrf.mxu2 }
  0xa2   : > { %v660_v31 = vpop.f32.mrf.mxu3 }
  0xa3   : > { %v6451_v34 = vpop.f32.mrf.mxu0  ;;  %v733_v37 = vpack.c.bf16 %v660_v31, %v660_v31 }
  0xa5   : > { %v6457_v40 = vunpack.c.l.bf16 %v733_v37 }
  0xa6   : > { %5202 = vmatmul.msk.bf16.gmra.mxu0 %vm450_vm1, %v5261_v32  ;;  %5213 = vmatmul.msk.bf16.gmra.mxu2 %vm450_vm1, %v5272_v33 }
  0xa7   : > { %9774 = vst [vmem:[#allocation2_spill] sm:$0xff] %v6457_v40  ;;  %v9565_v48 = vrot.slane %v6457_v40, 1  ;;  %v9563_v58 = vrot.slane %v6457_v40, 2 }
  0xa9   : > { %v608_v35 = vpop.f32.mrf.mxu2 }
  0xaa   : > { %v663_v36 = vpop.f32.mrf.mxu3  ;;  %v712_v53 = vpack.c.bf16 %v608_v35, %v608_v35 }
  0xab   : > { %v734_v38 = vpack.c.bf16 %v663_v36, %v663_v36  ;;  %v6455_v39 = vpop.f32.mrf.mxu0 }
  0xac   : > { %v6482_v0 = vunpack.c.l.bf16 %v712_v53 }
  0xad   : > { %v6459_v41 = vunpack.c.l.bf16 %v734_v38 }
  0xae   : > { %9778 = vst [vmem:[#allocation6_spill] sm:$0xff] %v6482_v0  ;;  %v845_v8 = vrot.slane %v6482_v0, 1  ;;  %v1071_v22 = vrot.slane %v6482_v0, 2 }
  0xaf   : > { %9775 = vst [vmem:[#allocation3_spill] sm:$0xff] %v6459_v41  ;;  %v1497_v49 = vrot.slane %v6459_v41, 1  ;;  %v1576_v62 = vrot.slane %v6459_v41, 2 }
  0xb1   : > { %v610_v42 = vpop.f32.mrf.mxu2  ;;  %v1498_v56 = vsel %vm816_vm2, %v9565_v48, %v1497_v49  ;;  %v1577_v6 = vsel %vm1042_vm3, %v9563_v58, %v1576_v62 }
  0xb2   : > { %v665_v43 = vpop.f32.mrf.mxu3  ;;  %v713_v50 = vpack.c.bf16 %v610_v42, %v610_v42 }
  0xb3   : > { %v735_v46 = vpack.c.bf16 %v665_v43, %v665_v43  ;;  %v558_v47 = vpop.f32.mrf.mxu0 }
  0xb4   : > { %v692_v51 = vpack.c.bf16 %v558_v47, %v558_v47  ;;  %v6475_v57 = vunpack.c.l.bf16 %v713_v50 }
  0xb5   : > { %v6465_v52 = vunpack.c.l.bf16 %v735_v46 }
  0xb6   : > { %v6467_v54 = vunpack.c.l.bf16 %v692_v51  ;;  %5203 = vmatmul.msk.bf16.gmra.mxu0 %vm450_vm1, %v5262_v44  ;;  %5214 = vmatmul.msk.bf16.gmra.mxu2 %vm450_vm1, %v5273_v45  ;;  %9777 = vst [vmem:[#allocation5_spill] sm:$0xff] %v6475_v57  ;;  %v846_v5 = vrot.slane %v6475_v57, 1  ;;  %v1072_v19 = vrot.slane %v6475_v57, 2 }
  0xb7   : > { %9776 = vst [vmem:[#allocation4_spill] sm:$0xff] %v6465_v52  ;;  %v1499_v55 = vrot.slane %v6465_v52, 1  ;;  %v1578_v63 = vrot.slane %v6465_v52, 2 }
  0xb8   : > { %v847_v11 = vsel %vm816_vm2, %v845_v8, %v846_v5  ;;  %v1073_v31 = vsel %vm1042_vm3, %v1071_v22, %v1072_v19 }
  0xb9   : > { %v5332_v59 = vpack.i.bf16 %v6467_v54, %v1499_v55  ;;  %v613_v60 = vpop.f32.mrf.mxu2  ;;  %v1500_v61 = vsel %vm816_vm2, %v1497_v49, %v1499_v55  ;;  %v1579_v7 = vsel %vm1042_vm3, %v1576_v62, %v1578_v63 }
  0xba   : > { %v714_v1 = vpack.c.bf16 %v613_v60, %v613_v60  ;;  %v5337_v2 = vpack.i.bf16 %v1500_v61, %v1498_v56  ;;  %v5342_v10 = vpack.i.bf16 %v1579_v7, %v1577_v6 }
  0xbb   : > { %5333 = vrot.lane.b32.xlu0 %v5332_v59, %s6309_s11  ;;  %v560_v3 = vpop.f32.mrf.mxu0 }
  0xbc   : > { %v6485_v4 = vunpack.c.l.bf16 %v714_v1  ;;  %5338 = vrot.lane.b32.xlu2 %v5337_v2, %s6309_s11  ;;  %v693_v15 = vpack.c.bf16 %v560_v3, %v560_v3 }
  0xbe   : > { %9779 = vst [vmem:[#allocation7_spill] sm:$0xff] %v6485_v4  ;;  %v848_v9 = vrot.slane %v6485_v4, 1  ;;  %v1074_v17 = vrot.slane %v6485_v4, 2  ;;  %v6501_v20 = vunpack.c.l.bf16 %v693_v15 }
  0xc0   : > { %v849_v12 = vsel %vm816_vm2, %v846_v5, %v848_v9  ;;  %v1075_v23 = vsel %vm1042_vm3, %v1072_v19, %v1074_v17 }
  0xc1   : > { %v615_v13 = vpop.f32.mrf.mxu2  ;;  %v5347_v14 = vpack.i.bf16 %v849_v12, %v847_v11  ;;  %v5352_v32 = vpack.i.bf16 %v1075_v23, %v1073_v31 }
  0xc2   : > { %v715_v35 = vpack.c.bf16 %v615_v13, %v615_v13 }
  0xc3   : > { %5348 = vrot.lane.b32.xlu0 %v5347_v14, %s6309_s11  ;;  %v563_v16 = vpop.f32.mrf.mxu0 }
  0xc4   : > { %5343 = vrot.lane.b32.xlu2 %v5342_v10, %s6310_s12  ;;  %v694_v18 = vpack.c.bf16 %v563_v16, %v563_v16  ;;  %v6512_v36 = vunpack.c.l.bf16 %v715_v35 }
  0xc6   : > { %v6503_v21 = vunpack.c.l.bf16 %v694_v18  ;;  %9781 = vst [vmem:[#allocation9_spill] sm:$0xff] %v6512_v36  ;;  %v850_v49 = vrot.slane %v6512_v36, 1  ;;  %v1076_v5 = vrot.slane %v6512_v36, 2 }
  0xc8   : > { %9780 = vst [vmem:[#allocation8_spill] sm:$0xff] %v6503_v21  ;;  %v5357_v24 = vpack.i.bf16 %v6503_v21, %v6501_v20  ;;  %v851_v60 = vsel %vm816_vm2, %v848_v9, %v850_v49  ;;  %v1077_v7 = vsel %vm1042_vm3, %v1074_v17, %v1076_v5 }
  0xc9   : > { %v618_v25 = vpop.f32.mrf.mxu2 }
  0xca   : > { %5358 = vrot.lane.b32.xlu1 %v5357_v24, %s6309_s11  ;;  %v716_v37 = vpack.c.bf16 %v618_v25, %v618_v25 }
  0xcb   : > { %v565_v33 = vpop.f32.mrf.mxu0 }
  0xcc   : > { %5353 = vrot.lane.b32.xlu2 %v5352_v32, %s6310_s12  ;;  %v695_v42 = vpack.c.bf16 %v565_v33, %v565_v33  ;;  %v6514_v45 = vunpack.c.l.bf16 %v716_v37 }
  0xce   : > { %9782 = vst [vmem:[#allocation10_spill] sm:$0xff] %v6514_v45  ;;  %v6519_v50 = vunpack.c.l.bf16 %v695_v42  ;;  %v852_v53 = vrot.slane %v6514_v45, 1  ;;  %v1078_v6 = vrot.slane %v6514_v45, 2 }
  0xd0   : > { %9784 = vst [vmem:[#allocation12_spill] sm:$0xff] %v6519_v50 }
  0xd1   : > { %v620_v38 = vpop.f32.mrf.mxu2 }
  0xd2   : > { %v717_v43 = vpack.c.bf16 %v620_v38, %v620_v38 }
  0xd3   : > { %v568_v44 = vpop.f32.mrf.mxu0 }
  0xd4   : > { %v6516_v46 = vunpack.c.l.bf16 %v717_v43  ;;  %v696_v47 = vpack.c.bf16 %v568_v44, %v568_v44 }
  0xd6   : > { %9783 = vst [vmem:[#allocation11_spill] sm:$0xff] %v6516_v46  ;;  %v6521_v51 = vunpack.c.l.bf16 %v696_v47  ;;  %v853_v55 = vrot.slane %v6516_v46, 1  ;;  %v1079_v2 = vrot.slane %v6516_v46, 2 }
  0xd8   : > { %9785 = vst [vmem:[#allocation13_spill] sm:$0xff] %v6521_v51  ;;  %v5367_v56 = vpack.i.bf16 %v6521_v51, %v6519_v50  ;;  %v5362_v59 = vpack.i.bf16 %v6521_v51, %v1578_v63  ;;  %v854_v61 = vsel %vm816_vm2, %v852_v53, %v853_v55  ;;  %v1080_v63 = vsel %vm1042_vm3, %v1078_v6, %v1079_v2 }
  0xd9   : > { %v623_v62 = vpop.f32.mrf.mxu2  ;;  %v5372_v1 = vpack.i.bf16 %v854_v61, %v851_v60  ;;  %v5377_v8 = vpack.i.bf16 %v1080_v63, %v1077_v7  ;;  %v817_v38 = vrot.slane %v6521_v51, 1 }
  0xda   : > { %5368 = vrot.lane.b32.xlu2 %v5367_v56, %s6309_s11  ;;  %5363 = vrot.lane.b32.xlu0 %v5362_v59, %s6310_s12  ;;  %v718_v12 = vpack.c.bf16 %v623_v62, %v623_v62 }
  0xdb   : > { %5373 = vrot.lane.b32.xlu1 %v5372_v1, %s6309_s11  ;;  %v570_v3 = vpop.f32.mrf.mxu0 }
  0xdc   : > { %v697_v10 = vpack.c.bf16 %v570_v3, %v570_v3  ;;  %v6546_v22 = vunpack.c.l.bf16 %v718_v12 }
  0xde   : > { %v6541_v16 = vunpack.c.l.bf16 %v697_v10  ;;  %9789 = vst [vmem:[#allocation17_spill] sm:$0xff] %v6546_v22  ;;  %v1081_v33 = vrot.slane %v6546_v22, 2  ;;  %v855_v61 = vrot.slane %v6546_v22, 1 }
  0xe0   : > { %9787 = vst [vmem:[#allocation15_spill] sm:$0xff] %v6541_v16  ;;  %v818_v35 = vrot.slane %v6541_v16, 1  ;;  %v1082_v43 = vsel %vm1042_vm3, %v1079_v2, %v1081_v33  ;;  %v856_v6 = vsel %vm816_vm2, %v853_v55, %v855_v61 }
  0xe1   : > { %v625_v9 = vpop.f32.mrf.mxu2 }
  0xe2   : > { %v719_v11 = vpack.c.bf16 %v625_v9, %v625_v9  ;;  %5378 = vrot.lane.b32.xlu0 %v5377_v8, %s6310_s12 }
  0xe3   : > { %v573_v13 = vpop.f32.mrf.mxu0 }
  0xe4   : > { %v6539_v14 = vunpack.c.l.bf16 %v719_v11  ;;  %v698_v15 = vpack.c.bf16 %v573_v13, %v573_v13 }
  0xe6   : > { %9786 = vst [vmem:[#allocation14_spill] sm:$0xff] %v6539_v14  ;;  %v6543_v18 = vunpack.c.l.bf16 %v698_v15  ;;  %v857_v19 = vrot.slane %v6539_v14, 1  ;;  %v1083_v25 = vrot.slane %v6539_v14, 2  ;;  %v1044_v15 = vrot.slane %v6541_v16, 2 }
  0xe8   : > { %9788 = vst [vmem:[#allocation16_spill] sm:$0xff] %v6543_v18  ;;  %v5382_v17 = vpack.i.bf16 %v857_v19, %v850_v49  ;;  %v5397_v23 = vpack.i.bf16 %v6543_v18, %v6541_v16  ;;  %v820_v31 = vrot.slane %v6543_v18, 1  ;;  %v1084_v37 = vsel %vm1042_vm3, %v1081_v33, %v1083_v25 }
  0xe9   : > { %v628_v24 = vpop.f32.mrf.mxu2  ;;  %v5387_v44 = vpack.i.bf16 %v1083_v25, %v1076_v5  ;;  %v5407_v47 = vpack.i.bf16 %v1084_v37, %v1082_v43  ;;  %v819_v49 = vsel %vm816_vm2, %v817_v38, %v818_v35  ;;  %v858_v2 = vsel %vm816_vm2, %v855_v61, %v857_v19 }
  0xea   : > { %5383 = vrot.lane.b32.xlu2 %v5382_v17, %s6309_s11  ;;  %5398 = vrot.lane.b32.xlu1 %v5397_v23, %s6310_s12  ;;  %v821_v42 = vsel %vm816_vm2, %v818_v35, %v820_v31  ;;  %v720_v63 = vpack.c.bf16 %v628_v24, %v628_v24  ;;  %v5402_v8 = vpack.i.bf16 %v858_v2, %v856_v6  ;;  %v1046_v11 = vrot.slane %v6543_v18, 2 }
  0xeb   : > { %5393 = vrot.lane.b32.xlu0 %v5397_v23, %s6309_s11  ;;  %v575_v32 = vpop.f32.mrf.mxu0  ;;  %v5412_v56 = vpack.i.bf16 %v821_v42, %v819_v49  ;;  %v1043_v24 = vrot.slane %v6521_v51, 2 }
  0xec   : > { %v699_v59 = vpack.c.bf16 %v575_v32, %v575_v32  ;;  %v6580_v19 = vunpack.c.l.bf16 %v720_v63  ;;  %v1047_v25 = vsel %vm1042_vm3, %v1044_v15, %v1046_v11 }
  0xed   : > { %v1045_v37 = vsel %vm1042_vm3, %v1043_v24, %v1044_v15 }
  0xee   : > { %v6567_v3 = vunpack.c.l.bf16 %v699_v59  ;;  %9793 = vst [vmem:[#allocation21_spill] sm:$0xff] %v6580_v19  ;;  %v859_v33 = vrot.slane %v6580_v19, 1  ;;  %v5417_v38 = vpack.i.bf16 %v1047_v25, %v1045_v37 }
  0xf0   : > { %9790 = vst [vmem:[#allocation18_spill] sm:$0xff] %v6567_v3 }
  0xf1   : > { %v630_v53 = vpop.f32.mrf.mxu2 }
  0xf2   : > { %5388 = vrot.lane.b32.xlu2 %v5387_v44, %s6310_s12  ;;  %5408 = vrot.lane.b32.xlu1 %v5407_v47, %s6310_s12  ;;  %v721_v62 = vpack.c.bf16 %v630_v53, %v630_v53 }
  0xf3   : > { %5413 = vrot.lane.b32.xlu0 %v5412_v56, %s6309_s11  ;;  %v578_v60 = vpop.f32.mrf.mxu0  ;;  %v822_v56 = vrot.slane %v6567_v3, 1 }
  0xf4   : > { %v700_v1 = vpack.c.bf16 %v578_v60, %v578_v60  ;;  %v6572_v7 = vunpack.c.l.bf16 %v721_v62 }
  0xf6   : > { %v6569_v5 = vunpack.c.l.bf16 %v700_v1  ;;  %9792 = vst [vmem:[#allocation20_spill] sm:$0xff] %v6572_v7  ;;  %v860_v23 = vrot.slane %v6572_v7, 1  ;;  %v823_v1 = vsel %vm816_vm2, %v820_v31, %v822_v56 }
  0xf8   : > { %9791 = vst [vmem:[#allocation19_spill] sm:$0xff] %v6569_v5  ;;  %v5427_v9 = vpack.i.bf16 %v6567_v3, %v6569_v5  ;;  %v861_v42 = vsel %vm816_vm2, %v859_v33, %v860_v23  ;;  %v824_v59 = vrot.slane %v6569_v5, 1  ;;  %v5422_v62 = vpack.i.bf16 %v6569_v5, %v6567_v3 }
  0xf9   : > { %v633_v10 = vpop.f32.mrf.mxu2  ;;  %v1050_v31 = vrot.slane %v6569_v5, 2 }
  0xfa   : > { %v722_v12 = vpack.c.bf16 %v633_v10, %v633_v10  ;;  %5403 = vrot.lane.b32.xlu2 %v5402_v8, %s6309_s11  ;;  %5428 = vrot.lane.b32.xlu1 %v5427_v9, %s6310_s12 }
  0xfb   : > { %v580_v13 = vpop.f32.mrf.mxu0 }
  0xfc   : > { %v6582_v55 = vunpack.c.l.bf16 %v722_v12  ;;  %v701_v17 = vpack.c.bf16 %v580_v13, %v580_v13  ;;  %v1086_v12 = vrot.slane %v6572_v7, 2  ;;  %v1048_v13 = vrot.slane %v6567_v3, 2 }
  0xfe   : > { %9794 = vst [vmem:[#allocation22_spill] sm:$0xff] %v6582_v55  ;;  %v6587_v32 = vunpack.c.l.bf16 %v701_v17  ;;  %v862_v35 = vrot.slane %v6582_v55, 1  ;;  %v1088_v63 = vrot.slane %v6582_v55, 2 }
 0x100   : > { %9795 = vst [vmem:[#allocation23_spill] sm:$0xff] %v6587_v32  ;;  %v863_v43 = vsel %vm816_vm2, %v860_v23, %v862_v35  ;;  %v825_v49 = vrot.slane %v6587_v32, 1  ;;  %v1051_v9 = vrot.slane %v6587_v32, 2  ;;  %v1085_v23 = vrot.slane %v6580_v19, 2 }
 0x101   : > { %v635_v44 = vpop.f32.mrf.mxu2  ;;  %v5432_v47 = vpack.i.bf16 %v863_v43, %v861_v42  ;;  %v1089_v24 = vsel %vm1042_vm3, %v1086_v12, %v1088_v63  ;;  %v1049_v42 = vsel %vm1042_vm3, %v1046_v11, %v1048_v13 }
 0x102   : > { %5418 = vrot.lane.b32.xlu2 %v5417_v38, %s6310_s12  ;;  %v826_v61 = vsel %vm816_vm2, %v824_v59, %v825_v49  ;;  %v723_v15 = vpack.c.bf16 %v635_v44, %v635_v44  ;;  %v1052_v33 = vsel %vm1042_vm3, %v1050_v31, %v1051_v9  ;;  %v1087_v38 = vsel %vm1042_vm3, %v1085_v23, %v1086_v12 }
 0x103   : > { %5433 = vrot.lane.b32.xlu0 %v5432_v47, %s6309_s11  ;;  %v583_v53 = vpop.f32.mrf.mxu0  ;;  %v5442_v6 = vpack.i.bf16 %v826_v61, %v823_v1  ;;  %v5437_v47 = vpack.i.bf16 %v1089_v24, %v1087_v38  ;;  %v5447_v59 = vpack.i.bf16 %v1052_v33, %v1049_v42 }
 0x104   : > { %v702_v60 = vpack.c.bf16 %v583_v53, %v583_v53  ;;  %v6622_v43 = vunpack.c.l.bf16 %v723_v15 }
 0x106   : > { %v6606_v8 = vunpack.c.l.bf16 %v702_v60  ;;  %9798 = vst [vmem:[#allocation26_spill] sm:$0xff] %v6622_v43 }
 0x108   : > { %9796 = vst [vmem:[#allocation24_spill] sm:$0xff] %v6606_v8  ;;  %v827_v37 = vrot.slane %v6606_v8, 1  ;;  %v1053_v15 = vrot.slane %v6606_v8, 2 }
 0x109   : > { %v638_v2 = vpop.f32.mrf.mxu2 }
 0x10a   : > { %5423 = vrot.lane.b32.xlu2 %v5422_v62, %s6309_s11  ;;  %v724_v44 = vpack.c.bf16 %v638_v2, %v638_v2  ;;  %v828_v61 = vsel %vm816_vm2, %v825_v49, %v827_v37  ;;  %v1054_v38 = vsel %vm1042_vm3, %v1051_v9, %v1053_v15 }
 0x10b   : > { %5443 = vrot.lane.b32.xlu0 %v5442_v6, %s6309_s11  ;;  %v585_v10 = vpop.f32.mrf.mxu0 }
 0x10c   : > { %v703_v17 = vpack.c.bf16 %v585_v10, %v585_v10  ;;  %v6631_v6 = vunpack.c.l.bf16 %v724_v44  ;;  %v1090_v10 = vrot.slane %v6622_v43, 2 }
 0x10e   : > { %v6616_v25 = vunpack.c.l.bf16 %v703_v17  ;;  %9799 = vst [vmem:[#allocation27_spill] sm:$0xff] %v6631_v6  ;;  %v1092_v49 = vrot.slane %v6631_v6, 2  ;;  %v6643_v17 = vpack.i.bf16 %v6606_v8, %v6587_v32  ;;  %v1091_v31 = vsel %vm1042_vm3, %v1088_v63, %v1090_v10 }
 0x110   : > { %9797 = vst [vmem:[#allocation25_spill] sm:$0xff] %v6616_v25  ;;  %v9566_v53 = vrot.slane %v6616_v25, 1  ;;  %v9564_v12 = vrot.slane %v6616_v25, 2 }
 0x111   : > { %v640_v56 = vpop.f32.mrf.mxu2 }
 0x112   : > { %v725_v60 = vpack.c.bf16 %v640_v56, %v640_v56  ;;  %5438 = vrot.lane.b32.xlu2 %v5437_v47, %s6310_s12  ;;  %v830_v62 = vsel %vm816_vm2, %v827_v37, %v9566_v53  ;;  %v1056_v24 = vsel %vm1042_vm3, %v1053_v15, %v9564_v12  ;;  %v864_v56 = vrot.slane %v6622_v43, 1 }
 0x113   : > { %5448 = vrot.lane.b32.xlu0 %v5447_v59, %s6310_s12  ;;  %v588_v11 = vpop.f32.mrf.mxu0  ;;  %v5457_v1 = vpack.i.bf16 %v830_v62, %v828_v61  ;;  %v5462_v44 = vpack.i.bf16 %v1056_v24, %v1054_v38  ;;  %v866_v59 = vrot.slane %v6631_v6, 1 }
 0x114   : > { %v6633_v2 = vunpack.c.l.bf16 %v725_v60  ;;  %v704_v15 = vpack.c.bf16 %v588_v11, %v588_v11 }
 0x115   : > { %5458 = vrot.lane.b32.xlu1 %v5457_v1, %s6309_s11 }
 0x116   : > { %9800 = vst [vmem:[#allocation28_spill] sm:$0xff] %v6633_v2  ;;  %v1093_v13 = vrot.slane %v6633_v2, 2  ;;  %v867_v63 = vrot.slane %v6633_v2, 1  ;;  %v6660_v60 = vpop.permute.xlu2 %5338 }
 0x118   : > { %v1094_v23 = vsel %vm1042_vm3, %v1092_v49, %v1093_v13  ;;  %v868_v62 = vsel %vm816_vm2, %v866_v59, %v867_v63  ;;  %v865_v49 = vsel %vm816_vm2, %v862_v35, %v864_v56  ;;  %v6677_v35 = vunpack.c.l.bf16 %v704_v15 }
 0x119   : > { %v643_v33 = vpop.f32.mrf.mxu2  ;;  %v5472_v37 = vpack.i.bf16 %v1094_v23, %v1091_v31  ;;  %v5467_v23 = vpack.i.bf16 %v868_v62, %v865_v49 }
 0x11a   : > { %5453 = vrot.lane.b32.xlu2 %v6643_v17, %s6310_s12  ;;  %v726_v47 = vpack.c.bf16 %v643_v33, %v643_v33  ;;  %9804 = vst [vmem:[#allocation32_spill] sm:$0xff] %v6677_v35 }
 0x11b   : > { %5473 = vrot.lane.b32.xlu0 %v5472_v37, %s6310_s12  ;;  %v590_v42 = vpop.f32.mrf.mxu0 }
 0x11c   : > { %v6662_v61 = vunpack.c.l.bf16 %v726_v47  ;;  %v705_v24 = vpack.c.bf16 %v590_v42, %v590_v42 }
 0x11d   : > { %5463 = vrot.lane.b32.xlu1 %v5462_v44, %s6310_s12 }
 0x11e   : > { %9801 = vst [vmem:[#allocation29_spill] sm:$0xff] %v6662_v61  ;;  %v869_v38 = vrot.slane %v6662_v61, 1  ;;  %v1095_v59 = vrot.slane %v6662_v61, 2  ;;  %v6679_v11 = vunpack.c.l.bf16 %v705_v24 }
 0x120   : > { %9805 = vst [vmem:[#allocation33_spill] sm:$0xff] %v6679_v11  ;;  %v870_v62 = vsel %vm816_vm2, %v867_v63, %v869_v38  ;;  %v1096_v58 = vsel %vm1042_vm3, %v1093_v13, %v1095_v59  ;;  %v1057_v63 = vrot.slane %v6677_v35, 2  ;;  %v831_v13 = vrot.slane %v6677_v35, 1 }
 0x121   : > { %v645_v9 = vpop.f32.mrf.mxu2 }
 0x122   : > { %v727_v1 = vpack.c.bf16 %v645_v9, %v645_v9 }
 0x123   : > { %v593_v31 = vpop.f32.mrf.mxu0 }
 0x124   : > { %v6668_v33 = vunpack.c.l.bf16 %v727_v1  ;;  %v706_v37 = vpack.c.bf16 %v593_v31, %v593_v31 }
 0x125   : > { %5468 = vrot.lane.b32.xlu1 %v5467_v23, %s6309_s11 }
 0x126   : > { %9802 = vst [vmem:[#allocation30_spill] sm:$0xff] %v6668_v33  ;;  %v6672_v44 = vunpack.c.l.bf16 %v706_v37  ;;  %v871_v47 = vrot.slane %v6668_v33, 1  ;;  %v1097_v9 = vrot.slane %v6668_v33, 2  ;;  %v6684_v37 = vpop.permute.xlu2 %5343 }
 0x128   : > { %9803 = vst [vmem:[#allocation31_spill] sm:$0xff] %v6672_v44  ;;  %v5477_v42 = vpack.i.bf16 %v871_v47, %v864_v56  ;;  %v872_v1 = vsel %vm816_vm2, %v869_v38, %v871_v47  ;;  %v1098_v23 = vsel %vm1042_vm3, %v1095_v59, %v1097_v9  ;;  %v9567_v15 = vrot.slane %v6672_v44, 2 }
 0x129   : > { %v648_v49 = vpop.f32.mrf.mxu2  ;;  %v5487_v31 = vpack.i.bf16 %v872_v1, %v870_v62  ;;  %v5492_v56 = vpack.i.bf16 %v1098_v23, %v1096_v58  ;;  %v1058_v38 = vrot.slane %v6679_v11, 2  ;;  %v9568_v47 = vrot.slane %v6672_v44, 1 }
 0x12a   : > { %5478 = vrot.lane.b32.xlu0 %v5477_v42, %s6309_s11  ;;  %v832_v59 = vrot.slane %v6679_v11, 1  ;;  %v5482_v58 = vpack.i.bf16 %v1097_v9, %v1090_v10  ;;  %v711_v23 = vpack.c.bf16 %v6447_v30, %v6447_v30 }
 0x12b   : > { %5488 = vrot.lane.b32.xlu2 %v5487_v31, %s6309_s11  ;;  %v595_v24 = vpop.f32.mrf.mxu0  ;;  %v1061_v42 = vsel %vm1042_vm3, %v1058_v38, %v9567_v15  ;;  %v1059_v1 = vsel %vm1042_vm3, %v1057_v63, %v1058_v38  ;;  %v728_v38 = vpack.c.bf16 %v648_v49, %v648_v49 }
 0x12c   : > { %v707_v62 = vpack.c.bf16 %v595_v24, %v595_v24  ;;  %v835_v31 = vsel %vm816_vm2, %v832_v59, %v9568_v47  ;;  %v5502_v12 = vpack.i.bf16 %v1061_v42, %v1059_v1  ;;  %v833_v53 = vsel %vm816_vm2, %v831_v13, %v832_v59  ;;  %v6709_v24 = vpop.permute.xlu0 %3064 }
 0x12d   : > { %5493 = vrot.lane.b32.xlu1 %v5492_v56, %s6310_s12  ;;  %9806 = vst [vmem:[#allocation34_spill] sm:$0xff] %v6709_v24  ;;  %v5497_v9 = vpack.i.bf16 %v835_v31, %v833_v53  ;;  %v6716_v47 = vunpack.c.l.bf16 %v711_v23  ;;  %v6722_v13 = vunpack.c.l.bf16 %v728_v38 }
 0x12e   : > { %v6711_v15 = vunpack.c.l.bf16 %v707_v62  ;;  %v6714_v63 = vpop.permute.xlu2 %5353 }
 0x12f   : > { %9808 = vst [vmem:[#allocation36_spill] sm:$0xff] %v6716_v47  ;;  %v9571_v62 = vrot.slane %v6716_v47, 1  ;;  %v1099_v31 = vrot.slane %v6722_v13, 2 }
 0x130   : > { %9807 = vst [vmem:[#allocation35_spill] sm:$0xff] %v6711_v15  ;;  %v836_v42 = vrot.slane %v6711_v15, 1 }
 0x131   : > { %v650_v56 = vpop.f32.mrf.mxu2  ;;  %9810 = vst [vmem:[#allocation38_spill] sm:$0xff] %v6722_v13 }
 0x132   : > { %v729_v48 = vpack.c.bf16 %v650_v56, %v650_v56  ;;  %5483 = vrot.lane.b32.xlu0 %v5482_v58, %s6310_s12  ;;  %v5507_v49 = vpack.i.bf16 %v9571_v62, %v836_v42 }
 0x133   : > { %5503 = vrot.lane.b32.xlu2 %v5502_v12, %s6310_s12  ;;  %v598_v10 = vpop.f32.mrf.mxu0  ;;  %v873_v12 = vrot.slane %v6722_v13, 1 }
 0x134   : > { %v6719_v30 = vunpack.c.l.bf16 %v729_v48  ;;  %v708_v48 = vpack.c.bf16 %v598_v10, %v598_v10  ;;  %v6735_v3 = vpop.permute.xlu0 %5333  ;;  %v1062_v10 = vrot.slane %v6711_v15, 2 }
 0x135   : > { %5498 = vrot.lane.b32.xlu1 %v5497_v9, %s6309_s11 }
 0x136   : > { %9809 = vst [vmem:[#allocation37_spill] sm:$0xff] %v6719_v30  ;;  %v874_v53 = vrot.slane %v6719_v30, 1  ;;  %v6730_v23 = vpop.permute.xlu2 %5368  ;;  %v1100_v38 = vrot.slane %v6719_v30, 2  ;;  %v6744_v13 = vunpack.c.l.bf16 %v708_v48 }
 0x138   : > { %v875_v50 = vsel %vm816_vm2, %v873_v12, %v874_v53  ;;  %9813 = vst [vmem:[#allocation41_spill] sm:$0xff] %v6744_v13  ;;  %v9585_v12 = vrot.slane %v6716_v47, 2 }
 0x139   : > { %v653_v59 = vpop.f32.mrf.mxu2 }
 0x13a   : > { %v730_v58 = vpack.c.bf16 %v653_v59, %v653_v59 }
 0x13b   : > { %v600_v1 = vpop.f32.mrf.mxu0 }
 0x13c   : > { %v6732_v56 = vunpack.c.l.bf16 %v730_v58  ;;  %v709_v9 = vpack.c.bf16 %v600_v1, %v600_v1  ;;  %v1101_v1 = vsel %vm1042_vm3, %v1099_v31, %v1100_v38  ;;  %v5359_v21 = vpop.permute.xlu1 %5358 }
 0x13d   : > { %5508 = vrot.lane.b32.xlu1 %v5507_v49, %s6309_s11 }
 0x13e   : > { %9811 = vst [vmem:[#allocation39_spill] sm:$0xff] %v6732_v56  ;;  %v6738_v59 = vunpack.c.l.bf16 %v709_v9  ;;  %v876_v62 = vrot.slane %v6732_v56, 1  ;;  %v9584_v51 = vrot.slane %v6732_v56, 2  ;;  %v1064_v9 = vrot.slane %v6744_v13, 2 }
 0x140   : > { %9812 = vst [vmem:[#allocation40_spill] sm:$0xff] %v6738_v59  ;;  %v877_v58 = vsel %vm816_vm2, %v874_v53, %v876_v62  ;;  %v1103_v49 = vsel %vm1042_vm3, %v1100_v38, %v9584_v51  ;;  %v9588_v8 = vrot.slane %v6738_v59, 2  ;;  %v5512_v53 = vpack.i.bf16 %v9585_v12, %v1062_v10 }
 0x141   : > { %v655_v16 = vpop.f32.mrf.mxu2  ;;  %v5517_v30 = vpack.i.bf16 %v877_v58, %v875_v50  ;;  %v5522_v48 = vpack.i.bf16 %v1103_v49, %v1101_v1  ;;  %v838_v50 = vrot.slane %v6744_v13, 1  ;;  %v710_v38 = vpack.c.bf16 %v6441_v27, %v6441_v27  ;;  %v6770_v1 = vpop.permute.xlu0 %5348 }
 0x142   : > { %v731_v32 = vpack.c.bf16 %v655_v16, %v655_v16  ;;  %v1066_v16 = vsel %vm1042_vm3, %v1064_v9, %v9588_v8  ;;  %v9815_v49 = vrot.slane %v6672_v44, 2  ;;  %v9817_v27 = vrot.slane %v6672_v44, 1 }
 0x143   : > { %5518 = vrot.lane.b32.xlu0 %v5517_v30, %s6309_s11  ;;  %5523 = vrot.lane.b32.xlu2 %v5522_v48, %s6310_s12  ;;  %v839_v30 = vrot.slane %v6738_v59, 1  ;;  %v6776_v12 = vunpack.c.l.bf16 %v710_v38  ;;  %v5547_v8 = vpack.i.bf16 %v6738_v59, %v6616_v25  ;;  %v9825_v33 = vrot.slane %v6738_v59, 2 }
 0x144   : > { %v6757_v31 = vpop.permute.xlu2 %5383  ;;  %v6764_v58 = vunpack.c.l.bf16 %v731_v32  ;;  %v1063_v51 = vsel %vm1042_vm3, %v9815_v49, %v1062_v10  ;;  %v837_v32 = vsel %vm816_vm2, %v9817_v27, %v836_v42  ;;  %v6790_v10 = vpop.f32.mrf.mxu3  ;;  %v5336_v27 = vunpack.i.h.bf16 %v6735_v3 }
 0x145   : > { %5513 = vrot.lane.b32.xlu1 %v5512_v53, %s6310_s12  ;;  %v840_v48 = vsel %vm816_vm2, %v838_v50, %v839_v30  ;;  %v5537_v53 = vpack.i.bf16 %v1066_v16, %v1063_v51  ;;  %9816 = vst [vmem:[#allocation43_spill] sm:$0xff] %v6776_v12  ;;  %v841_v42 = vrot.slane %v6776_v12, 1  ;;  %v9819_v50 = vrot.slane %v6616_v25, 1 }
 0x146   : > { %9814 = vst [vmem:[#allocation42_spill] sm:$0xff] %v6764_v58  ;;  %v9592_v5 = vrot.slane %v6764_v58, 1  ;;  %v5527_v9 = vpack.i.bf16 %v840_v48, %v837_v32  ;;  %v688_v48 = vpack.c.bf16 %v6436_v26, %v6436_v26 }
 0x147   : > { %9818 = vst [vmem:[#allocation44_spill] sm:$0xff] %v6790_v10  ;;  %v842_v49 = vsel %vm816_vm2, %v839_v30, %v841_v42  ;;  %v5360_v30 = vunpack.i.l.bf16 %v5359_v21 }
 0x148   : > { %v879_v51 = vsel %vm816_vm2, %v876_v62, %v9592_v5  ;;  %v689_v62 = vpack.c.bf16 %v6445_v29, %v6445_v29  ;;  %v5557_v5 = vpack.i.bf16 %v6711_v15, %v6672_v44 }
 0x149   : > { %v6797_v38 = vpack.i.bf16 %v9819_v50, %v879_v51  ;;  %v2257_v50 = vunpack.c.l.bf16 %v688_v48  ;;  %v5763_v48 = vld [vmem:[%s9560_s3 + $0x3] ss:$0 sm:$0xff] }
 0x14a   : > { %v2258_v29 = vunpack.c.l.bf16 %v689_v62  ;;  %v5552_v62 = vpack.i.bf16 %v6677_v35, %v6679_v11 }
 0x14b   : > { %5538 = vrot.lane.b32.xlu0 %v5537_v53, %s6310_s12  ;;  %5528 = vrot.lane.b32.xlu2 %v5527_v9, %s6309_s11  ;;  %v9820_v53 = vrot.slane %v6716_v47, 1  ;;  %v5562_v9 = vpack.i.bf16 %v6776_v12, %v6744_v13 }
 0x14c   : > { %v6785_v43 = vpop.permute.xlu2 %5388  ;;  %v6799_v16 = vpop.permute.xlu0 %5363 }
 0x14d   : > { %5548 = vrot.lane.b32.xlu1 %v5547_v8, %s6310_s12  ;;  %v844_v8 = vsel %vm816_vm2, %v841_v42, %v9820_v53  ;;  %v6814_v51 = vpop.permute.xlu1 %5373  ;;  %v6820_v42 = vpop.f32.mrf.mxu3  ;;  %v2377_v53 = vadd.f32 %v5336_v27, %v2257_v50 }
 0x14e   : > { %v5532_v32 = vpack.i.bf16 %v844_v8, %v842_v49  ;;  %9822 = vst [vmem:[#allocation46_spill] sm:$0xff] %v6820_v42  ;;  %v2378_v49 = vadd.f32 %v5360_v30, %v2258_v29  ;;  %v5366_v30 = vunpack.i.h.bf16 %v6799_v16 }
 0x153   : > { %5543 = vrot.lane.b32.xlu0 %v6643_v17, %s6309_s11  ;;  %5533 = vrot.lane.b32.xlu2 %v5532_v32, %s6309_s11  ;;  %v690_v17 = vpack.c.bf16 %v6451_v34, %v6451_v34  ;;  %v5361_v32 = vunpack.i.h.bf16 %v5359_v21  ;;  %v1067_v21 = vrot.slane %v6776_v12, 2 }
 0x154   : > { %v6816_v26 = vpop.permute.xlu2 %5403  ;;  %v6824_v8 = vpop.permute.xlu0 %5378 }
 0x155   : > { %9821 = vst [vmem:[#allocation45_spill] sm:$0xff] %v6816_v26  ;;  %5563 = vrot.lane.b32.xlu1 %v5562_v9, %s6310_s12  ;;  %v2413_v26 = vpack.c.bf16 %v2377_v53, %v2377_v53  ;;  %v2259_v27 = vunpack.c.l.bf16 %v690_v17  ;;  %v2414_v9 = vpack.c.bf16 %v2378_v49, %v2378_v49  ;;  %v1068_v17 = vsel %vm1042_vm3, %v9825_v33, %v1067_v21  ;;  %v6843_v49 = vpop.f32.mrf.mxu3 }
 0x156   : > { %9823 = vst [vmem:[#allocation47_spill] sm:$0xff] %v6824_v8 }
 0x157   : > { %v2379_v50 = vadd.f32 %v5361_v32, %v2259_v27  ;;  %v2449_v53 = vunpack.c.l.bf16 %v2413_v26  ;;  %9826 = vst [vmem:[#allocation49_spill] sm:$0xff] %v6843_v49  ;;  %v9827_v32 = vrot.slane %v6716_v47, 2  ;;  %v5567_v26 = vpack.i.bf16 %v6679_v11, %v6677_v35 }
 0x159   : > { %v2593_v8 = vadd.f32 %v5366_v30, %v2449_v53  ;;  %v2415_v6 = vpack.c.bf16 %v2379_v50, %v2379_v50  ;;  %v1070_v27 = vsel %vm1042_vm3, %v1067_v21, %v9827_v32  ;;  %v691_v50 = vpack.c.bf16 %v6455_v39, %v6455_v39 }
 0x15a   : > { %v5587_v33 = vpack.i.bf16 %v1070_v27, %v1068_v17  ;;  %v5370_v53 = vunpack.i.l.bf16 %v6730_v23  ;;  %v5582_v32 = vpack.i.bf16 %v6776_v12, %v6616_v25  ;;  %v5577_v39 = vpack.i.bf16 %v6738_v59, %v6744_v13 }
 0x15b   : > { %5558 = vrot.lane.b32.xlu0 %v5557_v5, %s6309_s11  ;;  %5553 = vrot.lane.b32.xlu2 %v5552_v62, %s6309_s11  ;;  %v2450_v5 = vunpack.c.l.bf16 %v2414_v9  ;;  %v5572_v62 = vpack.i.bf16 %v6716_v47, %v6672_v44  ;;  %v2629_v2 = vpack.c.bf16 %v2593_v8, %v2593_v8  ;;  %v2260_v27 = vunpack.c.l.bf16 %v691_v50 }
 0x15c   : > { %v5399_v34 = vpop.permute.xlu1 %5398  ;;  %v6837_v42 = vpop.permute.xlu2 %5418 }
 0x15d   : > { %3617 = vrot.lane.b32.xlu1 %v5763_v48, %s6308_s10  ;;  %v5400_v29 = vunpack.i.l.bf16 %v5399_v34  ;;  %9824 = vst [vmem:[#allocation48_spill] sm:$0xff] %v6837_v42  ;;  %v6850_v42 = vpop.permute.xlu0 %5393  ;;  %v5401_v9 = vunpack.i.h.bf16 %v5399_v34  ;;  %v732_v34 = vpack.c.bf16 %v6443_v28, %v6443_v28  ;;  %v2666_v8 = vshrl.u32 %v2629_v2, 16  ;;  %v6868_v44 = vpop.f32.mrf.mxu3 }
 0x15e   : > { %v2669_v17 = vshll.u32 %v2629_v2, 16 }
 0x15f   : > { %v2594_v48 = vadd.f32 %v5400_v29, %v2450_v5  ;;  %v2451_v29 = vunpack.c.l.bf16 %v2415_v6  ;;  %v5592_v6 = vpack.i.bf16 %v6475_v57, %v6482_v0  ;;  %v2668_v2 = vrot.slane %v2666_v8, 5 }
 0x161   : > { %v2630_v21 = vpack.c.bf16 %v2594_v48, %v2594_v48  ;;  %v2595_v5 = vadd.f32 %v5401_v9, %v2451_v29  ;;  %v2380_v48 = vadd.f32 %v5370_v53, %v2260_v27  ;;  %v6875_v9 = vunpack.c.l.bf16 %v732_v34 }
 0x162   : > { %v2671_v29 = vrot.slane %v2669_v17, 6  ;;  %v5340_v53 = vunpack.i.l.bf16 %v6660_v60 }
 0x163   : > { %5573 = vrot.lane.b32.xlu0 %v5572_v62, %s6310_s12  ;;  %5568 = vrot.lane.b32.xlu2 %v5567_v26, %s6310_s12  ;;  %v2675_v26 = vshrl.u32 %v2630_v21, 16  ;;  %v2631_v28 = vpack.c.bf16 %v2595_v5, %v2595_v5  ;;  %9830 = vst [vmem:[#allocation52_spill] sm:$0xff] %v6875_v9  ;;  %v2416_v8 = vpack.c.bf16 %v2380_v48, %v2380_v48  ;;  %v5341_v48 = vunpack.i.h.bf16 %v6660_v60 }
 0x164   : > { %v6856_v30 = vpop.permute.xlu1 %5408  ;;  %v6862_v62 = vpop.permute.xlu2 %5423 }
 0x165   : > { %9828 = vst [vmem:[#allocation50_spill] sm:$0xff] %v6856_v30  ;;  %5588 = vrot.lane.b32.xlu1 %v5587_v33, %s6310_s12  ;;  %v2678_v33 = vshll.u32 %v2630_v21, 16  ;;  %v6877_v12 = vpop.permute.xlu0 %5413  ;;  %v2677_v50 = vrot.slane %v2675_v26, 5  ;;  %v2685_v17 = vshrl.u32 %v2631_v28, 16  ;;  %v2688_v27 = vshll.u32 %v2631_v28, 16 }
 0x166   : > { %9829 = vst [vmem:[#allocation51_spill] sm:$0xff] %v6862_v62  ;;  %v2672_v26 = vor.u32 %v2671_v29, %v2668_v2  ;;  %v5607_v62 = vpack.i.bf16 %v6516_v46, %v6512_v36  ;;  %v1546_v28 = vadd.f32 %v5340_v53, %v6457_v40  ;;  %v2452_v2 = vunpack.c.l.bf16 %v2416_v8 }
 0x167   : > { %9831 = vst [vmem:[#allocation53_spill] sm:$0xff] %v6877_v12  ;;  %v2680_v21 = vrot.slane %v2678_v33, 6  ;;  %v2687_v29 = vrot.slane %v2685_v17, 5  ;;  %v5395_v12 = vunpack.i.l.bf16 %v6850_v42  ;;  %v9834_v53 = vrot.slane %v6732_v56, 2 }
 0x168   : > { %v2673_v33 = vrot.slane %v2672_v26, 4  ;;  %v1558_v26 = vpack.c.bf16 %v1546_v28, %v1546_v28 }
 0x16b   : > { %5583 = vrot.lane.b32.xlu0 %v5582_v32, %s6309_s11  ;;  %5578 = vrot.lane.b32.xlu2 %v5577_v39, %s6309_s11  ;;  %v5602_v32 = vpack.i.bf16 %v6475_v57, %v6716_v47  ;;  %v5371_v39 = vunpack.i.h.bf16 %v6730_v23  ;;  %v2681_v47 = vor.u32 %v2680_v21, %v2677_v50  ;;  %v5597_v23 = vpack.i.bf16 %v6485_v4, %v6711_v15  ;;  %v6902_v21 = vpop.f32.mrf.mxu3 }
 0x16c   : > { %v6886_v5 = vpop.permute.xlu1 %5428  ;;  %v5439_v13 = vpop.permute.xlu2 %5438  ;;  %v2690_v50 = vrot.slane %v2688_v27, 6  ;;  %9832 = vst [vmem:[#allocation54_spill] sm:$0xff] %v6902_v21 }
 0x16d   : > { %5593 = vrot.lane.b32.xlu1 %v5592_v6, %s6310_s12  ;;  %v1494_v6 = vrot.slane %v6875_v9, 1  ;;  %v5431_v59 = vunpack.i.h.bf16 %v6886_v5  ;;  %v2381_v34 = vadd.f32 %v5371_v39, %v6467_v54  ;;  %v2683_v17 = vrot.slane %v2681_v47, 4 }
 0x16e   : > { %v739_v54 = vpack.c.bf16 %v6868_v44, %v6868_v44  ;;  %v1547_v39 = vadd.f32 %v5341_v48, %v6459_v41  ;;  %v2682_v44 = vsel %vm6921_vm6, %v2673_v33, %v2681_v47  ;;  %v5345_v48 = vunpack.i.l.bf16 %v6684_v37 }
 0x16f   : > { %v2596_v27 = vadd.f32 %v5431_v59, %v2452_v2  ;;  %v2417_v28 = vpack.c.bf16 %v2381_v34, %v2381_v34  ;;  %v9839_v47 = vrot.slane %v6764_v58, 1  ;;  %v3034_v33 = vunpack.c.l.bf16 %v2682_v44 }
 0x170   : > { %v6961_v44 = vunpack.c.l.bf16 %v739_v54 }
 0x172   : > { %9842 = vst [vmem:[#allocation57_spill] sm:$0xff] %v6961_v44 }
 0x173   : > { %5603 = vrot.lane.b32.xlu0 %v5602_v32, %s6309_s11  ;;  %5598 = vrot.lane.b32.xlu2 %v5597_v23, %s6310_s12  ;;  %v9833_v32 = vrot.slane %v6764_v58, 2  ;;  %v9835_v23 = vrot.slane %v6457_v40, 1 }
 0x175   : > { %v5434_v60 = vpop.permute.xlu0 %5433  ;;  %5608 = vrot.lane.b32.xlu1 %v5607_v62, %s6310_s12  ;;  %v1105_v8 = vsel %vm1042_vm3, %v9834_v53, %v9833_v32  ;;  %v1496_v62 = vsel %vm816_vm2, %v1494_v6, %v9835_v23  ;;  %v6925_v32 = vor.u32 %v2690_v50, %v2687_v29  ;;  %v2382_v6 = vadd.f32 %v5395_v12, %v6501_v20  ;;  %v6942_v12 = vpop.permute.xlu2 %5453 }
 0x176   : > { %v5436_v15 = vunpack.i.h.bf16 %v5434_v60  ;;  %v5435_v21 = vunpack.i.l.bf16 %v5434_v60  ;;  %v9838_v60 = vrot.slane %v6616_v25, 2  ;;  %v2632_v23 = vpack.c.bf16 %v2596_v27, %v2596_v27 }
 0x177   : > { %v5430_v29 = vunpack.i.l.bf16 %v6886_v5  ;;  %v5441_v50 = vunpack.i.h.bf16 %v5439_v13  ;;  %v5612_v34 = vpack.i.bf16 %v1496_v62, %v9839_v47  ;;  %v5440_v20 = vunpack.i.l.bf16 %v5439_v13  ;;  %v6951_v13 = vpop.f32.mrf.mxu3 }
 0x178   : > { %v980_v59 = vadd.f32 %v5436_v15, %v6572_v7  ;;  %v979_v2 = vadd.f32 %v5435_v21, %v6580_v19  ;;  %v5627_v53 = vpack.i.bf16 %v9838_v60, %v1105_v8  ;;  %v2692_v15 = vsel %vm6921_vm6, %v2683_v17, %v6925_v32  ;;  %9841 = vst [vmem:[#allocation56_spill] sm:$0xff] %v6951_v13 }
 0x179   : > { %v3035_v27 = vunpack.c.l.bf16 %v2692_v15  ;;  %v2453_v60 = vunpack.c.l.bf16 %v2417_v28  ;;  %v2418_v25 = vpack.c.bf16 %v2382_v6, %v2382_v6  ;;  %v2695_v5 = vshrl.u32 %v2632_v23, 16 }
 0x17a   : > { %v1007_v30 = vpack.c.bf16 %v980_v59, %v980_v59  ;;  %v1006_v35 = vpack.c.bf16 %v979_v2, %v979_v2  ;;  %v1559_v59 = vpack.c.bf16 %v1547_v39, %v1547_v39  ;;  %v1570_v2 = vunpack.c.l.bf16 %v1558_v26 }
 0x17b   : > { %5628 = vrot.lane.b32.xlu0 %v5627_v53, %s6310_s12  ;;  %v2698_v53 = vshll.u32 %v2632_v23, 16  ;;  %v6956_v39 = vadd.f32 %v6709_v24, %v3034_v33  ;;  %v6959_v26 = vadd.f32 %v6709_v24, %v3035_v27  ;;  %v5346_v28 = vunpack.i.h.bf16 %v6684_v37 }
 0x17c   : > { %v1034_v21 = vunpack.c.l.bf16 %v1007_v30  ;;  %v1033_v8 = vunpack.c.l.bf16 %v1006_v35  ;;  %v5455_v30 = vunpack.i.l.bf16 %v6942_v12  ;;  %v1625_v6 = vadd.f32 %v5345_v48, %v1570_v2 }
 0x17d   : > { %v6944_v17 = vpop.permute.xlu0 %5443  ;;  %5613 = vrot.lane.b32.xlu1 %v5612_v34, %s6309_s11  ;;  %v2597_v23 = vadd.f32 %v5430_v29, %v2453_v60  ;;  %v2454_v15 = vunpack.c.l.bf16 %v2418_v25  ;;  %v3094_v47 = vsub.f32 0.0, %v6956_v39  ;;  %v3095_v34 = vsub.f32 0.0, %v6959_v26 }
 0x17e   : > { %v6947_v11 = vadd.f32 %v5440_v20, %v1033_v8  ;;  %v6949_v62 = vadd.f32 %v5441_v50, %v1034_v21  ;;  %v5445_v35 = vunpack.i.l.bf16 %v6944_v17  ;;  %v1571_v20 = vunpack.c.l.bf16 %v1559_v59 }
 0x17f   : > { %v5351_v33 = vunpack.i.h.bf16 %v6770_v1  ;;  %v9843_v21 = vrot.slane %v6457_v40, 2  ;;  %v9844_v8 = vrot.slane %v6875_v9, 2  ;;  %v2697_v27 = vrot.slane %v2695_v5, 5 }
 0x180   : > { %9840 = vst [vmem:[#allocation55_spill] sm:$0xff] %v6949_v62  ;;  %v963_v50 = vadd.f32 %v5445_v35, %v6543_v18  ;;  %v2700_v37 = vrot.slane %v2698_v53, 6  ;;  %v2598_v48 = vadd.f32 %v5455_v30, %v2454_v15  ;;  %v9845_v25 = vrot.slane %v6764_v58, 2 }
 0x181   : > { %v1575_v54 = vsel %vm1042_vm3, %v9844_v8, %v9843_v21  ;;  %v1626_v2 = vadd.f32 %v5346_v28, %v1571_v20  ;;  %v1637_v60 = vpack.c.bf16 %v1625_v6, %v1625_v6  ;;  %v3121_v18 = vmul.f32 1.442695, %v3094_v47 }
 0x182   : > { %v5617_v29 = vpack.i.bf16 %v1575_v54, %v9845_v25  ;;  %v990_v35 = vpack.c.bf16 %v963_v50, %v963_v50  ;;  %v2633_v62 = vpack.c.bf16 %v2597_v23, %v2597_v23  ;;  %v3123_v5 = vmul.f32 1.442695, %v3095_v34 }
 0x183   : > { %v5350_v53 = vunpack.i.l.bf16 %v6770_v1  ;;  %v974_v6 = vadd.f32 %v5351_v33, %v6475_v57  ;;  %v2701_v15 = vor.u32 %v2700_v37, %v2697_v27  ;;  %v2634_v50 = vpack.c.bf16 %v2598_v48, %v2598_v48 }
 0x184   : > { %v1017_v30 = vunpack.c.l.bf16 %v990_v35  ;;  %5767 = vpow2.f32 %v3121_v18  ;;  %v1638_v20 = vpack.c.bf16 %v1626_v2, %v1626_v2  ;;  %v1957_v21 = vshrl.u32 %v1637_v60, 16 }
 0x185   : > { %v6979_v9 = vpop.permute.xlu0 %5448  ;;  %5618 = vrot.lane.b32.xlu1 %v5617_v29, %s6310_s12  ;;  %v2693_v8 = vrot.slane %v6925_v32, 4  ;;  %v2704_v54 = vshrl.u32 %v2633_v62, 16  ;;  %v2707_v34 = vshll.u32 %v2633_v62, 16  ;;  %5769 = vpow2.f32 %v3123_v5 }
 0x186   : > { %v5450_v28 = vunpack.i.l.bf16 %v6979_v9  ;;  %v1960_v1 = vshll.u32 %v1637_v60, 16  ;;  %v5335_v25 = vunpack.i.l.bf16 %v6735_v3  ;;  %v973_v29 = vadd.f32 %v5350_v53, %v6482_v0 }
 0x187   : > { %v6985_v47 = vpop.permute.xlu1 %5458  ;;  %v1001_v33 = vpack.c.bf16 %v974_v6, %v974_v6  ;;  %v2713_v27 = vshrl.u32 %v2634_v50, 16  ;;  %v2716_v37 = vshll.u32 %v2634_v50, 16  ;;  %v6994_v18 = vsel %vm6921_vm6, %v2693_v8, %v2701_v15 }
 0x188   : > { %v6987_v23 = vadd.f32 %v5450_v28, %v1017_v30  ;;  %v1967_v2 = vshrl.u32 %v1638_v20, 16  ;;  %v1970_v32 = vshll.u32 %v1638_v20, 16  ;;  %v1959_v35 = vrot.slane %v1957_v21, 5 }
 0x189   : > { %v5386_v3 = vunpack.i.h.bf16 %v6757_v31  ;;  %v2706_v5 = vrot.slane %v2704_v54, 5  ;;  %v2709_v53 = vrot.slane %v2707_v34, 6  ;;  %v1962_v30 = vrot.slane %v1960_v1, 6 }
 0x18a   : > { %v5768_v60 = vpop.eup %5767  ;;  %v1548_v28 = vadd.f32 %v5335_v25, %v6465_v52  ;;  %v1000_v6 = vpack.c.bf16 %v973_v29, %v973_v29  ;;  %v5385_v15 = vunpack.i.l.bf16 %v6757_v31  ;;  %v1028_v20 = vunpack.c.l.bf16 %v1001_v33 }
 0x18b   : > { %v5770_v50 = vpop.eup %5769  ;;  %v2715_v8 = vrot.slane %v2713_v27, 5  ;;  %v2718_v48 = vrot.slane %v2716_v37, 6  ;;  %v3175_v59 = vadd.f32 1.0, %v5768_v60  ;;  %v1969_v21 = vrot.slane %v1967_v2, 5 }
 0x18c   : > { %v1972_v62 = vrot.slane %v1970_v32, 6  ;;  %v3176_v54 = vadd.f32 1.0, %v5770_v50  ;;  %v1541_v1 = vadd.f32 %v5386_v3, %v6539_v14  ;;  %v2710_v25 = vor.u32 %v2709_v53, %v2706_v5  ;;  %v5489_v32 = vpop.permute.xlu2 %5488 }
 0x18d   : > { %5623 = vrot.lane.b32.xlu1 %v6797_v38, %s6309_s11  ;;  %v5356_v38 = vunpack.i.h.bf16 %v6714_v63  ;;  %5771 = vrcp.f32 %v3175_v59  ;;  %v7011_v31 = vor.u32 %v1962_v30, %v1959_v35  ;;  %v1560_v29 = vpack.c.bf16 %v1548_v28, %v1548_v28 }
 0x18e   : > { %v1540_v33 = vadd.f32 %v5385_v15, %v6512_v36  ;;  %5773 = vrcp.f32 %v3176_v54  ;;  %v1027_v37 = vunpack.c.l.bf16 %v1000_v6  ;;  %v7014_v2 = vor.u32 %v2718_v48, %v2715_v8 }
 0x18f   : > { %v7005_v40 = vpop.permute.xlu1 %5463  ;;  %9846 = vst [vmem:[#allocation58_spill] sm:$0xff] %v7011_v31  ;;  %v1200_v27 = vadd.f32 %v5356_v38, %v1028_v20  ;;  %v5355_v50 = vunpack.i.l.bf16 %v6714_v63  ;;  %v5376_v3 = vunpack.i.h.bf16 %v6814_v51  ;;  %v7024_v5 = vor.u32 %v1972_v62, %v1969_v21 }
 0x190   : > { %v1553_v53 = vpack.c.bf16 %v1541_v1, %v1541_v1  ;;  %v5375_v48 = vunpack.i.l.bf16 %v6814_v51  ;;  %v2711_v30 = vrot.slane %v2710_v25, 4  ;;  %v9848_v28 = vpack.i.bf16 %v6485_v4, %v6482_v0 }
 0x191   : > { %9847 = vst [vmem:[#allocation59_spill] sm:$0xff] %v7024_v5  ;;  %v1572_v6 = vunpack.c.l.bf16 %v1560_v29  ;;  %v1552_v15 = vpack.c.bf16 %v1540_v33, %v1540_v33  ;;  %v5491_v20 = vunpack.i.h.bf16 %v5489_v32  ;;  %v7032_v54 = vpack.c.bf16 %v1200_v27, %v1200_v27 }
 0x192   : > { %v1199_v38 = vadd.f32 %v5355_v50, %v1027_v37  ;;  %v5490_v62 = vunpack.i.l.bf16 %v5489_v32  ;;  %v2720_v51 = vsel %vm6921_vm6, %v2711_v30, %v7014_v2  ;;  %v5391_v25 = vunpack.i.h.bf16 %v6785_v43  ;;  %v5474_v32 = vpop.permute.xlu0 %5473 }
 0x193   : > { %v5772_v8 = vpop.eup %5771  ;;  %9849 = vst [vmem:[#allocation60_spill] sm:$0xff] %v7032_v54  ;;  %v976_v63 = vadd.f32 %v5376_v3, %v6514_v45  ;;  %v1565_v33 = vunpack.c.l.bf16 %v1553_v53  ;;  %v975_v27 = vadd.f32 %v5375_v48, %v6485_v4  ;;  %v3036_v50 = vunpack.c.l.bf16 %v6994_v18 }
 0x194   : > { %v5774_v1 = vpop.eup %5773  ;;  %v3229_v29 = vmul.f32 %v5772_v8, %v6956_v39  ;;  %v1564_v35 = vunpack.c.l.bf16 %v1552_v15  ;;  %v984_v30 = vadd.f32 %v5491_v20, %v6662_v61  ;;  %v3037_v60 = vunpack.c.l.bf16 %v2720_v51 }
 0x195   : > { %5633 = vrot.lane.b32.xlu1 %v9848_v28, %s6309_s11  ;;  %v5390_v28 = vunpack.i.l.bf16 %v6785_v43  ;;  %v3230_v37 = vmul.f32 %v5774_v1, %v6959_v26  ;;  %v5365_v34 = vunpack.i.l.bf16 %v6799_v16  ;;  %v9850_v43 = vld [vmem:[#allocation28_spill] sm:$0xff]  ;;  %v1620_v53 = vadd.f32 %v5391_v25, %v1565_v33  ;;  %v9852_v25 = vld [vmem:[#allocation27_spill] sm:$0xff] }
 0x196   : > { %v3256_v59 = vpack.c.bf16 %v3229_v29, %v3229_v29  ;;  %v983_v57 = vadd.f32 %v5490_v62, %v9850_v43  ;;  %v1003_v8 = vpack.c.bf16 %v976_v63, %v976_v63  ;;  %v1002_v4 = vpack.c.bf16 %v975_v27, %v975_v27 }
 0x197   : > { %v5469_v21 = vpop.permute.xlu1 %5468  ;;  %v3257_v3 = vpack.c.bf16 %v3230_v37, %v3230_v37  ;;  %v1619_v39 = vadd.f32 %v5390_v28, %v1564_v35  ;;  %v7048_v18 = vadd.f32 %v6709_v24, %v3036_v50  ;;  %v1767_v15 = vshrl.u32 %v7032_v54, 16  ;;  %v9853_v50 = vld [vmem:[#allocation47_spill] sm:$0xff] }
 0x198   : > { %v5471_v31 = vunpack.i.h.bf16 %v5469_v21  ;;  %v5470_v48 = vunpack.i.l.bf16 %v5469_v21  ;;  %v4027_v26 = vunpack.c.l.b16 %v3256_v59  ;;  %v7051_v20 = vpack.c.bf16 %v1199_v38, %v1199_v38 }
 0x199   : > { %v4028_v1 = vunpack.c.l.b16 %v3257_v3  ;;  %v1011_v51 = vpack.c.bf16 %v984_v30, %v984_v30  ;;  %v7054_v16 = vadd.f32 %v6709_v24, %v3037_v60  ;;  %v1627_v62 = vadd.f32 %v5365_v34, %v1572_v6  ;;  %v9882_v24 = vld [vmem:[#allocation51_spill] sm:$0xff] }
 0x19a   : > { %9851 = vst [vmem:[#allocation61_spill] sm:$0xff] %v7051_v20  ;;  %v1010_v29 = vpack.c.bf16 %v983_v57, %v983_v57  ;;  %v982_v63 = vadd.f32 %v5471_v31, %v9852_v25  ;;  %v1631_v21 = vpack.c.bf16 %v1619_v39, %v1619_v39  ;;  %v7057_v28 = vpack.c.bf16 %v1620_v53, %v1620_v53 }
 0x19b   : > { %v4054_v35 = vpack.c.b16 %v4028_v1, %v4027_v26  ;;  %v1030_v59 = vunpack.c.l.bf16 %v1003_v8  ;;  %v981_v33 = vadd.f32 %v5470_v48, %v6582_v55  ;;  %v1029_v37 = vunpack.c.l.bf16 %v1002_v4 }
 0x19c   : > { %v5381_v38 = vunpack.i.h.bf16 %v9853_v50  ;;  %v1009_v30 = vpack.c.bf16 %v982_v63, %v982_v63  ;;  %v5479_v60 = vpop.permute.xlu0 %5478  ;;  %v3096_v34 = vsub.f32 0.0, %v7048_v18  ;;  %v5380_v57 = vunpack.i.l.bf16 %v9853_v50 }
 0x19d   : > { %4068 = vrot.lane.b32.xlu0 %v4054_v35, %s6309_s11  ;;  %v1038_v6 = vunpack.c.l.bf16 %v1011_v51  ;;  %v1008_v31 = vpack.c.bf16 %v981_v33, %v981_v33  ;;  %v3097_v3 = vsub.f32 0.0, %v7054_v16  ;;  %v1037_v39 = vunpack.c.l.bf16 %v1010_v29 }
 0x19e   : > { %v5476_v53 = vunpack.i.h.bf16 %v5474_v32  ;;  %v1036_v8 = vunpack.c.l.bf16 %v1009_v30  ;;  %v5475_v26 = vunpack.i.l.bf16 %v5474_v32  ;;  %v5481_v1 = vunpack.i.h.bf16 %v5479_v60 }
 0x19f   : > { %v5494_v27 = vpop.permute.xlu1 %5493  ;;  %v1035_v4 = vunpack.c.l.bf16 %v1008_v31  ;;  %v5480_v35 = vunpack.i.l.bf16 %v5479_v60  ;;  %v3125_v41 = vmul.f32 1.442695, %v3096_v34  ;;  %v1202_v13 = vadd.f32 %v5381_v38, %v1030_v59  ;;  %v7077_v38 = vpop.permute.xlu2 %5503 }
 0x1a0   : > { %v5496_v48 = vunpack.i.h.bf16 %v5494_v27  ;;  %v5495_v0 = vunpack.i.l.bf16 %v5494_v27  ;;  %v7065_v52 = vadd.f32 %v5476_v53, %v1036_v8  ;;  %v3127_v33 = vmul.f32 1.442695, %v3097_v3  ;;  %v9855_v3 = vld [vmem:[#allocation26_spill] sm:$0xff] }
 0x1a1   : > { %v7069_v50 = vadd.f32 %v5475_v26, %v1035_v4  ;;  %v1770_v30 = vshll.u32 %v7032_v54, 16  ;;  %v1639_v32 = vpack.c.bf16 %v1627_v62, %v1627_v62  ;;  %5775 = vpow2.f32 %v3125_v41  ;;  %v5279_v4 = vld [vmem:[%s6387_s7 + $0xd8] sm:$0xff] }
 0x1a2   : > { %v7067_v63 = vadd.f32 %v5496_v48, %v1038_v6  ;;  %v7071_v51 = vadd.f32 %v5495_v0, %v1037_v39  ;;  %v1758_v27 = vshrl.u32 %v7051_v20, 16  ;;  %v1761_v31 = vshll.u32 %v7051_v20, 16  ;;  %v9854_v0 = vld [vmem:[#allocation30_spill] sm:$0xff]  ;;  %5220 = vmatmul.msk.bf16.gmra.mxu3 %vm450_vm1, %v5279_v4 }
 0x1a3   : > { %v1201_v60 = vadd.f32 %v5380_v57, %v1029_v37  ;;  %5777 = vpow2.f32 %v3127_v33  ;;  %v1787_v34 = vshrl.u32 %v1631_v21, 16  ;;  %v1790_v59 = vshll.u32 %v1631_v21, 16  ;;  %v9858_v37 = vld [vmem:[#allocation45_spill] sm:$0xff] }
 0x1a4   : > { %v1543_v6 = vadd.f32 %v5481_v1, %v9854_v0  ;;  %v1542_v39 = vadd.f32 %v5480_v35, %v9855_v3  ;;  %v7081_v53 = vrot.slane %v1767_v15, 5  ;;  %v1825_v62 = vshrl.u32 %v7057_v28, 16 }
 0x1a5   : > { %v1828_v41 = vshll.u32 %v7057_v28, 16  ;;  %v7085_v8 = vpack.c.bf16 %v1202_v13, %v1202_v13  ;;  %v1977_v48 = vshrl.u32 %v1639_v32, 16  ;;  %v1980_v26 = vshll.u32 %v1639_v32, 16 }
 0x1a6   : > { %9856 = vst [vmem:[#allocation47_spill] sm:$0xff] %v7081_v53  ;;  %v5406_v57 = vunpack.i.h.bf16 %v9858_v37  ;;  %v5405_v21 = vunpack.i.l.bf16 %v9858_v37  ;;  %v7090_v33 = vrot.slane %v1770_v30, 6  ;;  %v7092_v1 = vrot.slane %v1758_v27, 5 }
 0x1a7   : > { %9857 = vst [vmem:[#allocation26_spill] sm:$0xff] %v7085_v8  ;;  %v7094_v35 = vrot.slane %v1761_v31, 6  ;;  %v7096_v15 = vpack.c.bf16 %v1201_v60, %v1201_v60  ;;  %v5776_v29 = vpop.eup %5775  ;;  %v7098_v5 = vrot.slane %v1787_v34, 5  ;;  %v7100_v13 = vrot.slane %v1790_v59, 6  ;;  %v5484_v60 = vpop.permute.xlu0 %5483 }
 0x1a8   : > { %9859 = vst [vmem:[#allocation45_spill] sm:$0xff] %v7090_v33  ;;  %v1555_v28 = vpack.c.bf16 %v1543_v6, %v1543_v6  ;;  %v1554_v32 = vpack.c.bf16 %v1542_v39, %v1542_v39  ;;  %v7103_v37 = vrot.slane %v1825_v62, 5  ;;  %v7105_v30 = vrot.slane %v1828_v41, 6  ;;  %v7117_v44 = vpop.permute.xlu2 %5523 }
 0x1a9   : > { %9860 = vst [vmem:[#allocation62_spill] sm:$0xff] %v7092_v1  ;;  %v5778_v54 = vpop.eup %5777  ;;  %v1796_v27 = vshrl.u32 %v7085_v8, 16  ;;  %v1799_v31 = vshll.u32 %v7085_v8, 16  ;;  %v7109_v20 = vrot.slane %v1977_v48, 5  ;;  %v7111_v34 = vrot.slane %v1980_v26, 6  ;;  %v5499_v48 = vpop.permute.xlu1 %5498  ;;  %v9879_v1 = vld [vmem:[#allocation35_spill] sm:$0xff] }
 0x1aa   : > { %9861 = vst [vmem:[#allocation63_spill] sm:$0xff] %v7094_v35  ;;  %v978_v59 = vadd.f32 %v5406_v57, %v6546_v22  ;;  %v977_v6 = vadd.f32 %v5405_v21, %v6516_v46  ;;  %v1777_v39 = vshrl.u32 %v7096_v15, 16  ;;  %v5396_v62 = vunpack.i.h.bf16 %v6850_v42 }
 0x1ab   : > { %9862 = vst [vmem:[#allocation64_spill] sm:$0xff] %v7096_v15  ;;  %v3177_v4 = vadd.f32 1.0, %v5776_v29  ;;  %v3178_v41 = vadd.f32 1.0, %v5778_v54  ;;  %v1567_v10 = vunpack.c.l.bf16 %v1555_v28  ;;  %v1566_v49 = vunpack.c.l.bf16 %v1554_v32  ;;  %v9869_v32 = vld [vmem:[#allocation8_spill] sm:$0xff]  ;;  %v9870_v54 = vld [vmem:[#allocation19_spill] sm:$0xff] }
 0x1ac   : > { %9863 = vst [vmem:[#allocation65_spill] sm:$0xff] %v7098_v5  ;;  %v5486_v33 = vunpack.i.h.bf16 %v5484_v60  ;;  %v5485_v53 = vunpack.i.l.bf16 %v5484_v60  ;;  %v1798_v58 = vrot.slane %v1796_v27, 5  ;;  %v1801_v26 = vrot.slane %v1799_v31, 6  ;;  %v9878_v5 = vld [vmem:[#allocation24_spill] sm:$0xff] }
 0x1ad   : > { %9864 = vst [vmem:[#allocation66_spill] sm:$0xff] %v7100_v13  ;;  %v1780_v7 = vshll.u32 %v7096_v15, 16  ;;  %5779 = vrcp.f32 %v3177_v4  ;;  %v1005_v57 = vpack.c.bf16 %v978_v59, %v978_v59  ;;  %v1004_v21 = vpack.c.bf16 %v977_v6, %v977_v6 }
 0x1ae   : > { %9865 = vst [vmem:[#allocation67_spill] sm:$0xff] %v7103_v37  ;;  %v7120_v36 = vadd.f32 %v5485_v53, %v1566_v49  ;;  %v7122_v45 = vadd.f32 %v5486_v33, %v1567_v10  ;;  %v5446_v29 = vunpack.i.h.bf16 %v6944_v17  ;;  %5781 = vrcp.f32 %v3178_v41  ;;  %v9872_v37 = vld [vmem:[#allocation32_spill] sm:$0xff] }
 0x1af   : > { %9866 = vst [vmem:[#allocation68_spill] sm:$0xff] %v7105_v30  ;;  %v7132_v27 = vadd.f32 %v5396_v62, %v9869_v32  ;;  %v5460_v49 = vunpack.i.l.bf16 %v6985_v47  ;;  %v5501_v53 = vunpack.i.h.bf16 %v5499_v48  ;;  %v1802_v10 = vor.u32 %v1801_v26, %v1798_v58  ;;  %v9871_v32 = vld [vmem:[#allocation33_spill] sm:$0xff]  ;;  %v9873_v58 = vld [vmem:[#allocation48_spill] sm:$0xff] }
 0x1b0   : > { %9867 = vst [vmem:[#allocation69_spill] sm:$0xff] %v7109_v20  ;;  %v1779_v33 = vrot.slane %v1777_v39, 5  ;;  %v1782_v31 = vrot.slane %v1780_v7, 6  ;;  %v5500_v60 = vunpack.i.l.bf16 %v5499_v48  ;;  %v1032_v6 = vunpack.c.l.bf16 %v1005_v57  ;;  %v9874_v48 = vld [vmem:[#allocation23_spill] sm:$0xff] }
 0x1b1   : > { %9868 = vst [vmem:[#allocation70_spill] sm:$0xff] %v7111_v34  ;;  %v1031_v4 = vunpack.c.l.bf16 %v1004_v21  ;;  %v964_v62 = vadd.f32 %v5446_v29, %v9870_v54  ;;  %v968_v42 = vadd.f32 %v5501_v53, %v9871_v32  ;;  %v2419_v7 = vpack.c.bf16 %v7132_v27, %v7132_v27  ;;  %v9877_v53 = vld [vmem:[#allocation50_spill] sm:$0xff]  ;;  %v7154_v27 = vpop.permute.xlu2 %5528  ;;  %v7156_v8 = vpop.permute.xlu1 %5508 }
 0x1b2   : > { %v967_v30 = vadd.f32 %v5500_v60, %v9872_v37  ;;  %v965_v26 = vadd.f32 %v5460_v49, %v9874_v48  ;;  %v7147_v59 = vrot.slane %v1802_v10, 4  ;;  %v7149_v17 = vor.u32 %v1782_v31, %v1779_v33 }
 0x1b3   : > { %v5780_v41 = vpop.eup %5779  ;;  %v5461_v29 = vunpack.i.h.bf16 %v6985_v47  ;;  %v995_v28 = vpack.c.bf16 %v968_v42, %v968_v42  ;;  %v5411_v20 = vunpack.i.h.bf16 %v9877_v53  ;;  %v991_v49 = vpack.c.bf16 %v964_v62, %v964_v62 }
 0x1b4   : > { %v3231_v57 = vmul.f32 %v5780_v41, %v7048_v18  ;;  %v5782_v21 = vpop.eup %5781  ;;  %9875 = vst [vmem:[#allocation8_spill] sm:$0xff] %v7147_v59  ;;  %v994_v39 = vpack.c.bf16 %v967_v30, %v967_v30  ;;  %v5451_v18 = vunpack.i.h.bf16 %v6979_v9  ;;  %v5506_v10 = vunpack.i.h.bf16 %v7077_v38 }
 0x1b5   : > { %9876 = vst [vmem:[#allocation33_spill] sm:$0xff] %v7149_v17  ;;  %v3232_v60 = vmul.f32 %v5782_v21, %v7054_v16  ;;  %v1022_v33 = vunpack.c.l.bf16 %v995_v28  ;;  %v992_v31 = vpack.c.bf16 %v965_v26, %v965_v26  ;;  %v5505_v47 = vunpack.i.l.bf16 %v7077_v38  ;;  %v5519_v15 = vpop.permute.xlu0 %5518  ;;  %v9886_v17 = vld [vmem:[#allocation38_spill] sm:$0xff] }
 0x1b6   : > { %v3258_v34 = vpack.c.bf16 %v3231_v57, %v3231_v57  ;;  %v1021_v41 = vunpack.c.l.bf16 %v994_v39  ;;  %v966_v16 = vadd.f32 %v5461_v29, %v9878_v5  ;;  %v5465_v57 = vunpack.i.l.bf16 %v7005_v40 }
 0x1b7   : > { %v3259_v42 = vpack.c.bf16 %v3232_v60, %v3232_v60  ;;  %v5530_v30 = vunpack.i.l.bf16 %v7154_v27  ;;  %v7164_v21 = vadd.f32 %v5506_v10, %v1022_v33  ;;  %v5510_v28 = vunpack.i.l.bf16 %v7156_v8  ;;  %v9880_v33 = vld [vmem:[#allocation53_spill] sm:$0xff] }
 0x1b8   : > { %v4029_v62 = vunpack.c.l.b16 %v3258_v34  ;;  %v7166_v9 = vadd.f32 %v5505_v47, %v1021_v41  ;;  %v1204_v38 = vadd.f32 %v5411_v20, %v1032_v6  ;;  %v5410_v39 = vunpack.i.l.bf16 %v9877_v53 }
 0x1b9   : > { %v4030_v13 = vunpack.c.l.b16 %v3259_v42  ;;  %v1018_v60 = vunpack.c.l.bf16 %v991_v49  ;;  %v1019_v59 = vunpack.c.l.bf16 %v992_v31  ;;  %v1538_v35 = vadd.f32 %v5510_v28, %v9879_v1  ;;  %v9881_v42 = vld [vmem:[#allocation31_spill] sm:$0xff] }
 0x1ba   : > { %v5521_v5 = vunpack.i.h.bf16 %v5519_v15  ;;  %v5416_v34 = vunpack.i.h.bf16 %v9880_v33  ;;  %v5415_v47 = vunpack.i.l.bf16 %v9880_v33  ;;  %v969_v41 = vadd.f32 %v5530_v30, %v9881_v42  ;;  %v9884_v33 = vld [vmem:[#allocation37_spill] sm:$0xff] }
 0x1bb   : > { %v4055_v29 = vpack.c.b16 %v4030_v13, %v4029_v62  ;;  %v5426_v48 = vunpack.i.h.bf16 %v9882_v24  ;;  %v1190_v26 = vadd.f32 %v5451_v18, %v1018_v60  ;;  %v993_v20 = vpack.c.bf16 %v966_v16, %v966_v16  ;;  %v7186_v18 = vpop.permute.xlu1 %5513 }
 0x1bc   : > { %v1191_v6 = vadd.f32 %v5465_v57, %v1019_v59  ;;  %v7178_v53 = vpack.c.bf16 %v1204_v38, %v1204_v38  ;;  %v5425_v13 = vunpack.i.l.bf16 %v9882_v24  ;;  %v5456_v49 = vunpack.i.h.bf16 %v6942_v12  ;;  %v9885_v59 = vld [vmem:[#allocation15_spill] sm:$0xff] }
 0x1bd   : > { %4070 = vrot.lane.b32.xlu1 %v4055_v29, %s6309_s11  ;;  %v1550_v31 = vpack.c.bf16 %v1538_v35, %v1538_v35  ;;  %v1203_v62 = vadd.f32 %v5410_v39, %v1031_v4  ;;  %v1216_v28 = vpack.c.bf16 %v6987_v23, %v6987_v23  ;;  %v5466_v30 = vunpack.i.h.bf16 %v7005_v40  ;;  %v7191_v4 = vpop.permute.xlu0 %5538 }
 0x1be   : > { %9883 = vst [vmem:[#allocation32_spill] sm:$0xff] %v7178_v53  ;;  %v986_v10 = vadd.f32 %v5521_v5, %v9884_v33  ;;  %v7189_v16 = vadd.f32 %v5416_v34, %v9885_v59  ;;  %v2455_v57 = vunpack.c.l.bf16 %v2419_v7  ;;  %v996_v38 = vpack.c.bf16 %v969_v41, %v969_v41 }
 0x1bf   : > { %v5520_v60 = vunpack.i.l.bf16 %v5519_v15  ;;  %v1217_v24 = vpack.c.bf16 %v1190_v26, %v1190_v26  ;;  %v1020_v29 = vunpack.c.l.bf16 %v993_v20  ;;  %v1218_v12 = vpack.c.bf16 %v1191_v6, %v1191_v6 }
 0x1c0   : > { %v1013_v35 = vpack.c.bf16 %v986_v10, %v986_v10  ;;  %v2599_v39 = vadd.f32 %v5456_v49, %v2455_v57  ;;  %v1562_v23 = vunpack.c.l.bf16 %v1550_v31  ;;  %v5515_v5 = vunpack.i.l.bf16 %v7186_v18 }
 0x1c1   : > { %v985_v40 = vadd.f32 %v5520_v60, %v9886_v17  ;;  %v1243_v33 = vunpack.c.l.bf16 %v1216_v28  ;;  %v1192_v1 = vadd.f32 %v5466_v30, %v1020_v29  ;;  %v5526_v34 = vunpack.i.h.bf16 %v7117_v44  ;;  %v9891_v60 = vld [vmem:[#allocation13_spill] sm:$0xff] }
 0x1c2   : > { %v1040_v59 = vunpack.c.l.bf16 %v1013_v35  ;;  %v1023_v7 = vunpack.c.l.bf16 %v996_v38  ;;  %v7196_v15 = vadd.f32 %v5515_v5, %v1562_v23  ;;  %v5540_v26 = vunpack.i.l.bf16 %v7191_v4 }
 0x1c3   : > { %v1012_v41 = vpack.c.bf16 %v985_v40, %v985_v40  ;;  %v1644_v10 = vshrl.u32 %v1217_v24, 16  ;;  %v1653_v20 = vshrl.u32 %v1218_v12, 16  ;;  %v1656_v6 = vshll.u32 %v1218_v12, 16 }
 0x1c4   : > { %9887 = vst [vmem:[#allocation48_spill] sm:$0xff] %v7196_v15  ;;  %v9888_v49 = vpack.i.bf16 %v6580_v19, %v6539_v14  ;;  %v7203_v31 = vadd.f32 %v5526_v34, %v1040_v59  ;;  %v1647_v28 = vshll.u32 %v1217_v24, 16  ;;  %v5525_v30 = vunpack.i.l.bf16 %v7117_v44  ;;  %v7220_v44 = vld [vmem:[%s9560_s3] ss:$0 sm:$0xff] }
 0x1c5   : > { %v1039_v57 = vunpack.c.l.bf16 %v1012_v41  ;;  %v7206_v38 = vadd.f32 %v5540_v26, %v1023_v7  ;;  %v961_v29 = vadd.f32 %v5415_v47, %v9891_v60  ;;  %v7210_v35 = vadd.f32 %v5426_v48, %v9891_v60 }
 0x1c6   : > { %5653 = vrot.lane.b32.xlu1 %v9888_v49, %s6310_s12  ;;  %9889 = vst [vmem:[#allocation50_spill] sm:$0xff] %v7203_v31  ;;  %v1244_v23 = vunpack.c.l.bf16 %v1217_v24  ;;  %v1219_v40 = vpack.c.bf16 %v1192_v1, %v1192_v1  ;;  %v1815_v5 = vshrl.u32 %v7178_v53, 16  ;;  %v1818_v17 = vshll.u32 %v7178_v53, 16  ;;  %v9892_v49 = vld [vmem:[#allocation12_spill] sm:$0xff] }
 0x1c7   : > { %9890 = vst [vmem:[#allocation53_spill] sm:$0xff] %v7206_v38  ;;  %v7215_v59 = vadd.f32 %v5425_v13, %v9892_v49  ;;  %v7222_v34 = vadd.f32 %v5525_v30, %v1039_v57  ;;  %v7224_v47 = vpack.c.bf16 %v1203_v62, %v1203_v62  ;;  %v2635_v48 = vpack.c.bf16 %v2599_v39, %v2599_v39 }
 0x1c8   : > { %v1655_v7 = vrot.slane %v1653_v20, 5  ;;  %v1658_v24 = vrot.slane %v1656_v6, 6  ;;  %v989_v1 = vpack.c.bf16 %v7189_v16, %v7189_v16  ;;  %v7229_v41 = vadd.f32 %v7220_v44, %v1243_v33 }
 0x1c9   : > { %9893 = vst [vmem:[#allocation51_spill] sm:$0xff] %v7222_v34  ;;  %v1646_v13 = vrot.slane %v1644_v10, 5  ;;  %v1649_v26 = vrot.slane %v1647_v28, 6  ;;  %v7232_v60 = vadd.f32 %v7220_v44, %v1244_v23  ;;  %v1245_v49 = vunpack.c.l.bf16 %v1218_v12 }
 0x1ca   : > { %9894 = vst [vmem:[#allocation13_spill] sm:$0xff] %v7224_v47  ;;  %v1663_v31 = vshrl.u32 %v1219_v40, 16  ;;  %v1666_v30 = vshll.u32 %v1219_v40, 16  ;;  %v1817_v57 = vrot.slane %v1815_v5, 5  ;;  %v1820_v62 = vrot.slane %v1818_v17, 6 }
 0x1cb   : > { %9895 = vst [vmem:[#allocation12_spill] sm:$0xff] %v7229_v41  ;;  %v988_v34 = vpack.c.bf16 %v961_v29, %v961_v29  ;;  %v2421_v39 = vpack.c.bf16 %v7210_v35, %v7210_v35  ;;  %v1805_v20 = vshrl.u32 %v7224_v47, 16  ;;  %v2723_v16 = vshrl.u32 %v2635_v48, 16  ;;  %v7244_v35 = vpop.permute.xlu2 %5533 }
 0x1cc   : > { %9896 = vst [vmem:[#allocation71_spill] sm:$0xff] %v7232_v60  ;;  %v2726_v6 = vshll.u32 %v2635_v48, 16  ;;  %v1659_v33 = vor.u32 %v1658_v24, %v1655_v7  ;;  %v1299_v28 = vsub.f32 0.0, %v7229_v41  ;;  %v1650_v23 = vor.u32 %v1649_v26, %v1646_v13 }
 0x1cd   : > { %v1246_v12 = vunpack.c.l.bf16 %v1219_v40  ;;  %v1300_v14 = vsub.f32 0.0, %v7232_v60  ;;  %v7242_v17 = vadd.f32 %v7220_v44, %v1245_v49  ;;  %v1665_v29 = vrot.slane %v1663_v31, 5  ;;  %v7251_v60 = vpop.permute.xlu1 %5548  ;;  %v9899_v49 = vld [vmem:[#allocation55_spill] sm:$0xff] }
 0x1ce   : > { %v1668_v5 = vrot.slane %v1666_v30, 6  ;;  %v1808_v38 = vshll.u32 %v7224_v47, 16  ;;  %v1016_v48 = vunpack.c.l.bf16 %v989_v1  ;;  %v1015_v7 = vunpack.c.l.bf16 %v988_v34 }
 0x1cf   : > { %9897 = vst [vmem:[#allocation72_spill] sm:$0xff] %v7242_v17  ;;  %v7249_v24 = vpack.c.bf16 %v6947_v11, %v6947_v11  ;;  %v1807_v10 = vrot.slane %v1805_v20, 5  ;;  %v2725_v13 = vrot.slane %v2723_v16, 5  ;;  %v2728_v40 = vrot.slane %v2726_v6, 6 }
 0x1d0   : > { %v1661_v26 = vrot.slane %v1659_v33, 4  ;;  %v7255_v31 = vpack.c.bf16 %v9899_v49, %v9899_v49  ;;  %v1328_v30 = vmul.f32 1.442695, %v1299_v28  ;;  %v1651_v41 = vrot.slane %v1650_v23, 4 }
 0x1d1   : > { %9898 = vst [vmem:[#allocation73_spill] sm:$0xff] %v7249_v24  ;;  %v7258_v42 = vadd.f32 %v7220_v44, %v1246_v12  ;;  %v2721_v34 = vrot.slane %v7014_v2, 4  ;;  %v1330_v1 = vmul.f32 1.442695, %v1300_v14  ;;  %v1301_v11 = vsub.f32 0.0, %v7242_v17  ;;  %v9911_v17 = vld [vmem:[#allocation16_spill] sm:$0xff] }
 0x1d2   : > { %9900 = vst [vmem:[#allocation55_spill] sm:$0xff] %v7255_v31  ;;  %v7262_v20 = vor.u32 %v1668_v5, %v1665_v29  ;;  %v1810_v16 = vrot.slane %v1808_v38, 6  ;;  %v1834_v6 = vshrl.u32 %v7249_v24, 16  ;;  %v1837_v15 = vshll.u32 %v7249_v24, 16 }
 0x1d3   : > { %9901 = vst [vmem:[#allocation74_spill] sm:$0xff] %v7258_v42  ;;  %v1660_v49 = vsel %vm6921_vm6, %v1651_v41, %v1659_v33  ;;  %v9903_v28 = vunpack.i.h.bf16 %v9873_v58  ;;  %v9904_v12 = vunpack.i.l.bf16 %v9873_v58  ;;  %v7272_v2 = vor.u32 %v2728_v40, %v2725_v13  ;;  %v7283_v58 = vld [vmem:[%s9560_s3 + $0x1] ss:$0 sm:$0xff] }
 0x1d4   : > { %9902 = vst [vmem:[#allocation75_spill] sm:$0xff] %v7262_v20  ;;  %v1670_v14 = vsel %vm6921_vm6, %v1661_v26, %v7262_v20  ;;  %v1843_v38 = vshrl.u32 %v7255_v31, 16  ;;  %5783 = vpow2.f32 %v1328_v30  ;;  %v1302_v29 = vsub.f32 0.0, %v7258_v42 }
 0x1d5   : > { %v1188_v23 = vadd.f32 %v9903_v28, %v1016_v48  ;;  %v1187_v54 = vadd.f32 %v9904_v12, %v1015_v7  ;;  %v2012_v5 = vunpack.c.l.bf16 %v1660_v49  ;;  %v1846_v41 = vshll.u32 %v7255_v31, 16 }
 0x1d6   : > { %5785 = vpow2.f32 %v1330_v1  ;;  %v1332_v33 = vmul.f32 1.442695, %v1301_v11  ;;  %v7288_v48 = vsel %vm6921_vm6, %v2721_v34, %v7272_v2  ;;  %v7290_v7 = vor.u32 %v1820_v62, %v1817_v57  ;;  %v7295_v11 = vpop.permute.xlu2 %5553  ;;  %v7303_v62 = vpop.permute.xlu0 %5543 }
 0x1d7   : > { %v1836_v13 = vrot.slane %v1834_v6, 5  ;;  %v1839_v40 = vrot.slane %v1837_v15, 6  ;;  %v2013_v26 = vunpack.c.l.bf16 %v1670_v14  ;;  %v7293_v49 = vor.u32 %v1810_v16, %v1807_v10  ;;  %v7309_v16 = vpop.permute.xlu1 %5563 }
 0x1d8   : > { %v1215_v1 = vpack.c.bf16 %v1188_v23, %v1188_v23  ;;  %v7298_v28 = vadd.f32 %v7283_v58, %v2012_v5  ;;  %v1214_v42 = vpack.c.bf16 %v1187_v54, %v1187_v54  ;;  %v7301_v34 = vunpack.c.l.bf16 %v2421_v39 }
 0x1d9   : > { %v1334_v57 = vmul.f32 1.442695, %v1302_v29  ;;  %v1845_v15 = vrot.slane %v1843_v38, 5  ;;  %v1848_v6 = vrot.slane %v1846_v41, 6  ;;  %5787 = vpow2.f32 %v1332_v33 }
 0x1da   : > { %v7307_v10 = vpack.c.bf16 %v7067_v63, %v7067_v63  ;;  %v5784_v23 = vpop.eup %5783  ;;  %v9905_v54 = vpack.c.bf16 %v7215_v59, %v7215_v59  ;;  %v1840_v29 = vor.u32 %v1839_v40, %v1836_v13  ;;  %v7318_v5 = vadd.f32 %v7283_v58, %v2013_v26 }
 0x1db   : > { %v7321_v33 = vunpack.c.l.bf16 %v1215_v1  ;;  %v7325_v63 = vpack.c.bf16 %v7065_v52, %v7065_v52  ;;  %v2068_v30 = vsub.f32 0.0, %v7298_v28  ;;  %v7328_v12 = vunpack.c.l.bf16 %v1214_v42 }
 0x1dc   : > { %v7315_v39 = vunpack.c.l.bf16 %v9905_v54  ;;  %v5786_v38 = vpop.eup %5785  ;;  %5789 = vpow2.f32 %v1334_v57  ;;  %v2069_v13 = vsub.f32 0.0, %v7318_v5  ;;  %v7332_v40 = vor.u32 %v1848_v6, %v1845_v15 }
 0x1dd   : > { %9906 = vst [vmem:[#allocation76_spill] sm:$0xff] %v7325_v63  ;;  %v1264_v26 = vunpack.c.l.bf16 %v7307_v10  ;;  %v1236_v1 = vpack.c.bf16 %v7071_v51, %v7071_v51  ;;  %v2095_v54 = vmul.f32 1.442695, %v2068_v30  ;;  %v7337_v14 = vrot.slane %v1840_v29, 4 }
 0x1de   : > { %9907 = vst [vmem:[#allocation77_spill] sm:$0xff] %v7332_v40  ;;  %v1380_v52 = vadd.f32 1.0, %v5784_v23  ;;  %v1381_v41 = vadd.f32 1.0, %v5786_v38  ;;  %v2097_v53 = vmul.f32 1.442695, %v2069_v13  ;;  %v1872_v47 = vshrl.u32 %v7325_v63, 16  ;;  %v7342_v6 = vpop.permute.xlu0 %5558 }
 0x1df   : > { %9908 = vst [vmem:[#allocation78_spill] sm:$0xff] %v7337_v14  ;;  %v5788_v42 = vpop.eup %5787  ;;  %v1875_v57 = vshll.u32 %v7325_v63, 16  ;;  %5791 = vpow2.f32 %v2095_v54  ;;  %v5546_v15 = vunpack.i.h.bf16 %v7303_v62  ;;  %v7351_v29 = vadd.f32 %v7220_v44, %v1264_v26  ;;  %v7353_v54 = vpop.permute.xlu2 %5568 }
 0x1e0   : > { %5793 = vpow2.f32 %v2097_v53  ;;  %v1881_v38 = vshrl.u32 %v1236_v1, 16  ;;  %v1884_v13 = vshll.u32 %v1236_v1, 16  ;;  %v1382_v63 = vadd.f32 1.0, %v5788_v42  ;;  %v7364_v24 = vpop.permute.xlu1 %3617 }
 0x1e1   : > { %9909 = vst [vmem:[#allocation79_spill] sm:$0xff] %v7351_v29  ;;  %5795 = vrcp.f32 %v1380_v52  ;;  %v7359_v51 = vpack.c.bf16 %v7069_v50, %v7069_v50  ;;  %v1874_v26 = vrot.slane %v1872_v47, 5  ;;  %v1877_v30 = vrot.slane %v1875_v57, 6 }
 0x1e2   : > { %v5790_v59 = vpop.eup %5789  ;;  %5797 = vrcp.f32 %v1381_v41  ;;  %v2387_v31 = vadd.f32 %v5546_v15, %v9911_v17  ;;  %9912 = vst [vmem:[#allocation16_spill] sm:$0xff] %v7364_v24  ;;  %v1891_v53 = vshrl.u32 %v7307_v10, 16  ;;  %v1894_v52 = vshll.u32 %v7307_v10, 16 }
 0x1e3   : > { %9910 = vst [vmem:[#allocation80_spill] sm:$0xff] %v7359_v51  ;;  %v1263_v42 = vunpack.c.l.bf16 %v1236_v1  ;;  %v1383_v50 = vadd.f32 1.0, %v5790_v59  ;;  %v1320_v19 = vsub.f32 0.0, %v7351_v29  ;;  %v1883_v25 = vrot.slane %v1881_v38, 5 }
 0x1e4   : > { %v1886_v23 = vrot.slane %v1884_v13, 6  ;;  %5799 = vrcp.f32 %v1382_v63  ;;  %v1853_v47 = vshrl.u32 %v7359_v51, 16  ;;  %v5531_v17 = vunpack.i.h.bf16 %v7154_v27 }
 0x1e5   : > { %v5792_v40 = vpop.eup %5791  ;;  %v1878_v15 = vor.u32 %v1877_v30, %v1874_v26  ;;  %v5511_v14 = vunpack.i.h.bf16 %v7156_v8  ;;  %v2423_v20 = vpack.c.bf16 %v2387_v31, %v2387_v31  ;;  %v1893_v1 = vrot.slane %v1891_v53, 5  ;;  %v9918_v30 = vld [vmem:[#allocation41_spill] sm:$0xff] }
 0x1e6   : > { %v5794_v41 = vpop.eup %5793  ;;  %v2149_v57 = vadd.f32 1.0, %v5792_v40  ;;  %v1896_v59 = vrot.slane %v1894_v52, 6  ;;  %v7376_v29 = vadd.f32 %v7220_v44, %v1263_v42  ;;  %v7378_v38 = vpop.permute.xlu0 %5573  ;;  %v1370_v13 = vmul.f32 1.442695, %v1320_v19  ;;  %v9920_v52 = vld [vmem:[#allocation36_spill] sm:$0xff] }
 0x1e7   : > { %v2150_v46 = vadd.f32 1.0, %v5794_v41  ;;  %v7373_v10 = vpop.eup %5795  ;;  %v7382_v27 = vor.u32 %v1886_v23, %v1883_v25  ;;  %v5536_v40 = vunpack.i.h.bf16 %v7244_v35  ;;  %v7388_v31 = vpack.c.bf16 %v7120_v36, %v7120_v36  ;;  %v5579_v19 = vpop.permute.xlu2 %5578 }
 0x1e8   : > { %9913 = vst [vmem:[#allocation81_spill] sm:$0xff] %v7373_v10  ;;  %5801 = vrcp.f32 %v2149_v57  ;;  %v7380_v63 = vpop.eup %5797  ;;  %v970_v53 = vadd.f32 %v5531_v17, %v9918_v30  ;;  %v7391_v26 = vrot.slane %v1853_v47, 5  ;;  %v1539_v42 = vadd.f32 %v5511_v14, %v9920_v52  ;;  %v9925_v14 = vld [vmem:[#allocation43_spill] sm:$0xff]  ;;  %v7410_v8 = vpop.permute.xlu1 %5588 }
 0x1e9   : > { %9914 = vst [vmem:[#allocation82_spill] sm:$0xff] %v7376_v29  ;;  %5803 = vrcp.f32 %v2150_v46  ;;  %v2459_v41 = vunpack.c.l.bf16 %v2423_v20  ;;  %v5575_v25 = vunpack.i.l.bf16 %v7378_v38  ;;  %v7397_v46 = vrot.slane %v1878_v15, 4 }
 0x1ea   : > { %9915 = vst [vmem:[#allocation83_spill] sm:$0xff] %v7380_v63  ;;  %5805 = vrcp.f32 %v1383_v50  ;;  %v7395_v23 = vpop.eup %5799  ;;  %v7399_v50 = vor.u32 %v1896_v59, %v1893_v1  ;;  %v7404_v36 = vpack.c.bf16 %v7122_v45, %v7122_v45  ;;  %v972_v20 = vadd.f32 %v5536_v40, %v9925_v14 }
 0x1eb   : > { %9916 = vst [vmem:[#allocation84_spill] sm:$0xff] %v7382_v27  ;;  %5807 = vpow2.f32 %v1370_v13  ;;  %v7408_v17 = vadd.f32 %v5575_v25, %v2459_v41  ;;  %v997_v59 = vpack.c.bf16 %v970_v53, %v970_v53  ;;  %v5581_v57 = vunpack.i.h.bf16 %v5579_v19 }
 0x1ec   : > { %9917 = vst [vmem:[#allocation85_spill] sm:$0xff] %v7388_v31  ;;  %v7416_v45 = vpack.c.bf16 %v7164_v21, %v7164_v21  ;;  %v5535_v13 = vunpack.i.l.bf16 %v7244_v35  ;;  %v1551_v47 = vpack.c.bf16 %v1539_v42, %v1539_v42  ;;  %v7425_v15 = vpack.c.bf16 %v7166_v9, %v7166_v9 }
 0x1ed   : > { %9919 = vst [vmem:[#allocation86_spill] sm:$0xff] %v7391_v26  ;;  %v5580_v1 = vunpack.i.l.bf16 %v5579_v19  ;;  %v999_v21 = vpack.c.bf16 %v972_v20, %v972_v20  ;;  %v5516_v10 = vunpack.i.h.bf16 %v7186_v18  ;;  %v1024_v42 = vunpack.c.l.bf16 %v997_v59 }
 0x1ee   : > { %9921 = vst [vmem:[#allocation87_spill] sm:$0xff] %v7395_v23  ;;  %v5802_v23 = vpop.eup %5801  ;;  %v1691_v9 = vshrl.u32 %v7416_v45, 16  ;;  %v1694_v31 = vshll.u32 %v7416_v45, 16  ;;  %v1563_v19 = vunpack.c.l.bf16 %v1551_v47  ;;  %v1682_v20 = vshrl.u32 %v7425_v15, 16 }
 0x1ef   : > { %9922 = vst [vmem:[#allocation88_spill] sm:$0xff] %v7397_v46  ;;  %v5804_v63 = vpop.eup %5803  ;;  %v2203_v40 = vmul.f32 %v5802_v23, %v7298_v28  ;;  %v5550_v28 = vunpack.i.l.bf16 %v7251_v60  ;;  %v2393_v59 = vadd.f32 %v5580_v1, %v9872_v37  ;;  %v5555_v37 = vunpack.i.l.bf16 %v7295_v11 }
 0x1f0   : > { %9923 = vst [vmem:[#allocation89_spill] sm:$0xff] %v7399_v50  ;;  %v7420_v41 = vpop.eup %5805  ;;  %v2204_v53 = vmul.f32 %v5804_v63, %v7318_v5  ;;  %v9930_v5 = vld [vmem:[#allocation40_spill] sm:$0xff]  ;;  %v5541_v1 = vunpack.i.h.bf16 %v7191_v4  ;;  %v5594_v51 = vpop.permute.xlu1 %5593  ;;  %v1693_v50 = vrot.slane %v1691_v9, 5  ;;  %v1684_v46 = vrot.slane %v1682_v20, 5  ;;  %v9935_v20 = vld [vmem:[#allocation31_spill] sm:$0xff] }
 0x1f1   : > { %9924 = vst [vmem:[#allocation90_spill] sm:$0xff] %v7404_v36  ;;  %v2230_v35 = vpack.c.bf16 %v2203_v40, %v2203_v40  ;;  %v7432_v25 = vpop.eup %5807  ;;  %v971_v63 = vadd.f32 %v5535_v13, %v9930_v5  ;;  %v7439_v40 = vpop.permute.xlu0 %5583  ;;  %v2600_v13 = vadd.f32 %v5550_v28, %v7315_v39  ;;  %v9932_v36 = vld [vmem:[#allocation19_spill] sm:$0xff]  ;;  %v9933_v28 = vld [vmem:[#allocation48_spill] sm:$0xff]  ;;  %v5596_v4 = vunpack.i.h.bf16 %v5594_v51 }
 0x1f2   : > { %9926 = vst [vmem:[#allocation91_spill] sm:$0xff] %v7416_v45  ;;  %v2231_v23 = vpack.c.bf16 %v2204_v53, %v2204_v53  ;;  %v1685_v53 = vshll.u32 %v7425_v15, 16 }
 0x1f3   : > { %9927 = vst [vmem:[#allocation92_spill] sm:$0xff] %v7420_v41  ;;  %v2394_v41 = vadd.f32 %v5581_v57, %v9871_v32  ;;  %v3931_v26 = vunpack.c.l.b16 %v2230_v35  ;;  %v7442_v32 = vunpack.c.l.bf16 %v999_v21  ;;  %v5556_v57 = vunpack.i.h.bf16 %v7295_v11  ;;  %v9934_v35 = vld [vmem:[#allocation23_spill] sm:$0xff] }
 0x1f4   : > { %9928 = vst [vmem:[#allocation93_spill] sm:$0xff] %v7425_v15  ;;  %v3932_v18 = vunpack.c.l.b16 %v2231_v23  ;;  %v998_v23 = vpack.c.bf16 %v971_v63, %v971_v63  ;;  %v1696_v21 = vrot.slane %v1694_v31, 6  ;;  %v1629_v63 = vpack.c.bf16 %v9933_v28, %v9933_v28 }
 0x1f5   : > { %9929 = vst [vmem:[#allocation94_spill] sm:$0xff] %v7432_v25  ;;  %v1618_v25 = vadd.f32 %v5516_v10, %v1563_v19  ;;  %v2430_v29 = vpack.c.bf16 %v2394_v41, %v2394_v41  ;;  %v2429_v10 = vpack.c.bf16 %v2393_v59, %v2393_v59  ;;  %v1687_v19 = vrot.slane %v1685_v53, 6  ;;  %v9936_v59 = vld [vmem:[#allocation53_spill] sm:$0xff] }
 0x1f6   : > { %9931 = vst [vmem:[#allocation40_spill] sm:$0xff] %v7439_v40  ;;  %v3958_v47 = vpack.c.b16 %v3932_v18, %v3931_v26  ;;  %v2389_v39 = vadd.f32 %v5556_v57, %v9932_v36  ;;  %v5586_v41 = vunpack.i.h.bf16 %v7439_v40  ;;  %v2636_v11 = vpack.c.bf16 %v2600_v13, %v2600_v13 }
 0x1f7   : > { %v1630_v26 = vpack.c.bf16 %v1618_v25, %v1618_v25  ;;  %v2466_v18 = vunpack.c.l.bf16 %v2430_v29  ;;  %v2390_v9 = vadd.f32 %v5555_v37, %v9934_v35  ;;  %v1196_v31 = vadd.f32 %v5541_v1, %v1024_v42 }
 0x1f8   : > { %3972 = vrot.lane.b32.xlu2 %v3958_v47, %s6311_s26  ;;  %v2395_v27 = vadd.f32 %v5586_v41, %v9935_v20  ;;  %v3038_v47 = vunpack.c.l.bf16 %v7288_v48  ;;  %v7460_v53 = vpack.c.bf16 %v9936_v59, %v9936_v59  ;;  %v2465_v36 = vunpack.c.l.bf16 %v2429_v10  ;;  %v9938_v20 = vld [vmem:[#allocation34_spill] sm:$0xff] }
 0x1f9   : > { %v5595_v25 = vunpack.i.l.bf16 %v5594_v51  ;;  %v2610_v57 = vadd.f32 %v5596_v4, %v2466_v18  ;;  %v7462_v45 = vor.u32 %v1696_v21, %v1693_v50  ;;  %v1025_v28 = vunpack.c.l.bf16 %v998_v23  ;;  %v7464_v37 = vpop.permute.xlu0 %5603  ;;  %v7476_v21 = vpop.permute.xlu2 %5598 }
 0x1fa   : > { %v1749_v13 = vshrl.u32 %v1630_v26, 16  ;;  %v2431_v29 = vpack.c.bf16 %v2395_v27, %v2395_v27  ;;  %v1711_v15 = vshrl.u32 %v1629_v63, 16  ;;  %v2733_v52 = vshrl.u32 %v2636_v11, 16  ;;  %v9939_v27 = vld [vmem:[#allocation10_spill] sm:$0xff]  ;;  %9941 = vst [vmem:[#allocation48_spill] sm:$0xff] %v7476_v21 }
 0x1fb   : > { %9937 = vst [vmem:[#allocation19_spill] sm:$0xff] %v7462_v45  ;;  %v2736_v35 = vshll.u32 %v2636_v11, 16  ;;  %v2609_v42 = vadd.f32 %v5595_v25, %v2465_v36  ;;  %v1688_v1 = vor.u32 %v1687_v19, %v1684_v46  ;;  %v1714_v48 = vshll.u32 %v1629_v63, 16 }
 0x1fc   : > { %v1752_v41 = vshll.u32 %v1630_v26, 16  ;;  %v7467_v59 = vadd.f32 %v9938_v20, %v3038_v47  ;;  %v2425_v10 = vpack.c.bf16 %v2389_v39, %v2389_v39  ;;  %v2426_v51 = vpack.c.bf16 %v2390_v9, %v2390_v9  ;;  %v7483_v39 = vpop.permute.xlu1 %5608 }
 0x1fd   : > { %v7469_v18 = vpack.c.bf16 %v1196_v31, %v1196_v31  ;;  %v1249_v50 = vunpack.c.l.bf16 %v7460_v53  ;;  %v9940_v23 = vpack.i.bf16 %v6546_v22, %v9939_v27  ;;  %v2467_v11 = vunpack.c.l.bf16 %v2431_v29  ;;  %9944 = vst [vmem:[#allocation53_spill] sm:$0xff] %v7483_v39 }
 0x1fe   : > { %v7478_v46 = vpack.c.bf16 %v2609_v42, %v2609_v42  ;;  %v7480_v19 = vpack.c.bf16 %v2610_v57, %v2610_v57  ;;  %v5605_v26 = vunpack.i.l.bf16 %v7464_v37  ;;  %v7485_v63 = vrot.slane %v1711_v15, 5 }
 0x1ff   : > { %v7487_v4 = vrot.slane %v1749_v13, 5  ;;  %v2735_v9 = vrot.slane %v2733_v52, 5  ;;  %v2738_v31 = vrot.slane %v2736_v35, 6  ;;  %v7489_v47 = vrot.slane %v1714_v48, 6  ;;  %v9948_v35 = vld [vmem:[#allocation35_spill] sm:$0xff] }
 0x200   : > { %5638 = vrot.lane.b32.xlu2 %v9940_v23, %s6310_s12  ;;  %9942 = vst [vmem:[#allocation23_spill] sm:$0xff] %v7478_v46  ;;  %v7491_v36 = vrot.slane %v1752_v41, 6  ;;  %v5601_v25 = vunpack.i.h.bf16 %v7476_v21  ;;  %v3098_v29 = vsub.f32 0.0, %v7467_v59  ;;  %v1250_v57 = vunpack.c.l.bf16 %v7469_v18 }
 0x201   : > { %9943 = vst [vmem:[#allocation31_spill] sm:$0xff] %v7480_v19  ;;  %v7497_v42 = vadd.f32 %v7220_v44, %v1249_v50  ;;  %v5222_v13 = vrot.slane %v7478_v46, 9  ;;  %v9716_v52 = vrot.slane %v7480_v19, 5  ;;  %v2396_v48 = vadd.f32 %v5605_v26, %v9948_v35 }
 0x202   : > { %9945 = vst [vmem:[#allocation95_spill] sm:$0xff] %v7485_v63  ;;  %v2611_v15 = vadd.f32 %v5601_v25, %v2467_v11  ;;  %v7502_v41 = vrot.slane %v1688_v1, 4  ;;  %v7504_v23 = vunpack.c.l.bf16 %v2425_v10  ;;  %v2739_v22 = vor.u32 %v2738_v31, %v2735_v9  ;;  %v9954_v9 = vld [vmem:[#allocation9_spill] sm:$0xff] }
 0x203   : > { %9946 = vst [vmem:[#allocation96_spill] sm:$0xff] %v7489_v47  ;;  %v5590_v21 = vunpack.i.l.bf16 %v7410_v8  ;;  %v2462_v45 = vunpack.c.l.bf16 %v2426_v51  ;;  %v3129_v25 = vmul.f32 1.442695, %v3098_v29  ;;  %v7512_v46 = vadd.f32 %v7220_v44, %v1250_v57 }
 0x204   : > { %9947 = vst [vmem:[#allocation97_spill] sm:$0xff] %v7497_v42  ;;  %v1701_v26 = vshrl.u32 %v7460_v53, 16  ;;  %v9951_v10 = vmov 0  ;;  %v5560_v51 = vunpack.i.l.bf16 %v7342_v6  ;;  %v9955_v31 = vpack.i.bf16 %v9939_v27, %v9954_v9 }
 0x205   : > { %9949 = vst [vmem:[#allocation35_spill] sm:$0xff] %v7502_v41  ;;  %v9952_v10 = vsel %vm7518_vm9, 4294967295, %v9951_v10  ;;  %v1305_v29 = vsub.f32 0.0, %v7497_v42  ;;  %v7528_v57 = vpack.c.bf16 %v2611_v15, %v2611_v15  ;;  %v7534_v35 = vsel %vm7518_vm9, %v5222_v13, %v9716_v52  ;;  %v5614_v42 = vpop.permute.xlu1 %5613  ;;  %v9959_v52 = vld [vmem:[#allocation24_spill] sm:$0xff] }
 0x206   : > { %9950 = vst [vmem:[#allocation98_spill] sm:$0xff] %v7512_v46  ;;  %v2432_v50 = vpack.c.bf16 %v2396_v48, %v2396_v48  ;;  %v1720_v11 = vshrl.u32 %v7469_v18, 16  ;;  %v5551_v1 = vunpack.i.h.bf16 %v7251_v60  ;;  %v1197_v63 = vadd.f32 %v5590_v21, %v1025_v28 }
 0x207   : > { %9953 = vst [vmem:[#allocation99_spill] sm:$0xff] %v9952_v10  ;;  %v9958_v47 = vrot.slane %v7272_v2, 4  ;;  %v5610_v15 = vunpack.i.l.bf16 %v7483_v39  ;;  %5809 = vpow2.f32 %v3129_v25  ;;  %v1723_v13 = vshll.u32 %v7469_v18, 16  ;;  %v9960_v25 = vld [vmem:[#allocation52_spill] sm:$0xff] }
 0x208   : > { %5643 = vrot.lane.b32.xlu2 %v9955_v31, %s6309_s11  ;;  %9956 = vst [vmem:[#allocation100_spill] sm:$0xff] %v7528_v57  ;;  %v2468_v27 = vunpack.c.l.bf16 %v2432_v50  ;;  %v2391_v48 = vadd.f32 %v5560_v51, %v9959_v52  ;;  %v5616_v19 = vunpack.i.h.bf16 %v5614_v42  ;;  %v9720_v60 = vrot.slane %v7528_v57, 5 }
 0x209   : > { %9957 = vst [vmem:[#allocation101_spill] sm:$0xff] %v7534_v35  ;;  %v2740_v31 = vsel %vm6921_vm6, %v9958_v47, %v2739_v22  ;;  %v5591_v35 = vunpack.i.h.bf16 %v7410_v8  ;;  %v5615_v22 = vunpack.i.l.bf16 %v5614_v42  ;;  %v7550_v21 = vrot.slane %v1701_v26, 5  ;;  %v9963_v42 = vld [vmem:[#allocation20_spill] sm:$0xff] }
 0x20a   : > { %v3039_v9 = vunpack.c.l.bf16 %v2740_v31  ;;  %v2612_v28 = vadd.f32 %v5610_v15, %v2468_v27  ;;  %v2606_v47 = vadd.f32 %v5551_v1, %v2462_v45  ;;  %v5561_v50 = vunpack.i.h.bf16 %v7342_v6  ;;  %v9965_v6 = vld [vmem:[#allocation42_spill] sm:$0xff] }
 0x20b   : > { %v1545_v31 = vadd.f32 %v5616_v19, %v9960_v25  ;;  %v1306_v18 = vsub.f32 0.0, %v7512_v46  ;;  %v7555_v52 = vpack.c.bf16 %v1197_v63, %v1197_v63  ;;  %v1340_v27 = vmul.f32 1.442695, %v1305_v29 }
 0x20c   : > { %v7548_v2 = vadd.f32 %v9938_v20, %v3039_v9  ;;  %v7557_v8 = vpack.c.bf16 %v2612_v28, %v2612_v28  ;;  %v2427_v15 = vpack.c.bf16 %v2391_v48, %v2391_v48  ;;  %v1198_v9 = vadd.f32 %v5591_v35, %v7442_v32  ;;  %v9966_v48 = vld [vmem:[#allocation25_spill] sm:$0xff] }
 0x20d   : > { %9961 = vst [vmem:[#allocation24_spill] sm:$0xff] %v7555_v52  ;;  %v9964_v45 = vpack.i.bf16 %v6582_v55, %v9963_v42  ;;  %v1544_v26 = vadd.f32 %v5615_v22, %v9965_v6  ;;  %v5810_v19 = vpop.eup %5809  ;;  %v3487_v63 = vrot.slane %v9720_v60, 4  ;;  %v1557_v25 = vpack.c.bf16 %v1545_v31, %v1545_v31  ;;  %v5619_v60 = vpop.permute.xlu1 %5618 }
 0x20e   : > { %9962 = vst [vmem:[#allocation102_spill] sm:$0xff] %v7557_v8  ;;  %v3099_v51 = vsub.f32 0.0, %v7548_v2  ;;  %v3488_v1 = vrot.slane %v7557_v8, 5  ;;  %v1722_v46 = vrot.slane %v1720_v11, 5  ;;  %v7569_v29 = vpack.c.bf16 %v2606_v47, %v2606_v47 }
 0x20f   : > { %v2392_v32 = vadd.f32 %v5561_v50, %v9966_v48  ;;  %v3179_v35 = vadd.f32 1.0, %v5810_v19  ;;  %v1729_v41 = vshrl.u32 %v7555_v52, 16  ;;  %v1725_v6 = vrot.slane %v1723_v13, 6 }
 0x210   : > { %5658 = vrot.lane.b32.xlu2 %v9964_v45, %s6310_s12  ;;  %v3131_v28 = vmul.f32 1.442695, %v3099_v51  ;;  %v1732_v45 = vshll.u32 %v7555_v52, 16  ;;  %v7576_v22 = vsel %vm7518_vm9, %v3487_v63, %v3488_v1  ;;  %v2463_v8 = vunpack.c.l.bf16 %v2427_v15 }
 0x211   : > { %9967 = vst [vmem:[#allocation25_spill] sm:$0xff] %v7576_v22  ;;  %v7578_v51 = vpack.c.bf16 %v1198_v9, %v1198_v9  ;;  %v1556_v11 = vpack.c.bf16 %v1544_v26, %v1544_v26  ;;  %v1569_v47 = vunpack.c.l.bf16 %v1557_v25  ;;  %v5621_v31 = vunpack.i.h.bf16 %v5619_v60 }
 0x212   : > { %5811 = vpow2.f32 %v3131_v28  ;;  %v5620_v50 = vunpack.i.l.bf16 %v5619_v60  ;;  %v5570_v19 = vunpack.i.l.bf16 %v7353_v54  ;;  %v2789_v57 = vshrl.u32 %v7569_v29, 16  ;;  %v9970_v60 = vld [vmem:[#allocation14_spill] sm:$0xff] }
 0x213   : > { %5813 = vrcp.f32 %v3179_v35  ;;  %v2428_v52 = vpack.c.bf16 %v2392_v32, %v2392_v32  ;;  %v1568_v39 = vunpack.c.l.bf16 %v1556_v11  ;;  %v5566_v63 = vunpack.i.h.bf16 %v7309_v16 }
 0x214   : > { %v1731_v1 = vrot.slane %v1729_v41, 5  ;;  %v1734_v28 = vrot.slane %v1732_v45, 6  ;;  %v7583_v22 = vadd.f32 %v5621_v31, %v1569_v47  ;;  %v9969_v13 = vshll.u32 %v7460_v53, 16 }
 0x215   : > { %v2792_v9 = vshll.u32 %v7569_v29, 16  ;;  %v5576_v25 = vunpack.i.h.bf16 %v7378_v38  ;;  %v9971_v26 = vpack.i.bf16 %v9963_v42, %v9970_v60  ;;  %v7593_v32 = vadd.f32 %v5620_v50, %v1568_v39  ;;  %v7601_v42 = vpop.permute.xlu1 %5623  ;;  %v9976_v60 = vld [vmem:[#allocation45_spill] sm:$0xff] }
 0x216   : > { %9968 = vst [vmem:[#allocation103_spill] sm:$0xff] %v7583_v22  ;;  %v1706_v15 = vrot.slane %v9969_v13, 6  ;;  %5815 = vpow2.f32 %v1340_v27  ;;  %v2607_v41 = vadd.f32 %v5566_v63, %v2463_v8  ;;  %v1739_v45 = vshrl.u32 %v7578_v51, 16  ;;  %v9972_v13 = vld [vmem:[#allocation63_spill] sm:$0xff]  ;;  %v9973_v22 = vld [vmem:[#allocation62_spill] sm:$0xff] }
 0x217   : > { %v1742_v11 = vshll.u32 %v7578_v51, 16  ;;  %v1342_v53 = vmul.f32 1.442695, %v1306_v18  ;;  %v2464_v47 = vunpack.c.l.bf16 %v2428_v52  ;;  %v9974_v38 = vor.u32 %v9972_v13, %v9973_v22  ;;  %v9975_v63 = vld [vmem:[#allocation47_spill] sm:$0xff] }
 0x218   : > { %5663 = vrot.lane.b32.xlu2 %v9971_v26, %s6309_s11  ;;  %v5812_v35 = vpop.eup %5811  ;;  %v1726_v40 = vor.u32 %v1725_v6, %v1722_v46  ;;  %v2601_v26 = vadd.f32 %v5570_v19, %v7301_v34  ;;  %v2791_v39 = vrot.slane %v2789_v57, 5  ;;  %v1735_v50 = vor.u32 %v1734_v28, %v1731_v1 }
 0x219   : > { %v3180_v31 = vadd.f32 1.0, %v5812_v35  ;;  %v1765_v30 = vrot.slane %v9974_v38, 4  ;;  %v5814_v14 = vpop.eup %5813  ;;  %v2794_v8 = vrot.slane %v2792_v9, 6  ;;  %v2608_v27 = vadd.f32 %v5576_v25, %v2464_v47  ;;  %v7621_v9 = vpop.permute.xlu0 %5628  ;;  %v9977_v25 = vld [vmem:[#allocation39_spill] sm:$0xff] }
 0x21a   : > { %v7605_v18 = vor.u32 %v9976_v60, %v9975_v63  ;;  %v7607_v52 = vpack.c.bf16 %v2607_v41, %v2607_v41  ;;  %v1741_v35 = vrot.slane %v1739_v45, 5  ;;  %v1744_v22 = vrot.slane %v1742_v11, 6 }
 0x21b   : > { %5817 = vrcp.f32 %v3180_v31  ;;  %v5625_v13 = vunpack.i.l.bf16 %v7601_v42  ;;  %v7611_v34 = vor.u32 %v1706_v15, %v7550_v21  ;;  %v3233_v46 = vmul.f32 %v5814_v14, %v7467_v59 }
 0x21c   : > { %5819 = vpow2.f32 %v1342_v53  ;;  %v1774_v57 = vsel %vm6921_vm6, %v1765_v30, %v7605_v18  ;;  %v7617_v6 = vpop.eup %5815  ;;  %v1727_v19 = vrot.slane %v1726_v40, 4  ;;  %v7619_v1 = vpack.c.bf16 %v2601_v26, %v2601_v26 }
 0x21d   : > { %v1737_v28 = vrot.slane %v1735_v50, 4  ;;  %v987_v60 = vadd.f32 %v5625_v13, %v9977_v25  ;;  %v7624_v41 = vor.u32 %v2794_v8, %v2791_v39  ;;  %v5565_v21 = vunpack.i.l.bf16 %v7309_v16 }
 0x21e   : > { %v7627_v15 = vpack.c.bf16 %v2608_v27, %v2608_v27  ;;  %v7631_v14 = vadd.f32 %v7220_v44, %v7328_v12  ;;  %v2799_v30 = vshrl.u32 %v7607_v52, 16  ;;  %v7634_v40 = vor.u32 %v1744_v22, %v1741_v35 }
 0x21f   : > { %v1014_v59 = vpack.c.bf16 %v987_v60, %v987_v60  ;;  %v2021_v45 = vunpack.c.l.bf16 %v1774_v57  ;;  %v2802_v53 = vshll.u32 %v7607_v52, 16  ;;  %v3260_v47 = vpack.c.bf16 %v3233_v46, %v3233_v46 }
 0x220   : > { %v5630_v31 = vunpack.i.l.bf16 %v7621_v9  ;;  %v7640_v16 = vadd.f32 %v7220_v44, %v7321_v33  ;;  %v1736_v26 = vsel %vm6921_vm6, %v1727_v19, %v1735_v50  ;;  %v1746_v39 = vsel %vm6921_vm6, %v1737_v28, %v7634_v40 }
 0x221   : > { %v5818_v11 = vpop.eup %5817  ;;  %v1041_v12 = vunpack.c.l.bf16 %v1014_v59  ;;  %v2809_v27 = vshrl.u32 %v7627_v15, 16  ;;  %v2812_v63 = vshll.u32 %v7627_v15, 16  ;;  %v2018_v35 = vunpack.c.l.bf16 %v1736_v26 }
 0x222   : > { %v3234_v38 = vmul.f32 %v5818_v11, %v7548_v2  ;;  %v5820_v8 = vpop.eup %5819  ;;  %v1297_v22 = vsub.f32 0.0, %v7631_v14  ;;  %v2019_v2 = vunpack.c.l.bf16 %v1746_v39  ;;  %v7654_v13 = vadd.f32 %v7283_v58, %v2021_v45 }
 0x223   : > { %v7651_v33 = vadd.f32 %v5630_v31, %v1041_v12  ;;  %v2605_v50 = vadd.f32 %v5565_v21, %v7504_v23  ;;  %v2801_v46 = vrot.slane %v2799_v30, 5  ;;  %v7658_v57 = vadd.f32 %v7283_v58, %v2018_v35 }
 0x224   : > { %v3261_v44 = vpack.c.bf16 %v3234_v38, %v3234_v38  ;;  %v1298_v19 = vsub.f32 0.0, %v7640_v16  ;;  %v2804_v28 = vrot.slane %v2802_v53, 6  ;;  %v4031_v60 = vunpack.c.l.b16 %v3260_v47  ;;  %v9979_v47 = vld [vmem:[#allocation37_spill] sm:$0xff] }
 0x225   : > { %9978 = vst [vmem:[#allocation63_spill] sm:$0xff] %v7651_v33  ;;  %v7662_v11 = vadd.f32 %v7283_v58, %v2019_v2  ;;  %v5545_v31 = vunpack.i.l.bf16 %v7303_v62  ;;  %v2811_v38 = vrot.slane %v2809_v27, 5  ;;  %v2814_v12 = vrot.slane %v2812_v63, 6 }
 0x226   : > { %v4032_v59 = vunpack.c.l.b16 %v3261_v44  ;;  %v1324_v45 = vmul.f32 1.442695, %v1297_v22  ;;  %v2074_v21 = vsub.f32 0.0, %v7658_v57  ;;  %v2077_v30 = vsub.f32 0.0, %v7654_v13 }
 0x227   : > { %v7669_v53 = vpack.c.bf16 %v2605_v50, %v2605_v50  ;;  %v1326_v44 = vmul.f32 1.442695, %v1298_v19  ;;  %v2742_v62 = vshrl.u32 %v7619_v1, 16  ;;  %v2805_v27 = vor.u32 %v2804_v28, %v2801_v46 }
 0x228   : > { %v4056_v23 = vpack.c.b16 %v4032_v59, %v4031_v60  ;;  %v2075_v63 = vsub.f32 0.0, %v7662_v11  ;;  %v2107_v22 = vmul.f32 1.442695, %v2074_v21  ;;  %v2797_v2 = vrot.slane %v7624_v41, 4  ;;  %v9980_v60 = vld [vmem:[#allocation15_spill] sm:$0xff] }
 0x229   : > { %v2386_v59 = vadd.f32 %v5545_v31, %v9980_v60  ;;  %v2815_v26 = vor.u32 %v2814_v12, %v2811_v38  ;;  %5821 = vpow2.f32 %v1324_v45  ;;  %v5626_v50 = vunpack.i.h.bf16 %v7601_v42 }
 0x22a   : > { %4072 = vrot.lane.b32.xlu1 %v4056_v23, %s6309_s11  ;;  %5823 = vpow2.f32 %v2107_v22  ;;  %v2109_v39 = vmul.f32 1.442695, %v2075_v63  ;;  %v2113_v35 = vmul.f32 1.442695, %v2077_v30  ;;  %v1386_v19 = vadd.f32 1.0, %v7617_v6 }
 0x22b   : > { %v3472_v46 = vrot.slane %v7569_v29, 5  ;;  %v5221_v28 = vrot.slane %v7669_v53, 9  ;;  %5825 = vpow2.f32 %v1326_v44  ;;  %v1747_v23 = vrot.slane %v7634_v40, 4 }
 0x22c   : > { %5827 = vpow2.f32 %v2109_v39  ;;  %v2806_v31 = vsel %vm6921_vm6, %v2797_v2, %v2805_v27  ;;  %v2807_v38 = vrot.slane %v2805_v27, 4  ;;  %v1387_v12 = vadd.f32 1.0, %v5820_v8  ;;  %v9981_v8 = vld [vmem:[#allocation8_spill] sm:$0xff] }
 0x22d   : > { %v7685_v45 = vrot.slane %v2742_v62, 5  ;;  %v2745_v42 = vshll.u32 %v7619_v1, 16  ;;  %v3044_v21 = vunpack.c.l.bf16 %v2806_v31  ;;  %v2422_v30 = vpack.c.bf16 %v2386_v59, %v2386_v59 }
 0x22e   : > { %v1537_v6 = vadd.f32 %v5626_v50, %v9966_v48  ;;  %v2816_v29 = vsel %vm6921_vm6, %v2807_v38, %v2815_v26  ;;  %5829 = vpow2.f32 %v2113_v35  ;;  %v3474_v40 = vrot.slane %v3472_v46, 4 }
 0x22f   : > { %v5822_v44 = vpop.eup %5821  ;;  %v3045_v39 = vunpack.c.l.bf16 %v2816_v29  ;;  %v7692_v63 = vadd.f32 %v9938_v20, %v3044_v21  ;;  %v1812_v62 = vsel %vm6921_vm6, %v9981_v8, %v7293_v49  ;;  %5831 = vrcp.f32 %v1386_v19 }
 0x230   : > { %v5824_v1 = vpop.eup %5823  ;;  %v3473_v48 = vsel %vm7518_vm9, %v5221_v28, %v3472_v46  ;;  %v9730_v27 = vrot.slane %v7607_v52, 5  ;;  %v9982_v26 = vpack.i.bf16 %v9855_v3, %v6582_v55  ;;  %v9983_v35 = vor.u32 %v7491_v36, %v7487_v4 }
 0x231   : > { %v5826_v2 = vpop.eup %5825  ;;  %v2155_v60 = vadd.f32 1.0, %v5824_v1  ;;  %v7711_v59 = vadd.f32 %v9938_v20, %v3045_v39  ;;  %v3104_v50 = vsub.f32 0.0, %v7692_v63  ;;  %5833 = vrcp.f32 %v1387_v12  ;;  %v5280_v39 = vld [vmem:[%s9559_s2] sm:$0xff] }
 0x232   : > { %5673 = vrot.lane.b32.xlu1 %v9982_v26, %s6309_s11  ;;  %v1756_v22 = vsel %vm6921_vm6, %v1747_v23, %v9983_v35  ;;  %v5828_v46 = vpop.eup %5827  ;;  %v2458_v28 = vunpack.c.l.bf16 %v2422_v30  ;;  %v1549_v31 = vpack.c.bf16 %v1537_v6, %v1537_v6  ;;  %v2024_v38 = vunpack.c.l.bf16 %v1812_v62  ;;  %4308 = vmatpush.bf16.msra.mxu1 %v5280_v39 }
 0x233   : > { %v2020_v19 = vunpack.c.l.bf16 %v1756_v22  ;;  %v2156_v21 = vadd.f32 1.0, %v5828_v46  ;;  %5835 = vrcp.f32 %v2155_v60  ;;  %v3105_v4 = vsub.f32 0.0, %v7711_v59  ;;  %5283 = vmatpush.bf16.msrb.mxu3 %v5280_v39 }
 0x234   : > { %v3141_v36 = vmul.f32 1.442695, %v3104_v50  ;;  %v5830_v29 = vpop.eup %5829  ;;  %v1378_v8 = vadd.f32 1.0, %v5822_v44  ;;  %v3476_v12 = vsel %vm7518_vm9, %v3474_v40, %v9730_v27  ;;  %v3587_v30 = vunpack.c.l.bf16 %v3473_v48 }
 0x235   : > { %v7716_v23 = vadd.f32 %v7283_v58, %v2020_v19  ;;  %5837 = vrcp.f32 %v2156_v21  ;;  %v3143_v6 = vmul.f32 1.442695, %v3105_v4  ;;  %v1379_v62 = vadd.f32 1.0, %v5826_v2  ;;  %v7730_v44 = vpop.eup %5831 }
 0x236   : > { %v9984_v1 = vrot.slane %v7293_v49, 4  ;;  %v2747_v35 = vrot.slane %v2745_v42, 6  ;;  %5839 = vpow2.f32 %v3141_v36  ;;  %v3588_v60 = vunpack.c.l.bf16 %v3476_v12 }
 0x237   : > { %v2076_v22 = vsub.f32 0.0, %v7716_v23  ;;  %v9985_v40 = vunpack.i.h.bf16 %v7353_v54  ;;  %5841 = vpow2.f32 %v3143_v6  ;;  %v2158_v2 = vadd.f32 1.0, %v5830_v29  ;;  %v7738_v49 = vpop.eup %5833 }
 0x238   : > { %v1822_v26 = vsel %vm6921_vm6, %v9984_v1, %v7290_v7  ;;  %v7736_v50 = vadd.f32 %v7364_v24, %v3587_v30  ;;  %v9986_v42 = vpack.i.bf16 %v9854_v0, %v6662_v61  ;;  %5843 = vrcp.f32 %v1378_v8 }
 0x239   : > { %v2602_v48 = vadd.f32 %v9985_v40, %v2458_v28  ;;  %v2111_v19 = vmul.f32 1.442695, %v2076_v22  ;;  %v7745_v46 = vadd.f32 %v7364_v24, %v3588_v60  ;;  %v2025_v21 = vunpack.c.l.bf16 %v1822_v26  ;;  %v5836_v54 = vpop.eup %5835 }
 0x23a   : > { %5678 = vrot.lane.b32.xlu1 %v9986_v42, %s6310_s12  ;;  %v1561_v28 = vunpack.c.l.bf16 %v1549_v31  ;;  %5845 = vrcp.f32 %v1379_v62  ;;  %v3647_v4 = vsub.f32 0.0, %v7736_v50  ;;  %v7749_v36 = vadd.f32 %v7283_v58, %v2024_v38 }
 0x23b   : > { %v2748_v29 = vor.u32 %v2747_v35, %v7685_v45  ;;  %v2209_v39 = vmul.f32 %v5836_v54, %v7658_v57  ;;  %5847 = vpow2.f32 %v2111_v19  ;;  %v3648_v12 = vsub.f32 0.0, %v7745_v46  ;;  %v5838_v8 = vpop.eup %5837 }
 0x23c   : > { %v2638_v30 = vpack.c.bf16 %v2602_v48, %v2602_v48  ;;  %v5631_v6 = vunpack.i.h.bf16 %v7621_v9  ;;  %5849 = vrcp.f32 %v2158_v2  ;;  %v3674_v1 = vmul.f32 1.442695, %v3647_v4  ;;  %v5840_v31 = vpop.eup %5839 }
 0x23d   : > { %v2210_v62 = vmul.f32 %v5838_v8, %v7662_v11  ;;  %v2236_v26 = vpack.c.bf16 %v2209_v39, %v2209_v39  ;;  %v3676_v22 = vmul.f32 1.442695, %v3648_v12  ;;  %v7757_v38 = vadd.f32 %v7283_v58, %v2025_v21  ;;  %v5842_v45 = vpop.eup %5841 }
 0x23e   : > { %v1616_v35 = vadd.f32 %v5631_v6, %v1561_v28  ;;  %v3185_v57 = vadd.f32 1.0, %v5840_v31  ;;  %5851 = vpow2.f32 %v3674_v1  ;;  %v2080_v60 = vsub.f32 0.0, %v7749_v36  ;;  %v5844_v40 = vpop.eup %5843 }
 0x23f   : > { %v2780_v48 = vshrl.u32 %v7669_v53, 16  ;;  %v2237_v9 = vpack.c.bf16 %v2210_v62, %v2210_v62  ;;  %v3186_v2 = vadd.f32 1.0, %v5842_v45  ;;  %5853 = vpow2.f32 %v3676_v22 }
 0x240   : > { %v5846_v42 = vpop.eup %5845  ;;  %v2751_v19 = vshrl.u32 %v2638_v30, 16  ;;  %v2754_v11 = vshll.u32 %v2638_v30, 16  ;;  %v2783_v54 = vshll.u32 %v7669_v53, 16  ;;  %5855 = vrcp.f32 %v3185_v57 }
 0x241   : > { %v5848_v58 = vpop.eup %5847  ;;  %v9987_v21 = vpack.i.bf16 %v6662_v61, %v9850_v43  ;;  %v3937_v28 = vunpack.c.l.b16 %v2236_v26  ;;  %v3938_v4 = vunpack.c.l.b16 %v2237_v9  ;;  %5857 = vrcp.f32 %v3186_v2  ;;  %v9996_v61 = vld [vmem:[#allocation53_spill] sm:$0xff] }
 0x242   : > { %v2081_v39 = vsub.f32 0.0, %v7757_v38  ;;  %v5850_v12 = vpop.eup %5849  ;;  %v5606_v8 = vunpack.i.h.bf16 %v7464_v37  ;;  %v1628_v6 = vpack.c.bf16 %v1616_v35, %v1616_v35  ;;  %v2157_v1 = vadd.f32 1.0, %v5848_v58 }
 0x243   : > { %5693 = vrot.lane.b32.xlu1 %v9987_v21, %s6309_s11  ;;  %v2119_v30 = vmul.f32 1.442695, %v2080_v60  ;;  %v7768_v31 = vrot.slane %v2748_v29, 4  ;;  %v3961_v53 = vpack.c.b16 %v3938_v4, %v3937_v28  ;;  %v1432_v62 = vmul.f32 %v5844_v40, %v7631_v14 }
 0x244   : > { %v1433_v22 = vmul.f32 %v5846_v42, %v7640_v16  ;;  %v5852_v45 = vpop.eup %5851  ;;  %v7772_v57 = vrot.slane %v2751_v19, 5  ;;  %v7774_v26 = vrot.slane %v2780_v48, 5  ;;  %v7776_v9 = vrot.slane %v2783_v54, 6  ;;  %v5634_v19 = vpop.permute.xlu1 %5633 }
 0x245   : > { %5859 = vrcp.f32 %v2157_v1  ;;  %v5854_v2 = vpop.eup %5853  ;;  %v7778_v37 = vrot.slane %v2754_v11, 6  ;;  %v7782_v29 = vpack.c.bf16 %v7408_v17, %v7408_v17  ;;  %3978 = vrot.lane.b32.xlu2 %v3961_v53, %s6311_s26  ;;  %v3728_v14 = vadd.f32 1.0, %v5852_v45 }
 0x246   : > { %v2121_v35 = vmul.f32 1.442695, %v2081_v39  ;;  %v5856_v16 = vpop.eup %5855  ;;  %v2398_v60 = vadd.f32 %v5606_v8, %v9930_v5  ;;  %v1673_v40 = vshrl.u32 %v1628_v6, 16  ;;  %v3729_v48 = vadd.f32 1.0, %v5854_v2  ;;  %v9988_v5 = vld [vmem:[#allocation40_spill] sm:$0xff] }
 0x247   : > { %5861 = vpow2.f32 %v2119_v30  ;;  %v5858_v42 = vpop.eup %5857  ;;  %v3239_v54 = vmul.f32 %v5856_v16, %v7692_v63  ;;  %v1459_v11 = vpack.c.bf16 %v1432_v62, %v1432_v62  ;;  %v1460_v58 = vpack.c.bf16 %v1433_v22, %v1433_v22 }
 0x248   : > { %5863 = vrcp.f32 %v3728_v14  ;;  %v1676_v21 = vshll.u32 %v1628_v6, 16  ;;  %v3240_v17 = vmul.f32 %v5858_v42, %v7711_v59  ;;  %v2212_v28 = vmul.f32 %v5850_v12, %v7654_v13 }
 0x249   : > { %5865 = vrcp.f32 %v3729_v48  ;;  %v5585_v39 = vunpack.i.l.bf16 %v9988_v5  ;;  %v9989_v8 = vpack.i.bf16 %v9977_v25, %v9979_v47  ;;  %v3266_v63 = vpack.c.bf16 %v3239_v54, %v3239_v54 }
 0x24a   : > { %5867 = vpow2.f32 %v2121_v35  ;;  %v2434_v30 = vpack.c.bf16 %v2398_v60, %v2398_v60  ;;  %v5636_v6 = vunpack.i.h.bf16 %v5634_v19  ;;  %v5635_v53 = vunpack.i.l.bf16 %v5634_v19  ;;  %v9990_v35 = vld [vmem:[#allocation18_spill] sm:$0xff]  ;;  %v9991_v60 = vld [vmem:[#allocation27_spill] sm:$0xff]  ;;  %v9992_v19 = vld [vmem:[#allocation21_spill] sm:$0xff] }
 0x24b   : > { %5698 = vrot.lane.b32.xlu1 %v9989_v8, %s6310_s12  ;;  %v5860_v1 = vpop.eup %5859  ;;  %v3267_v59 = vpack.c.bf16 %v3240_v17, %v3240_v17  ;;  %v2761_v13 = vshrl.u32 %v7782_v29, 16  ;;  %v3863_v62 = vunpack.c.l.b16 %v1459_v11  ;;  %v3864_v22 = vunpack.c.l.b16 %v1460_v58 }
 0x24c   : > { %v2211_v12 = vmul.f32 %v5860_v1, %v7716_v23  ;;  %v1675_v2 = vrot.slane %v1673_v40, 5  ;;  %v1678_v14 = vrot.slane %v1676_v21, 6  ;;  %v2239_v48 = vpack.c.bf16 %v2212_v28, %v2212_v28  ;;  %v9994_v1 = vld [vmem:[#allocation43_spill] sm:$0xff]  ;;  %v9995_v21 = vld [vmem:[#allocation41_spill] sm:$0xff] }
 0x24d   : > { %v5862_v45 = vpop.eup %5861  ;;  %v4038_v16 = vunpack.c.l.b16 %v3267_v59  ;;  %v2764_v54 = vshll.u32 %v7782_v29, 16  ;;  %v7800_v5 = vadd.f32 %v5585_v39, %v9990_v35  ;;  %v9993_v17 = vpack.i.bf16 %v9991_v60, %v9992_v19 }
 0x24e   : > { %v5864_v42 = vpop.eup %5863  ;;  %v4037_v8 = vunpack.c.l.b16 %v3266_v63  ;;  %v2238_v23 = vpack.c.bf16 %v2211_v12, %v2211_v12  ;;  %v2470_v58 = vunpack.c.l.bf16 %v2434_v30  ;;  %v2399_v40 = vadd.f32 %v5636_v6, %v9994_v1  ;;  %v10000_v1 = vld [vmem:[#allocation35_spill] sm:$0xff] }
 0x24f   : > { %5683 = vrot.lane.b32.xlu2 %v9993_v17, %s6309_s11  ;;  %v5866_v11 = vpop.eup %5865  ;;  %v2397_v59 = vadd.f32 %v5635_v53, %v9995_v21  ;;  %v3782_v28 = vmul.f32 %v5864_v42, %v7736_v50  ;;  %v3890_v39 = vpack.c.b16 %v3864_v22, %v3863_v62  ;;  %v5611_v24 = vunpack.i.h.bf16 %v9996_v61  ;;  %v4069_v62 = vpop.permute.xlu0 %4068 }
 0x250   : > { %v5868_v27 = vpop.eup %5867  ;;  %v4059_v29 = vpack.c.b16 %v4038_v16, %v4037_v8  ;;  %v3939_v4 = vunpack.c.l.b16 %v2238_v23  ;;  %v3783_v35 = vmul.f32 %v5866_v11, %v7745_v46  ;;  %v1679_v19 = vor.u32 %v1678_v14, %v1675_v2  ;;  %v9997_v2 = vld [vmem:[#allocation75_spill] sm:$0xff] }
 0x251   : > { %v3940_v17 = vunpack.c.l.b16 %v2239_v48  ;;  %v3809_v12 = vpack.c.bf16 %v3782_v28, %v3782_v28  ;;  %v2161_v53 = vadd.f32 1.0, %v5862_v45  ;;  %v2614_v50 = vadd.f32 %v5611_v24, %v2470_v58  ;;  %v9999_v11 = vld [vmem:[#allocation19_spill] sm:$0xff]  ;;  %v7833_v28 = vld [vmem:[%s9560_s3 + $0x1] ss:$0 sm:$0xff] }
 0x252   : > { %v3973_v63 = vpop.permute.xlu2 %3972  ;;  %v3810_v6 = vpack.c.bf16 %v3783_v35, %v3783_v35  ;;  %v2435_v42 = vpack.c.bf16 %v2399_v40, %v2399_v40  ;;  %v2433_v16 = vpack.c.bf16 %v2397_v59, %v2397_v59  ;;  %v2162_v8 = vadd.f32 1.0, %v5868_v27  ;;  %v10002_v35 = vld [vmem:[#allocation2_spill] sm:$0xff] }
 0x253   : > { %4078 = vrot.lane.b32.xlu1 %v4059_v29, %s6309_s11  ;;  %v4166_v30 = vsel %vm450_vm1, %v3890_v39, %v3973_v63  ;;  %v3962_v22 = vpack.c.b16 %v3940_v17, %v3939_v4  ;;  %v4123_v46 = vunpack.c.l.b16 %v3809_v12  ;;  %v9998_v14 = vrot.slane %v9997_v2, 4 }
 0x254   : > { %v4124_v23 = vunpack.c.l.b16 %v3810_v6  ;;  %v4208_v61 = vsel %vm4206_vm10, %v4166_v30, %v4069_v62  ;;  %v1698_v24 = vsel %vm6921_vm6, %v10000_v1, %v9999_v11  ;;  %5869 = vrcp.f32 %v2161_v53  ;;  %v10003_v30 = vld [vmem:[#allocation57_spill] sm:$0xff] }
 0x255   : > { %v1680_v48 = vsel %vm6921_vm6, %v9998_v14, %v1679_v19  ;;  %v2015_v45 = vunpack.c.l.bf16 %v1698_v24  ;;  %v7825_v58 = vor.u32 %v7778_v37, %v7772_v57  ;;  %v2763_v40 = vrot.slane %v2761_v13, 5  ;;  %v10001_v57 = vld [vmem:[#allocation48_spill] sm:$0xff]  ;;  %v10004_v6 = vld [vmem:[#allocation49_spill] sm:$0xff] }
 0x256   : > { %v4150_v27 = vpack.c.b16 %v4124_v23, %v4123_v46  ;;  %v2014_v4 = vunpack.c.l.bf16 %v1680_v48  ;;  %v2766_v21 = vrot.slane %v2764_v54, 6  ;;  %5871 = vrcp.f32 %v2162_v8  ;;  %v10007_v24 = vld [vmem:[#allocation24_spill] sm:$0xff] }
 0x257   : > { %3980 = vrot.lane.b32.xlu2 %v3962_v22, %s6311_s26  ;;  %v7827_v59 = vpack.c.bf16 %v2614_v50, %v2614_v50  ;;  %v7839_v39 = vadd.f32 %v7833_v28, %v2015_v45  ;;  %v5600_v37 = vunpack.i.l.bf16 %v10001_v57  ;;  %v2424_v13 = vpack.c.bf16 %v7800_v5, %v7800_v5  ;;  %v10008_v45 = vld [vmem:[#allocation100_spill] sm:$0xff] }
 0x258   : > { %v4237_v19 = vsel %vm4235_vm11, %v4208_v61, %v4150_v27  ;;  %v7836_v29 = vadd.f32 %v7833_v28, %v2014_v4  ;;  %v2471_v54 = vunpack.c.l.bf16 %v2435_v42  ;;  %v5702_v17 = vpack.i.bf16 %v10002_v35, %v9854_v0 }
 0x259   : > { %5234 = vmatmul.msk.bf16.vlgmr.msra.gmra.mxu1 %vm4272_vm12, %v4237_v19  ;;  %v2469_v12 = vunpack.c.l.bf16 %v2433_v16  ;;  %v10005_v53 = vpack.i.bf16 %v10003_v30, %v10004_v6  ;;  %v10006_v5 = vor.u32 %v7776_v9, %v7774_v26  ;;  %v7858_v46 = vor.u32 %v2766_v21, %v2763_v40  ;;  %v7865_v9 = vpop.permute.xlu1 %4070 }
 0x25a   : > { %v5639_v63 = vpop.permute.xlu2 %5638  ;;  %v2070_v62 = vsub.f32 0.0, %v7836_v29  ;;  %v2071_v16 = vsub.f32 0.0, %v7839_v39  ;;  %v5870_v23 = vpop.eup %5869  ;;  %v3492_v61 = vrot.slane %v7827_v59, 5  ;;  %v2460_v4 = vunpack.c.l.bf16 %v2424_v13  ;;  %10009 = vst [vmem:[#allocation62_spill] sm:$0xff] %v7865_v9  ;;  %v10011_v13 = vld [vmem:[#allocation96_spill] sm:$0xff] }
 0x25b   : > { %5718 = vrot.lane.b32.xlu1 %v10005_v53, %s6310_s12  ;;  %v5641_v50 = vunpack.i.h.bf16 %v5639_v63  ;;  %v5640_v8 = vunpack.i.l.bf16 %v5639_v63  ;;  %v7856_v42 = vrot.slane %v10006_v5, 4  ;;  %v2837_v19 = vshrl.u32 %v10008_v45, 16  ;;  %v10012_v53 = vld [vmem:[#allocation95_spill] sm:$0xff]  ;;  %v10021_v9 = vld [vmem:[#allocation36_spill] sm:$0xff] }
 0x25c   : > { %v2099_v48 = vmul.f32 1.442695, %v2070_v62  ;;  %v5872_v1 = vpop.eup %5871  ;;  %v2101_v57 = vmul.f32 1.442695, %v2071_v16  ;;  %v2840_v26 = vshll.u32 %v10008_v45, 16  ;;  %v3494_v5 = vrot.slane %v3492_v61, 4 }
 0x25d   : > { %v2615_v2 = vadd.f32 %v5641_v50, %v2471_v54  ;;  %v2613_v14 = vadd.f32 %v5640_v8, %v2469_v12  ;;  %v10010_v54 = vld [vmem:[#allocation38_spill] sm:$0xff]  ;;  %v1699_v12 = vrot.slane %v9999_v11, 4  ;;  %v10013_v50 = vor.u32 %v10011_v13, %v10012_v53 }
 0x25e   : > { %5873 = vpow2.f32 %v2099_v48  ;;  %v5722_v63 = vpack.i.bf16 %v10010_v54, %v9979_v47  ;;  %v10014_v8 = vrot.slane %v7611_v34, 4  ;;  %v2215_v16 = vmul.f32 %v5870_v23, %v7749_v36 }
 0x25f   : > { %5703 = vrot.lane.b32.xlu2 %v5702_v17, %s6309_s11  ;;  %v7868_v40 = vpack.c.bf16 %v2615_v2, %v2615_v2  ;;  %v2649_v21 = vpack.c.bf16 %v2613_v14, %v2613_v14  ;;  %5875 = vpow2.f32 %v2101_v57  ;;  %v2216_v2 = vmul.f32 %v5872_v1, %v7757_v38  ;;  %v7898_v38 = vpop.f32.mrf.mxu3 }
 0x260   : > { %v1718_v62 = vsel %vm6921_vm6, %v10014_v8, %v10013_v50  ;;  %v1708_v13 = vsel %vm6921_vm6, %v1699_v12, %v7611_v34  ;;  %v2604_v53 = vadd.f32 %v5600_v37, %v2460_v4  ;;  %v2839_v50 = vrot.slane %v2837_v19, 5  ;;  %v10016_v8 = vld [vmem:[#allocation31_spill] sm:$0xff]  ;;  %v10019_v37 = vld [vmem:[#allocation42_spill] sm:$0xff] }
 0x261   : > { %v9734_v17 = vrot.slane %v7868_v40, 5  ;;  %v5223_v11 = vrot.slane %v2649_v21, 9  ;;  %v2842_v23 = vrot.slane %v2840_v26, 6  ;;  %v2865_v1 = vshrl.u32 %v7827_v59, 16  ;;  %v10020_v4 = vld [vmem:[#allocation46_spill] sm:$0xff] }
 0x262   : > { %v7885_v57 = vpop.permute.xlu2 %5643  ;;  %v5707_v19 = vpack.i.bf16 %v10020_v4, %v10019_v37  ;;  %v2242_v27 = vpack.c.bf16 %v2215_v16, %v2215_v16  ;;  %v2017_v0 = vunpack.c.l.bf16 %v1718_v62  ;;  %v2859_v26 = vshll.u32 %v2649_v21, 16 }
 0x263   : > { %10015 = vst [vmem:[#allocation47_spill] sm:$0xff] %v7885_v57  ;;  %v7895_v36 = vsel %vm7518_vm9, %v3494_v5, %v9734_v17  ;;  %5723 = vrot.lane.b32.xlu1 %v5722_v63, %s6309_s11  ;;  %v7903_v34 = vsel %vm7518_vm9, %v5223_v11, %v3492_v61  ;;  %v5645_v14 = vunpack.i.l.bf16 %v7885_v57  ;;  %v2243_v5 = vpack.c.bf16 %v2216_v2, %v2216_v2  ;;  %v7918_v2 = vpop.permute.xlu1 %5653  ;;  %v10026_v57 = vld [vmem:[#allocation65_spill] sm:$0xff] }
 0x264   : > { %10017 = vst [vmem:[#allocation45_spill] sm:$0xff] %v7895_v36  ;;  %v5874_v12 = vpop.eup %5873  ;;  %v2016_v17 = vunpack.c.l.bf16 %v1708_v13  ;;  %v2856_v63 = vshrl.u32 %v2649_v21, 16  ;;  %v7916_v16 = vadd.f32 %v7833_v28, %v2017_v0  ;;  %v7927_v10 = vpack.c.bf16 %v2604_v53, %v2604_v53 }
 0x265   : > { %10018 = vst [vmem:[#allocation15_spill] sm:$0xff] %v7903_v34  ;;  %v5876_v48 = vpop.eup %5875  ;;  %v2151_v22 = vadd.f32 1.0, %v5874_v12  ;;  %v2400_v36 = vadd.f32 %v5645_v14, %v10021_v9  ;;  %v10022_v34 = vld [vmem:[#allocation102_spill] sm:$0xff]  ;;  %v3944_v21 = vunpack.c.l.b16 %v2243_v5  ;;  %v2868_v9 = vshll.u32 %v7827_v59, 16 }
 0x266   : > { %v2152_v61 = vadd.f32 1.0, %v5876_v48  ;;  %v7911_v11 = vadd.f32 %v7833_v28, %v2016_v17  ;;  %v2847_v45 = vshrl.u32 %v10022_v34, 16  ;;  %v2850_v37 = vshll.u32 %v10022_v34, 16 }
 0x267   : > { %5708 = vrot.lane.b32.xlu2 %v5707_v19, %s6310_s12  ;;  %5877 = vrcp.f32 %v2151_v22  ;;  %v2436_v62 = vpack.c.bf16 %v2400_v36, %v2400_v36  ;;  %v3943_v14 = vunpack.c.l.b16 %v2242_v27  ;;  %v2073_v17 = vsub.f32 0.0, %v7916_v16  ;;  %v10023_v22 = vld [vmem:[#allocation44_spill] sm:$0xff] }
 0x268   : > { %5879 = vrcp.f32 %v2152_v61  ;;  %v2072_v13 = vsub.f32 0.0, %v7911_v11  ;;  %v2858_v48 = vrot.slane %v2856_v63, 5  ;;  %v2861_v19 = vrot.slane %v2859_v26, 6 }
 0x269   : > { %v2472_v12 = vunpack.c.l.bf16 %v2436_v62  ;;  %v10024_v0 = vpack.i.bf16 %v10004_v6, %v10023_v22  ;;  %v2867_v36 = vrot.slane %v2865_v1, 5  ;;  %v5655_v5 = vunpack.i.l.bf16 %v7918_v2  ;;  %v10025_v62 = vld [vmem:[#allocation66_spill] sm:$0xff]  ;;  %v10028_v6 = vld [vmem:[#allocation33_spill] sm:$0xff] }
 0x26a   : > { %v2103_v34 = vmul.f32 1.442695, %v2072_v13  ;;  %v2105_v61 = vmul.f32 1.442695, %v2073_v17  ;;  %v2849_v33 = vrot.slane %v2847_v45, 5  ;;  %v2852_v59 = vrot.slane %v2850_v37, 6 }
 0x26b   : > { %5738 = vrot.lane.b32.xlu1 %v10024_v0, %s6309_s11  ;;  %v3964_v27 = vpack.c.b16 %v3944_v21, %v3943_v14  ;;  %v2870_v63 = vrot.slane %v2868_v9, 6  ;;  %v2616_v26 = vadd.f32 %v5655_v5, %v2472_v12  ;;  %v10027_v55 = vor.u32 %v10025_v62, %v10026_v57  ;;  %v10030_v45 = vld [vmem:[#allocation54_spill] sm:$0xff]  ;;  %v10031_v9 = vld [vmem:[#allocation23_spill] sm:$0xff] }
 0x26c   : > { %5881 = vpow2.f32 %v2103_v34  ;;  %v10029_v0 = vrot.slane %v10028_v6, 4  ;;  %v7937_v13 = vor.u32 %v2842_v23, %v2839_v50  ;;  %v2862_v17 = vor.u32 %v2861_v19, %v2858_v48  ;;  %v10038_v14 = vld [vmem:[#allocation11_spill] sm:$0xff] }
 0x26d   : > { %v5878_v47 = vpop.eup %5877  ;;  %5883 = vpow2.f32 %v2105_v61  ;;  %v5747_v37 = vpack.i.bf16 %v7898_v38, %v10030_v45  ;;  %v2830_v12 = vshll.u32 %v10016_v8, 16  ;;  %v2853_v50 = vor.u32 %v2852_v59, %v2849_v33 }
 0x26e   : > { %v1794_v53 = vsel %vm6921_vm6, %v10029_v0, %v10027_v55  ;;  %v5880_v1 = vpop.eup %5879  ;;  %v2205_v21 = vmul.f32 %v5878_v47, %v7836_v29  ;;  %v2771_v55 = vshrl.u32 %v7927_v10, 16  ;;  %v2774_v19 = vshll.u32 %v7927_v10, 16 }
 0x26f   : > { %3984 = vrot.lane.b32.xlu2 %v3964_v27, %s6311_s26  ;;  %v2206_v34 = vmul.f32 %v5880_v1, %v7839_v39  ;;  %v2023_v48 = vunpack.c.l.bf16 %v1794_v53  ;;  %v7949_v38 = vor.u32 %v2870_v63, %v2867_v36  ;;  %v7951_v5 = vpack.c.bf16 %v2616_v26, %v2616_v26 }
 0x270   : > { %v2232_v23 = vpack.c.bf16 %v2205_v21, %v2205_v21  ;;  %v2875_v61 = vshrl.u32 %v7868_v40, 16  ;;  %v2863_v27 = vrot.slane %v2862_v17, 4  ;;  %v2845_v39 = vrot.slane %v7937_v13, 4 }
 0x271   : > { %10032 = vst [vmem:[#allocation8_spill] sm:$0xff] %v7951_v5  ;;  %v2233_v47 = vpack.c.bf16 %v2206_v34, %v2206_v34  ;;  %v2878_v33 = vshll.u32 %v7868_v40, 16  ;;  %v5727_v36 = vpack.i.bf16 %v10020_v4, %v9977_v25  ;;  %v1775_v1 = vrot.slane %v7605_v18, 4  ;;  %v685_v4 = vpop.f32.mrf.mxu3 }
 0x272   : > { %v5882_v29 = vpop.eup %5881  ;;  %v3933_v62 = vunpack.c.l.b16 %v2232_v23  ;;  %v2854_v53 = vsel %vm6921_vm6, %v2845_v39, %v2853_v50  ;;  %v7963_v17 = vadd.f32 %v7833_v28, %v2023_v48  ;;  %v2885_v45 = vshrl.u32 %v7951_v5, 16 }
 0x273   : > { %5748 = vrot.lane.b32.xlu1 %v5747_v37, %s6310_s12  ;;  %v5884_v0 = vpop.eup %5883  ;;  %v3934_v59 = vunpack.c.l.b16 %v2233_v47  ;;  %v2153_v63 = vadd.f32 1.0, %v5882_v29  ;;  %v2888_v37 = vshll.u32 %v7951_v5, 16  ;;  %v2877_v34 = vrot.slane %v2875_v61, 5 }
 0x274   : > { %v2154_v26 = vadd.f32 1.0, %v5884_v0  ;;  %v2872_v50 = vsel %vm6921_vm6, %v2863_v27, %v7949_v38  ;;  %v3048_v23 = vunpack.c.l.bf16 %v2854_v53  ;;  %v2880_v18 = vrot.slane %v2878_v33, 6 }
 0x275   : > { %v3959_v21 = vpack.c.b16 %v3934_v59, %v3933_v62  ;;  %5885 = vrcp.f32 %v2153_v63  ;;  %v3049_v48 = vunpack.c.l.bf16 %v2872_v50  ;;  %v2758_v47 = vsel %vm6921_vm6, %v7768_v31, %v7825_v58 }
 0x276   : > { %5887 = vrcp.f32 %v2154_v26  ;;  %v10033_v29 = vrot.slane %v7825_v58, 4  ;;  %v7982_v62 = vadd.f32 %v9938_v20, %v3048_v23  ;;  %v3040_v27 = vunpack.c.l.bf16 %v2758_v47 }
 0x277   : > { %5728 = vrot.lane.b32.xlu2 %v5727_v36, %s6309_s11  ;;  %3974 = vrot.lane.b32.xlu0 %v3959_v21, %s6311_s26  ;;  %v1784_v0 = vsel %vm6921_vm6, %v1775_v1, %v10028_v6  ;;  %v2887_v33 = vrot.slane %v2885_v45, 5  ;;  %v2890_v59 = vrot.slane %v2888_v37, 6  ;;  %v743_v36 = vpack.c.bf16 %v685_v4, %v685_v4 }
 0x278   : > { %v2768_v61 = vsel %vm6921_vm6, %v10033_v29, %v7858_v46  ;;  %v7988_v31 = vadd.f32 %v9938_v20, %v3049_v48  ;;  %v7990_v63 = vrot.slane %v2771_v55, 5  ;;  %v3108_v58 = vsub.f32 0.0, %v7982_v62 }
 0x279   : > { %v3041_v39 = vunpack.c.l.bf16 %v2768_v61  ;;  %v7996_v26 = vadd.f32 %v9938_v20, %v3040_v27  ;;  %v2881_v1 = vor.u32 %v2880_v18, %v2877_v34  ;;  %v2022_v37 = vunpack.c.l.bf16 %v1784_v0  ;;  %v10034_v34 = vld [vmem:[#allocation56_spill] sm:$0xff]  ;;  %v10035_v18 = vld [vmem:[#allocation3_spill] sm:$0xff] }
 0x27a   : > { %v3109_v45 = vsub.f32 0.0, %v7988_v31  ;;  %v2079_v21 = vsub.f32 0.0, %v7963_v17  ;;  %v3149_v50 = vmul.f32 1.442695, %v3108_v58  ;;  %v2891_v48 = vor.u32 %v2890_v59, %v2887_v33 }
 0x27b   : > { %3313 = vrot.lane.b32.xlu1 %v10003_v30, %s6309_s11  ;;  %v7999_v53 = vadd.f32 %v9938_v20, %v3041_v39  ;;  %v5886_v6 = vpop.eup %5885  ;;  %v3100_v30 = vsub.f32 0.0, %v7996_v26  ;;  %v3366_v47 = vunpack.c.l.bf16 %v743_v36  ;;  %v10036_v27 = vpack.i.bf16 %v10034_v34, %v10035_v18 }
 0x27c   : > { %v5888_v55 = vpop.eup %5887  ;;  %v2207_v4 = vmul.f32 %v5886_v6, %v7911_v11  ;;  %v3151_v61 = vmul.f32 1.442695, %v3109_v45  ;;  %5889 = vpow2.f32 %v3149_v50  ;;  %v2873_v11 = vrot.slane %v7949_v38, 4  ;;  %v10037_v6 = vld [vmem:[#allocation17_spill] sm:$0xff]  ;;  %v8028_v50 = vld [vmem:[%s9560_s3] ss:$0 sm:$0xff] }
 0x27d   : > { %v3101_v23 = vsub.f32 0.0, %v7999_v53  ;;  %v2208_v29 = vmul.f32 %v5888_v55, %v7916_v16  ;;  %v3133_v0 = vmul.f32 1.442695, %v3100_v30  ;;  %v2883_v58 = vrot.slane %v2881_v1, 4 }
 0x27e   : > { %v2234_v39 = vpack.c.bf16 %v2207_v4, %v2207_v4  ;;  %v10039_v33 = vpack.i.bf16 %v10037_v6, %v10038_v14  ;;  %5891 = vpow2.f32 %v3151_v61  ;;  %v2776_v16 = vrot.slane %v2774_v19, 6 }
 0x27f   : > { %5743 = vrot.lane.b32.xlu2 %v10036_v27, %s6310_s12  ;;  %v3135_v57 = vmul.f32 1.442695, %v3101_v23  ;;  %v2235_v59 = vpack.c.bf16 %v2208_v29, %v2208_v29  ;;  %5893 = vpow2.f32 %v3133_v0  ;;  %v8019_v45 = vadd.f32 %v7833_v28, %v2022_v37 }
 0x280   : > { %5648 = vrot.lane.b32.xlu0 %v10039_v33, %s6309_s11  ;;  %v3935_v36 = vunpack.c.l.b16 %v2234_v39  ;;  %v2882_v38 = vsel %vm6921_vm6, %v2873_v11, %v2881_v1  ;;  %v2892_v4 = vsel %vm6921_vm6, %v2883_v58, %v2891_v48  ;;  %v10040_v10 = vunpack.c.l.bf16 %v10007_v24 }
 0x281   : > { %v3936_v55 = vunpack.c.l.b16 %v2235_v59  ;;  %5895 = vpow2.f32 %v3135_v57  ;;  %v3050_v37 = vunpack.c.l.bf16 %v2882_v38  ;;  %v3051_v57 = vunpack.c.l.bf16 %v2892_v4 }
 0x282   : > { %v8033_v19 = vadd.f32 %v8028_v50, %v10040_v10  ;;  %v2117_v30 = vmul.f32 1.442695, %v2079_v21  ;;  %v10042_v1 = vunpack.c.l.bf16 %v7578_v51  ;;  %v10044_v48 = vshrl.u32 %v10016_v8, 16  ;;  %v5890_v34 = vpop.eup %5889 }
 0x283   : > { %3393 = vrot.lane.b32.xlu1 %v3366_v47, %s6310_s12  ;;  %v8047_v24 = vrot.slane %v2830_v12, 6  ;;  %v3960_v61 = vpack.c.b16 %v3936_v55, %v3935_v36  ;;  %v10045_v47 = vshrl.u32 %v10031_v9, 16  ;;  %v10046_v21 = vshll.u32 %v10031_v9, 16 }
 0x284   : > { %10041 = vst [vmem:[#allocation40_spill] sm:$0xff] %v8033_v19  ;;  %v8039_v23 = vadd.f32 %v8028_v50, %v10042_v1  ;;  %v8043_v29 = vrot.slane %v10044_v48, 5  ;;  %v8058_v39 = vadd.f32 %v9938_v20, %v3050_v37  ;;  %v8061_v0 = vadd.f32 %v9938_v20, %v3051_v57  ;;  %v5892_v11 = vpop.eup %5891  ;;  %v10047_v37 = vld [vmem:[#allocation93_spill] sm:$0xff]  ;;  %v10049_v57 = vld [vmem:[#allocation91_spill] sm:$0xff] }
 0x285   : > { %v8051_v27 = vrot.slane %v10045_v47, 5  ;;  %v8055_v51 = vrot.slane %v10046_v21, 6  ;;  %v2777_v12 = vor.u32 %v2776_v16, %v7990_v63  ;;  %v5667_v58 = vpack.i.bf16 %v9850_v43, %v9855_v3  ;;  %v5894_v36 = vpop.eup %5893 }
 0x286   : > { %10043 = vst [vmem:[#allocation18_spill] sm:$0xff] %v8039_v23  ;;  %v3189_v33 = vadd.f32 1.0, %v5890_v34  ;;  %v2078_v59 = vsub.f32 0.0, %v8019_v45  ;;  %v3190_v55 = vadd.f32 1.0, %v5892_v11  ;;  %v3110_v9 = vsub.f32 0.0, %v8058_v39 }
 0x287   : > { %v3111_v38 = vsub.f32 0.0, %v8061_v0  ;;  %5897 = vpow2.f32 %v2117_v30  ;;  %v5896_v4 = vpop.eup %5895  ;;  %v3181_v10 = vadd.f32 1.0, %v5894_v36  ;;  %v10048_v63 = vunpack.c.l.bf16 %v10047_v37 }
 0x288   : > { %3976 = vrot.lane.b32.xlu0 %v3960_v61, %s6311_s26  ;;  %5899 = vrcp.f32 %v3189_v33  ;;  %v10050_v1 = vunpack.c.l.bf16 %v10049_v57  ;;  %v3182_v34 = vadd.f32 1.0, %v5896_v4  ;;  %v3153_v47 = vmul.f32 1.442695, %v3110_v9  ;;  %v10053_v57 = vld [vmem:[#allocation88_spill] sm:$0xff] }
 0x289   : > { %v8073_v16 = vadd.f32 %v8028_v50, %v10048_v63  ;;  %5901 = vrcp.f32 %v3190_v55  ;;  %v3155_v21 = vmul.f32 1.442695, %v3111_v38  ;;  %v10051_v11 = vrot.slane %v7858_v46, 4  ;;  %v10052_v46 = vld [vmem:[#allocation84_spill] sm:$0xff] }
 0x28a   : > { %v8078_v48 = vadd.f32 %v8028_v50, %v10050_v1  ;;  %5903 = vrcp.f32 %v3181_v10  ;;  %v2796_v36 = vsel %vm6921_vm6, %v7856_v42, %v7624_v41  ;;  %v2115_v4 = vmul.f32 1.442695, %v2078_v59  ;;  %v10054_v1 = vld [vmem:[#allocation89_spill] sm:$0xff] }
 0x28b   : > { %v1303_v30 = vsub.f32 0.0, %v8073_v16  ;;  %v2778_v33 = vsel %vm6921_vm6, %v10051_v11, %v2777_v12  ;;  %5905 = vrcp.f32 %v3182_v34  ;;  %v3043_v10 = vunpack.c.l.bf16 %v2796_v36  ;;  %v8107_v11 = vpop.permute.xlu2 %5658 }
 0x28c   : > { %v1304_v61 = vsub.f32 0.0, %v8078_v48  ;;  %v3042_v55 = vunpack.c.l.bf16 %v2778_v33  ;;  %5907 = vpow2.f32 %v3153_v47  ;;  %v1888_v12 = vsel %vm6921_vm6, %v10053_v57, %v10052_v46 }
 0x28d   : > { %v1336_v9 = vmul.f32 1.442695, %v1303_v30  ;;  %v5898_v37 = vpop.eup %5897  ;;  %5909 = vpow2.f32 %v3155_v21  ;;  %v10055_v34 = vrot.slane %v10052_v46, 4  ;;  %v8103_v59 = vadd.f32 %v9938_v20, %v3043_v10 }
 0x28e   : > { %v1338_v38 = vmul.f32 1.442695, %v1304_v61  ;;  %v8091_v63 = vadd.f32 %v9938_v20, %v3042_v55  ;;  %v5900_v42 = vpop.eup %5899  ;;  %v2030_v47 = vunpack.c.l.bf16 %v1888_v12  ;;  %v2824_v61 = vor.u32 %v8055_v51, %v8051_v27 }
 0x28f   : > { %v1898_v41 = vsel %vm6921_vm6, %v10055_v34, %v10054_v1  ;;  %5911 = vpow2.f32 %v1336_v9  ;;  %v5902_v30 = vpop.eup %5901  ;;  %v3243_v33 = vmul.f32 %v5900_v42, %v7982_v62  ;;  %v3103_v10 = vsub.f32 0.0, %v8103_v59 }
 0x290   : > { %v2031_v21 = vunpack.c.l.bf16 %v1898_v41  ;;  %5913 = vpow2.f32 %v1338_v38  ;;  %v3102_v36 = vsub.f32 0.0, %v8091_v63  ;;  %v5904_v55 = vpop.eup %5903  ;;  %5668 = vrot.lane.b32.xlu0 %v5667_v58, %s6310_s12  ;;  %v3244_v9 = vmul.f32 %v5902_v30, %v7988_v31 }
 0x291   : > { %v8115_v46 = vadd.f32 %v7833_v28, %v2030_v47  ;;  %5915 = vpow2.f32 %v2115_v4  ;;  %v5906_v57 = vpop.eup %5905  ;;  %v3270_v27 = vpack.c.bf16 %v3243_v33, %v3243_v33  ;;  %v3235_v51 = vmul.f32 %v5904_v55, %v7996_v26 }
 0x292   : > { %v3137_v12 = vmul.f32 1.442695, %v3102_v36  ;;  %v8119_v62 = vadd.f32 %v7833_v28, %v2031_v21  ;;  %v5908_v38 = vpop.eup %5907  ;;  %v3271_v34 = vpack.c.bf16 %v3244_v9, %v3244_v9  ;;  %v3236_v58 = vmul.f32 %v5906_v57, %v7999_v53 }
 0x293   : > { %v3139_v41 = vmul.f32 1.442695, %v3103_v10  ;;  %v2086_v31 = vsub.f32 0.0, %v8115_v46  ;;  %v5910_v42 = vpop.eup %5909  ;;  %v4041_v30 = vunpack.c.l.b16 %v3270_v27  ;;  %v3262_v47 = vpack.c.bf16 %v3235_v51, %v3235_v51 }
 0x294   : > { %v3191_v25 = vadd.f32 1.0, %v5908_v38  ;;  %5917 = vpow2.f32 %v3137_v12  ;;  %v4042_v33 = vunpack.c.l.b16 %v3271_v34  ;;  %v3263_v43 = vpack.c.bf16 %v3236_v58, %v3236_v58  ;;  %v10056_v38 = vld [vmem:[#allocation51_spill] sm:$0xff]  ;;  %v10058_v58 = vld [vmem:[#allocation50_spill] sm:$0xff] }
 0x295   : > { %v5912_v4 = vpop.eup %5911  ;;  %v3192_v26 = vadd.f32 1.0, %v5910_v42  ;;  %5919 = vpow2.f32 %v3139_v41  ;;  %v4033_v21 = vunpack.c.l.b16 %v3262_v47  ;;  %v2087_v9 = vsub.f32 0.0, %v8119_v62 }
 0x296   : > { %v5914_v36 = vpop.eup %5913  ;;  %5921 = vrcp.f32 %v3191_v25  ;;  %v1384_v55 = vadd.f32 1.0, %v5912_v4  ;;  %v4061_v10 = vpack.c.b16 %v4042_v33, %v4041_v30  ;;  %v4034_v57 = vunpack.c.l.b16 %v3263_v43  ;;  %v10060_v33 = vld [vmem:[#allocation97_spill] sm:$0xff] }
 0x297   : > { %v5916_v53 = vpop.eup %5915  ;;  %5923 = vrcp.f32 %v3192_v26  ;;  %v1385_v5 = vadd.f32 1.0, %v5914_v36  ;;  %v2131_v27 = vmul.f32 1.442695, %v2086_v31  ;;  %v2133_v51 = vmul.f32 1.442695, %v2087_v9  ;;  %v8137_v31 = vpop.permute.xlu2 %5663 }
 0x298   : > { %5925 = vrcp.f32 %v1384_v55  ;;  %v2160_v12 = vadd.f32 1.0, %v5898_v37  ;;  %v8126_v34 = vpack.c.bf16 %v10056_v38, %v10056_v38  ;;  %v8130_v41 = vpack.c.bf16 %v10058_v58, %v10058_v58  ;;  %4082 = vrot.lane.b32.xlu2 %v4061_v10, %s6309_s11 }
 0x299   : > { %v4057_v25 = vpack.c.b16 %v4034_v57, %v4033_v21  ;;  %5927 = vrcp.f32 %v1385_v5  ;;  %v1307_v43 = vsub.f32 0.0, %v8033_v19  ;;  %v1308_v30 = vsub.f32 0.0, %v8039_v23  ;;  %v10061_v5 = vld [vmem:[#allocation98_spill] sm:$0xff] }
 0x29a   : > { %10057 = vst [vmem:[#allocation43_spill] sm:$0xff] %v8126_v34  ;;  %v5918_v42 = vpop.eup %5917  ;;  %v2833_v37 = vor.u32 %v8047_v24, %v8043_v29  ;;  %5929 = vpow2.f32 %v2131_v27  ;;  %v1440_v26 = vmul.f32 %v7730_v44, %v10060_v33  ;;  %v1441_v36 = vmul.f32 %v7738_v49, %v10061_v5  ;;  %v10064_v49 = vld [vmem:[#allocation67_spill] sm:$0xff] }
 0x29b   : > { %10059 = vst [vmem:[#allocation41_spill] sm:$0xff] %v8130_v41  ;;  %v5920_v47 = vpop.eup %5919  ;;  %4074 = vrot.lane.b32.xlu0 %v4057_v25, %s6309_s11  ;;  %v3183_v4 = vadd.f32 1.0, %v5918_v42  ;;  %5931 = vpow2.f32 %v2133_v51  ;;  %v2825_v55 = vrot.slane %v2824_v61, 4  ;;  %v2159_v10 = vadd.f32 1.0, %v5916_v53  ;;  %v10063_v25 = vld [vmem:[#allocation68_spill] sm:$0xff] }
 0x29c   : > { %v5922_v21 = vpop.eup %5921  ;;  %v3184_v9 = vadd.f32 1.0, %v5920_v47  ;;  %5933 = vrcp.f32 %v2160_v12  ;;  %v1467_v57 = vpack.c.bf16 %v1440_v26, %v1440_v26  ;;  %v1468_v27 = vpack.c.bf16 %v1441_v36, %v1441_v36  ;;  %v8145_v51 = vpop.permute.xlu1 %4072 }
 0x29d   : > { %v5924_v29 = vpop.eup %5923  ;;  %v3245_v24 = vmul.f32 %v5922_v21, %v8058_v39  ;;  %5935 = vrcp.f32 %v3183_v4  ;;  %v2835_v58 = vrot.slane %v2833_v37, 4  ;;  %10062 = vst [vmem:[#allocation53_spill] sm:$0xff] %v8145_v51  ;;  %v10065_v42 = vor.u32 %v10063_v25, %v10064_v49  ;;  %v10069_v21 = vld [vmem:[#allocation4_spill] sm:$0xff] }
 0x29e   : > { %v5926_v38 = vpop.eup %5925  ;;  %v3246_v44 = vmul.f32 %v5924_v29, %v8061_v0  ;;  %5937 = vrcp.f32 %v3184_v9  ;;  %v10066_v61 = vrot.slane %v7290_v7, 4  ;;  %v5687_v39 = vpack.i.bf16 %v10010_v54, %v9991_v60 }
 0x29f   : > { %v5928_v12 = vpop.eup %5927  ;;  %v1438_v47 = vmul.f32 %v5926_v38, %v8073_v16  ;;  %v8158_v4 = vunpack.c.l.b16 %v1467_v57  ;;  %v8160_v33 = vunpack.c.l.b16 %v1468_v27  ;;  %v3272_v26 = vpack.c.bf16 %v3245_v24, %v3245_v24  ;;  %v8169_v24 = vpop.permute.xlu2 %3978 }
 0x2a0   : > { %v1832_v53 = vsel %vm6921_vm6, %v10066_v61, %v10065_v42  ;;  %v5930_v0 = vpop.eup %5929  ;;  %v3273_v5 = vpack.c.bf16 %v3246_v44, %v3246_v44  ;;  %v1439_v36 = vmul.f32 %v5928_v12, %v8078_v48  ;;  %5939 = vrcp.f32 %v2159_v10  ;;  %10071 = vst [vmem:[#allocation35_spill] sm:$0xff] %v8169_v24 }
 0x2a1   : > { %10067 = vst [vmem:[#allocation75_spill] sm:$0xff] %v8158_v4  ;;  %v5932_v7 = vpop.eup %5931  ;;  %v10070_v9 = vpack.i.bf16 %v10023_v22, %v10069_v21  ;;  %v1465_v29 = vpack.c.bf16 %v1438_v47, %v1438_v47  ;;  %v2167_v25 = vadd.f32 1.0, %v5930_v0  ;;  %v2026_v57 = vunpack.c.l.bf16 %v1832_v53 }
 0x2a2   : > { %10068 = vst [vmem:[#allocation19_spill] sm:$0xff] %v8160_v33  ;;  %v5934_v27 = vpop.eup %5933  ;;  %v4044_v38 = vunpack.c.l.b16 %v3273_v5  ;;  %v1466_v49 = vpack.c.bf16 %v1439_v36, %v1439_v36  ;;  %v2168_v44 = vadd.f32 1.0, %v5932_v7  ;;  %v2834_v48 = vsel %vm6921_vm6, %v2825_v55, %v2833_v37  ;;  %v10074_v5 = vld [vmem:[#allocation77_spill] sm:$0xff]  ;;  %v10075_v36 = vld [vmem:[#allocation78_spill] sm:$0xff] }
 0x2a3   : > { %5758 = vrot.lane.b32.xlu2 %v10070_v9, %s6310_s12  ;;  %v5936_v10 = vpop.eup %5935  ;;  %5688 = vrot.lane.b32.xlu0 %v5687_v39, %s6310_s12  ;;  %v8174_v22 = vunpack.c.l.b16 %v1465_v29  ;;  %5941 = vrcp.f32 %v2167_v25  ;;  %v2844_v42 = vsel %vm6921_vm6, %v2835_v58, %v7937_v13  ;;  %v3046_v61 = vunpack.c.l.bf16 %v2834_v48 }
 0x2a4   : > { %v5938_v53 = vpop.eup %5937  ;;  %v4043_v12 = vunpack.c.l.b16 %v3272_v26  ;;  %v8179_v47 = vunpack.c.l.b16 %v1466_v49  ;;  %v3237_v0 = vmul.f32 %v5936_v10, %v8091_v63  ;;  %5943 = vrcp.f32 %v2168_v44  ;;  %v8194_v9 = vpop.permute.xlu1 %5673  ;;  %v10078_v26 = vld [vmem:[#allocation82_spill] sm:$0xff] }
 0x2a5   : > { %10072 = vst [vmem:[#allocation48_spill] sm:$0xff] %v8174_v22  ;;  %v3238_v37 = vmul.f32 %v5938_v53, %v8103_v59  ;;  %v3047_v55 = vunpack.c.l.bf16 %v2844_v42  ;;  %v8184_v39 = vadd.f32 %v9938_v20, %v3046_v61  ;;  %v1850_v7 = vsel %vm6921_vm6, %v10075_v36, %v10074_v5  ;;  %v10107_v22 = vld [vmem:[#allocation83_spill] sm:$0xff] }
 0x2a6   : > { %10073 = vst [vmem:[#allocation57_spill] sm:$0xff] %v8179_v47  ;;  %v5940_v13 = vpop.eup %5939  ;;  %v1344_v58 = vmul.f32 1.442695, %v1307_v43  ;;  %v3264_v63 = vpack.c.bf16 %v3237_v0, %v3237_v0  ;;  %v2027_v59 = vunpack.c.l.bf16 %v1850_v7  ;;  %v4062_v29 = vpack.c.b16 %v4044_v38, %v4043_v12 }
 0x2a7   : > { %v3265_v25 = vpack.c.bf16 %v3238_v37, %v3238_v37  ;;  %v2214_v49 = vmul.f32 %v5934_v27, %v7963_v17  ;;  %v8198_v44 = vadd.f32 %v9938_v20, %v3047_v55  ;;  %v3106_v10 = vsub.f32 0.0, %v8184_v39 }
 0x2a8   : > { %v4035_v48 = vunpack.c.l.b16 %v3264_v63  ;;  %v8202_v42 = vadd.f32 %v7833_v28, %v2026_v57  ;;  %v8205_v43 = vadd.f32 %v7833_v28, %v2027_v59  ;;  %v1910_v53 = vshrl.u32 %v8126_v34, 16 }
 0x2a9   : > { %v5942_v61 = vpop.eup %5941  ;;  %v4036_v38 = vunpack.c.l.b16 %v3265_v25  ;;  %v2213_v17 = vmul.f32 %v5940_v13, %v8019_v45  ;;  %v3107_v27 = vsub.f32 0.0, %v8198_v44  ;;  %v1913_v0 = vshll.u32 %v8126_v34, 16  ;;  %v8213_v57 = vpop.permute.xlu2 %5683 }
 0x2aa   : > { %v5944_v12 = vpop.eup %5943  ;;  %v2221_v37 = vmul.f32 %v5942_v61, %v8115_v46  ;;  %v3145_v55 = vmul.f32 1.442695, %v3106_v10  ;;  %v2083_v28 = vsub.f32 0.0, %v8205_v43  ;;  %5945 = vpow2.f32 %v1344_v58 }
 0x2ab   : > { %4084 = vrot.lane.b32.xlu2 %v4062_v29, %s6309_s11  ;;  %v4058_v36 = vpack.c.b16 %v4036_v38, %v4035_v48  ;;  %v2222_v7 = vmul.f32 %v5944_v12, %v8119_v62  ;;  %v2241_v63 = vpack.c.bf16 %v2214_v49, %v2214_v49  ;;  %v1346_v45 = vmul.f32 1.442695, %v1308_v30 }
 0x2ac   : > { %v2248_v13 = vpack.c.bf16 %v2221_v37, %v2221_v37  ;;  %5947 = vpow2.f32 %v3145_v55  ;;  %v2082_v59 = vsub.f32 0.0, %v8202_v42  ;;  %v1919_v29 = vshrl.u32 %v8130_v41, 16  ;;  %v8223_v62 = vpop.permute.xlu1 %5678  ;;  %v10076_v37 = vld [vmem:[#allocation80_spill] sm:$0xff] }
 0x2ad   : > { %4076 = vrot.lane.b32.xlu0 %v4058_v36, %s6309_s11  ;;  %v2249_v46 = vpack.c.bf16 %v2222_v7, %v2222_v7  ;;  %v2240_v25 = vpack.c.bf16 %v2213_v17, %v2213_v17  ;;  %v3147_v10 = vmul.f32 1.442695, %v3107_v27  ;;  %v1912_v61 = vrot.slane %v1910_v53, 5  ;;  %v10080_v53 = vld [vmem:[#allocation85_spill] sm:$0xff] }
 0x2ae   : > { %v1915_v58 = vrot.slane %v1913_v0, 6  ;;  %v1922_v48 = vshll.u32 %v8130_v41, 16  ;;  %v2125_v49 = vmul.f32 1.442695, %v2083_v28  ;;  %v3949_v38 = vunpack.c.l.b16 %v2248_v13 }
 0x2af   : > { %v3950_v30 = vunpack.c.l.b16 %v2249_v46  ;;  %v3942_v12 = vunpack.c.l.b16 %v2241_v63  ;;  %5949 = vpow2.f32 %v3147_v10  ;;  %v10077_v55 = vshll.u32 %v10076_v37, 16  ;;  %v10083_v46 = vld [vmem:[#allocation90_spill] sm:$0xff] }
 0x2b0   : > { %v10079_v54 = vsub.f32 0.0, %v10078_v26  ;;  %5951 = vpow2.f32 %v1346_v45  ;;  %v2123_v17 = vmul.f32 1.442695, %v2082_v59  ;;  %v5946_v27 = vpop.eup %5945  ;;  %v10081_v0 = vshrl.u32 %v10080_v53, 16  ;;  %v10089_v26 = vld [vmem:[#allocation12_spill] sm:$0xff] }
 0x2b1   : > { %v1858_v16 = vrot.slane %v10077_v55, 6  ;;  %v3967_v41 = vpack.c.b16 %v3950_v30, %v3949_v38  ;;  %v3941_v34 = vunpack.c.l.b16 %v2240_v25  ;;  %5953 = vpow2.f32 %v2125_v49  ;;  %v8245_v60 = vpop.permute.xlu2 %3980  ;;  %v10087_v30 = vld [vmem:[#allocation73_spill] sm:$0xff] }
 0x2b2   : > { %v1368_v36 = vmul.f32 1.442695, %v10079_v54  ;;  %v8231_v7 = vrot.slane %v10081_v0, 5  ;;  %v5948_v28 = vpop.eup %5947  ;;  %v10082_v63 = vshll.u32 %v10080_v53, 16  ;;  %v10084_v10 = vshrl.u32 %v10083_v46, 16  ;;  %10086 = vst [vmem:[#allocation49_spill] sm:$0xff] %v8245_v60 }
 0x2b3   : > { %v10085_v54 = vshll.u32 %v10083_v46, 16  ;;  %v1921_v59 = vrot.slane %v1919_v29, 5  ;;  %v1916_v0 = vor.u32 %v1915_v58, %v1912_v61  ;;  %v1924_v38 = vrot.slane %v1922_v48, 6  ;;  %3990 = vrot.lane.b32.xlu2 %v3967_v41, %s6311_s26  ;;  %v10092_v48 = vld [vmem:[#allocation103_spill] sm:$0xff] }
 0x2b4   : > { %v8235_v13 = vrot.slane %v10082_v63, 6  ;;  %v8239_v55 = vrot.slane %v10084_v10, 5  ;;  %v3963_v25 = vpack.c.b16 %v3942_v12, %v3941_v34  ;;  %v3187_v49 = vadd.f32 1.0, %v5948_v28  ;;  %v10088_v63 = vld [vmem:[#allocation55_spill] sm:$0xff]  ;;  %v10090_v10 = vld [vmem:[#allocation81_spill] sm:$0xff] }
 0x2b5   : > { %v8243_v45 = vrot.slane %v10085_v54, 6  ;;  %v1259_v53 = vunpack.c.l.bf16 %v10087_v30  ;;  %v1260_v37 = vunpack.c.l.bf16 %v10088_v63  ;;  %v8252_v20 = vmul.f32 %v10090_v10, %v10089_v26  ;;  %v5950_v46 = vpop.eup %5949  ;;  %v10091_v54 = vld [vmem:[#allocation86_spill] sm:$0xff]  ;;  %v8263_v26 = vpop.permute.xlu1 %5693 }
 0x2b6   : > { %5955 = vpow2.f32 %v2123_v17  ;;  %v8255_v29 = vor.u32 %v1858_v16, %v10091_v54  ;;  %v1388_v58 = vadd.f32 1.0, %v5946_v27  ;;  %3982 = vrot.lane.b32.xlu0 %v3963_v25, %s6311_s26  ;;  %v5952_v34 = vpop.eup %5951  ;;  %v1636_v12 = vpack.c.bf16 %v10092_v48, %v10092_v48 }
 0x2b7   : > { %5957 = vpow2.f32 %v1368_v36  ;;  %v3188_v17 = vadd.f32 1.0, %v5950_v46  ;;  %v5954_v28 = vpop.eup %5953  ;;  %v8267_v30 = vrot.slane %v1916_v0, 4  ;;  %v8269_v36 = vor.u32 %v1924_v38, %v1921_v59  ;;  %v10095_v0 = vld [vmem:[#allocation52_spill] sm:$0xff] }
 0x2b8   : > { %5959 = vrcp.f32 %v3187_v49  ;;  %v8273_v27 = vpack.c.bf16 %v7593_v32, %v7593_v32  ;;  %v10094_v25 = vrot.slane %v7607_v52, 5  ;;  %v5696_v49 = vunpack.i.h.bf16 %v8263_v26  ;;  %v10096_v52 = vld [vmem:[#allocation22_spill] sm:$0xff] }
 0x2b9   : > { %10093 = vst [vmem:[#allocation24_spill] sm:$0xff] %v8267_v30  ;;  %5961 = vrcp.f32 %v3188_v17  ;;  %v8281_v46 = vadd.f32 1.0, %v5952_v34  ;;  %v5712_v59 = vpack.i.bf16 %v10069_v21, %v10035_v18  ;;  %v1948_v54 = vshrl.u32 %v1636_v12, 16  ;;  %v5704_v61 = vpop.permute.xlu2 %5703  ;;  %v10098_v21 = vld [vmem:[#allocation47_spill] sm:$0xff] }
 0x2ba   : > { %v8277_v63 = vrot.slane %v10094_v25, 4  ;;  %5963 = vrcp.f32 %v1388_v58  ;;  %v1951_v48 = vshll.u32 %v1636_v12, 16  ;;  %v2411_v25 = vadd.f32 %v5696_v49, %v10096_v52 }
 0x2bb   : > { %v2164_v16 = vadd.f32 1.0, %v5954_v28  ;;  %v1939_v17 = vshrl.u32 %v8273_v27, 16  ;;  %v1942_v34 = vshll.u32 %v8273_v27, 16  ;;  %v5706_v58 = vunpack.i.h.bf16 %v5704_v61  ;;  %v10099_v28 = vld [vmem:[#allocation37_spill] sm:$0xff] }
 0x2bc   : > { %v5956_v32 = vpop.eup %5955  ;;  %v5705_v41 = vunpack.i.l.bf16 %v5704_v61  ;;  %v5646_v18 = vunpack.i.h.bf16 %v10098_v21  ;;  %v2447_v23 = vpack.c.bf16 %v2411_v25, %v2411_v25  ;;  %v8294_v38 = vadd.f32 %v8028_v50, %v1259_v53  ;;  %v10100_v25 = vld [vmem:[#allocation63_spill] sm:$0xff] }
 0x2bd   : > { %v8288_v10 = vpop.eup %5957  ;;  %v8297_v12 = vadd.f32 %v8028_v50, %v1260_v37  ;;  %v3332_v49 = vadd.f32 %v5706_v58, %v10099_v28  ;;  %v8303_v19 = vrot.slane %v1948_v54, 5  ;;  %v8305_v21 = vrot.slane %v1951_v48, 6  ;;  %v8311_v37 = vpop.permute.xlu1 %5698 }
 0x2be   : > { %10097 = vst [vmem:[#allocation96_spill] sm:$0xff] %v8288_v10  ;;  %v5960_v51 = vpop.eup %5959  ;;  %5713 = vrot.lane.b32.xlu0 %v5712_v59, %s6309_s11  ;;  %v2412_v52 = vadd.f32 %v5705_v41, %v9855_v3  ;;  %v2163_v10 = vadd.f32 1.0, %v5956_v32  ;;  %v8309_v53 = vpack.c.bf16 %v10100_v25, %v10100_v25  ;;  %5965 = vrcp.f32 %v2164_v16 }
 0x2bf   : > { %v3241_v27 = vmul.f32 %v5960_v51, %v8184_v39  ;;  %v5962_v61 = vpop.eup %5961  ;;  %v3344_v58 = vpack.c.bf16 %v3332_v49, %v3332_v49  ;;  %v10103_v39 = vld [vmem:[#allocation6_spill] sm:$0xff]  ;;  %v2483_v32 = vunpack.c.l.bf16 %v2447_v23  ;;  %v5701_v54 = vunpack.i.h.bf16 %v8311_v37 }
 0x2c0   : > { %10101 = vst [vmem:[#allocation95_spill] sm:$0xff] %v8309_v53  ;;  %v8313_v59 = vpop.eup %5963  ;;  %v2448_v28 = vpack.c.bf16 %v2412_v52, %v2412_v52  ;;  %v3242_v3 = vmul.f32 %v5962_v61, %v8198_v44  ;;  %v2401_v41 = vadd.f32 %v5646_v18, %v10103_v39  ;;  %v1315_v48 = vsub.f32 0.0, %v8294_v38 }
 0x2c1   : > { %10102 = vst [vmem:[#allocation31_spill] sm:$0xff] %v8313_v59  ;;  %v3268_v51 = vpack.c.bf16 %v3241_v27, %v3241_v27  ;;  %5967 = vrcp.f32 %v2163_v10  ;;  %v1851_v25 = vrot.slane %v10074_v5, 4  ;;  %v1316_v16 = vsub.f32 0.0, %v8297_v12  ;;  %v5709_v60 = vpop.permute.xlu2 %5708 }
 0x2c2   : > { %v3269_v4 = vpack.c.bf16 %v3242_v3, %v3242_v3  ;;  %v3356_v33 = vunpack.c.l.bf16 %v3344_v58  ;;  %v2484_v59 = vunpack.c.l.bf16 %v2448_v28  ;;  %v2627_v52 = vadd.f32 %v5701_v54, %v2483_v32 }
 0x2c3   : > { %v4039_v49 = vunpack.c.l.b16 %v3268_v51  ;;  %v5711_v27 = vunpack.i.h.bf16 %v5709_v60  ;;  %v5710_v61 = vunpack.i.l.bf16 %v5709_v60  ;;  %v1860_v18 = vsel %vm6921_vm6, %v1851_v25, %v8255_v29  ;;  %v10106_v60 = vld [vmem:[#allocation71_spill] sm:$0xff] }
 0x2c4   : > { %v4040_v44 = vunpack.c.l.b16 %v3269_v4  ;;  %v5966_v23 = vpop.eup %5965  ;;  %v1929_v3 = vshrl.u32 %v8309_v53, 16  ;;  %v1932_v10 = vshll.u32 %v8309_v53, 16  ;;  %v8326_v5 = vpack.c.bf16 %v2627_v52, %v2627_v52 }
 0x2c5   : > { %v1360_v39 = vmul.f32 1.442695, %v1315_v48  ;;  %v2437_v58 = vpack.c.bf16 %v2401_v41, %v2401_v41  ;;  %v2628_v51 = vadd.f32 %v5710_v61, %v2484_v59  ;;  %v8328_v32 = vadd.f32 %v5711_v27, %v3356_v33 }
 0x2c6   : > { %10104 = vst [vmem:[#allocation46_spill] sm:$0xff] %v8326_v5  ;;  %v4060_v28 = vpack.c.b16 %v4040_v44, %v4039_v49  ;;  %v1941_v4 = vrot.slane %v1939_v17, 5  ;;  %v1944_v54 = vrot.slane %v1942_v34, 6  ;;  %v1435_v47 = vmul.f32 %v10107_v22, %v10106_v60 }
 0x2c7   : > { %10105 = vst [vmem:[#allocation36_spill] sm:$0xff] %v8328_v32  ;;  %v1362_v24 = vmul.f32 1.442695, %v1316_v16  ;;  %v5968_v25 = vpop.eup %5967  ;;  %v1954_v30 = vor.u32 %v8305_v21, %v8303_v19  ;;  %v9759_v52 = vrot.slane %v8326_v5, 5  ;;  %v8336_v48 = vpack.c.bf16 %v2628_v51, %v2628_v51  ;;  %v10108_v16 = vld [vmem:[#allocation61_spill] sm:$0xff]  ;;  %v10123_v19 = vld [vmem:[#allocation59_spill] sm:$0xff] }
 0x2c8   : > { %4080 = vrot.lane.b32.xlu0 %v4060_v28, %s6309_s11  ;;  %v2218_v59 = vmul.f32 %v5966_v23, %v8205_v43  ;;  %v1931_v33 = vrot.slane %v1929_v3, 5  ;;  %v1934_v41 = vrot.slane %v1932_v10, 6  ;;  %v1461_v17 = vpack.c.bf16 %v8252_v20, %v8252_v20  ;;  %v10109_v43 = vld [vmem:[#allocation60_spill] sm:$0xff] }
 0x2c9   : > { %5969 = vpow2.f32 %v1360_v39  ;;  %v2473_v22 = vunpack.c.l.bf16 %v2437_v58  ;;  %v3527_v34 = vrot.slane %v9759_v52, 4  ;;  %v1253_v49 = vunpack.c.l.bf16 %v10108_v16 }
 0x2ca   : > { %v2028_v44 = vunpack.c.l.bf16 %v1860_v18  ;;  %v5656_v27 = vunpack.i.h.bf16 %v7918_v2  ;;  %v3528_v61 = vrot.slane %v8336_v48, 5  ;;  %v1462_v28 = vpack.c.bf16 %v1435_v47, %v1435_v47 }
 0x2cb   : > { %5971 = vpow2.f32 %v1362_v24  ;;  %v1254_v23 = vunpack.c.l.bf16 %v10109_v43  ;;  %v2217_v3 = vmul.f32 %v5968_v25, %v8202_v42  ;;  %v2245_v10 = vpack.c.bf16 %v2218_v59, %v2218_v59  ;;  %v8366_v42 = vld [vmem:[%s9560_s3 + $0x1] ss:$0 sm:$0xff]  ;;  %v10114_v59 = vld [vmem:[#allocation72_spill] sm:$0xff] }
 0x2cc   : > { %v1861_v20 = vrot.slane %v8255_v29, 4  ;;  %v1945_v39 = vor.u32 %v1944_v54, %v1941_v4  ;;  %v1935_v58 = vor.u32 %v1934_v41, %v1931_v33  ;;  %v8351_v60 = vsel %vm7518_vm9, %v3527_v34, %v3528_v61  ;;  %v10115_v33 = vld [vmem:[#allocation87_spill] sm:$0xff] }
 0x2cd   : > { %10111 = vst [vmem:[#allocation102_spill] sm:$0xff] %v8351_v60  ;;  %v8353_v18 = vunpack.c.l.b16 %v1461_v17  ;;  %v2617_v2 = vadd.f32 %v5656_v27, %v2473_v22  ;;  %v8356_v16 = vadd.f32 %v8028_v50, %v1253_v49  ;;  %v10113_v24 = vor.u32 %v8235_v13, %v8231_v7  ;;  %v10116_v17 = vld [vmem:[#allocation74_spill] sm:$0xff]  ;;  %v10117_v7 = vld [vmem:[#allocation92_spill] sm:$0xff]  ;;  %v10136_v60 = vld [vmem:[#allocation21_spill] sm:$0xff] }
 0x2ce   : > { %v8369_v29 = vadd.f32 %v8366_v42, %v2028_v44  ;;  %v8371_v25 = vunpack.c.l.b16 %v1462_v28  ;;  %v1436_v41 = vmul.f32 %v10115_v33, %v10114_v59  ;;  %v1437_v13 = vmul.f32 %v10117_v7, %v10116_v17 }
 0x2cf   : > { %10112 = vst [vmem:[#allocation44_spill] sm:$0xff] %v8356_v16  ;;  %v1870_v47 = vsel %vm6921_vm6, %v1861_v20, %v10113_v24  ;;  %v5970_v4 = vpop.eup %5969  ;;  %v10118_v22 = vpack.i.bf16 %v10095_v0, %v10002_v35  ;;  %v8382_v34 = vadd.f32 %v8028_v50, %v1254_v23  ;;  %v2244_v49 = vpack.c.bf16 %v2217_v3, %v2217_v3 }
 0x2d0   : > { %v2029_v54 = vunpack.c.l.bf16 %v1870_v47  ;;  %v3946_v44 = vunpack.c.l.b16 %v2245_v10  ;;  %v2084_v27 = vsub.f32 0.0, %v8369_v29  ;;  %v1927_v43 = vrot.slane %v8269_v36, 4 }
 0x2d1   : > { %5733 = vrot.lane.b32.xlu0 %v10118_v22, %s6310_s12  ;;  %10119 = vst [vmem:[#allocation66_spill] sm:$0xff] %v8382_v34  ;;  %v5972_v61 = vpop.eup %5971  ;;  %v1937_v20 = vrot.slane %v1935_v58, 4  ;;  %v1463_v59 = vpack.c.bf16 %v1436_v41, %v1436_v41  ;;  %v1464_v33 = vpack.c.bf16 %v1437_v13, %v1437_v13  ;;  %v1396_v17 = vadd.f32 1.0, %v5970_v4 }
 0x2d2   : > { %v8386_v28 = vadd.f32 %v8366_v42, %v2029_v54  ;;  %v2127_v47 = vmul.f32 1.442695, %v2084_v27  ;;  %v8391_v50 = vpack.c.bf16 %v2617_v2, %v2617_v2  ;;  %v1936_v3 = vsel %vm6921_vm6, %v1927_v43, %v1935_v58 }
 0x2d3   : > { %v1946_v10 = vsel %vm6921_vm6, %v1937_v20, %v1945_v39  ;;  %v3945_v54 = vunpack.c.l.b16 %v2244_v49  ;;  %v2034_v7 = vunpack.c.l.bf16 %v1936_v3  ;;  %v1397_v22 = vadd.f32 1.0, %v5972_v61 }
 0x2d4   : > { %v2085_v23 = vsub.f32 0.0, %v8386_v28  ;;  %5973 = vpow2.f32 %v2127_v47  ;;  %v2035_v24 = vunpack.c.l.bf16 %v1946_v10  ;;  %v8398_v27 = vunpack.c.l.b16 %v1463_v59 }
 0x2d5   : > { %v8400_v41 = vunpack.c.l.b16 %v1464_v33  ;;  %v10120_v2 = vrot.slane %v7627_v15, 5  ;;  %v3965_v58 = vpack.c.b16 %v3946_v44, %v3945_v54  ;;  %v8408_v13 = vadd.f32 %v8366_v42, %v2034_v7 }
 0x2d6   : > { %v2129_v52 = vmul.f32 1.442695, %v2085_v23  ;;  %5975 = vrcp.f32 %v1396_v17  ;;  %v1309_v39 = vsub.f32 0.0, %v8356_v16  ;;  %v8412_v49 = vadd.f32 %v8366_v42, %v2035_v24  ;;  %v10174_v16 = vld [vmem:[#allocation18_spill] sm:$0xff] }
 0x2d7   : > { %v3479_v4 = vsel %vm7518_vm9, %v8277_v63, %v10120_v2  ;;  %v2894_v15 = vshrl.u32 %v8391_v50, 16  ;;  %v2897_v63 = vshll.u32 %v8391_v50, 16  ;;  %v1310_v44 = vsub.f32 0.0, %v8382_v34 }
 0x2d8   : > { %5977 = vpow2.f32 %v2129_v52  ;;  %v10121_v43 = vrot.slane %v10016_v8, 5  ;;  %v8428_v52 = vrot.slane %v1954_v30, 4  ;;  %v2090_v24 = vsub.f32 0.0, %v8408_v13  ;;  %v10124_v30 = vld [vmem:[#allocation58_spill] sm:$0xff] }
 0x2d9   : > { %5979 = vrcp.f32 %v8281_v46  ;;  %3986 = vrot.lane.b32.xlu0 %v3965_v58, %s6311_s26  ;;  %v10122_v47 = vrot.slane %v7868_v40, 5  ;;  %v2091_v8 = vsub.f32 0.0, %v8412_v49  ;;  %v1348_v23 = vmul.f32 1.442695, %v1309_v39 }
 0x2da   : > { %v8423_v20 = vrot.slane %v10121_v43, 4  ;;  %5981 = vrcp.f32 %v1397_v22  ;;  %v5974_v46 = vpop.eup %5973  ;;  %v2139_v10 = vmul.f32 1.442695, %v2090_v24  ;;  %v10125_v21 = vrot.slane %v10124_v30, 4 }
 0x2db   : > { %v8433_v59 = vrot.slane %v10122_v47, 4  ;;  %v2165_v3 = vadd.f32 1.0, %v5974_v46  ;;  %v2896_v22 = vrot.slane %v2894_v15, 5  ;;  %v2899_v40 = vrot.slane %v2897_v63, 6  ;;  %v10126_v47 = vld [vmem:[#allocation42_spill] sm:$0xff]  ;;  %v10127_v46 = vld [vmem:[#allocation101_spill] sm:$0xff] }
 0x2dc   : > { %v1974_v54 = vsel %vm6921_vm6, %v10125_v21, %v10123_v19  ;;  %v5976_v7 = vpop.eup %5975  ;;  %v5666_v2 = vunpack.i.h.bf16 %v8137_v31  ;;  %v1350_v58 = vmul.f32 1.442695, %v1310_v44  ;;  %v5752_v61 = vpack.i.bf16 %v10095_v0, %v10126_v47  ;;  %v10128_v44 = vld [vmem:[#allocation16_spill] sm:$0xff] }
 0x2dd   : > { %5983 = vrcp.f32 %v2165_v3  ;;  %v3589_v39 = vunpack.c.l.bf16 %v3479_v4  ;;  %v3590_v24 = vunpack.c.l.bf16 %v10127_v46  ;;  %v5676_v17 = vunpack.i.h.bf16 %v8194_v9 }
 0x2de   : > { %v5978_v43 = vpop.eup %5977  ;;  %v5675_v21 = vunpack.i.l.bf16 %v8194_v9  ;;  %v2141_v53 = vmul.f32 1.442695, %v2091_v8  ;;  %v2037_v15 = vunpack.c.l.bf16 %v1974_v54  ;;  %5985 = vpow2.f32 %v2139_v10 }
 0x2df   : > { %v8447_v33 = vpop.eup %5979  ;;  %v2166_v35 = vadd.f32 1.0, %v5978_v43  ;;  %v8452_v32 = vadd.f32 %v10128_v44, %v3589_v39  ;;  %v8455_v0 = vadd.f32 %v10128_v44, %v3590_v24  ;;  %v2900_v4 = vor.u32 %v2899_v40, %v2896_v22  ;;  %v10129_v39 = vld [vmem:[#allocation14_spill] sm:$0xff]  ;;  %v10131_v40 = vld [vmem:[#allocation8_spill] sm:$0xff]  ;;  %v10132_v24 = vld [vmem:[#allocation9_spill] sm:$0xff] }
 0x2e0   : > { %v5982_v63 = vpop.eup %5981  ;;  %v8458_v3 = vadd.f32 %v5666_v2, %v10038_v14  ;;  %v5665_v46 = vunpack.i.l.bf16 %v8137_v31  ;;  %v1450_v9 = vmul.f32 %v5976_v7, %v8294_v38  ;;  %v2408_v22 = vadd.f32 %v5676_v17, %v10129_v39 }
 0x2e1   : > { %5753 = vrot.lane.b32.xlu0 %v5752_v61, %s6309_s11  ;;  %5987 = vrcp.f32 %v2166_v35  ;;  %v3649_v8 = vsub.f32 0.0, %v8452_v32  ;;  %v3650_v10 = vsub.f32 0.0, %v8455_v0  ;;  %v1451_v54 = vmul.f32 %v5982_v63, %v8297_v12 }
 0x2e2   : > { %5989 = vpow2.f32 %v1348_v23  ;;  %v8469_v14 = vadd.f32 %v8366_v42, %v2037_v15  ;;  %v2407_v61 = vadd.f32 %v5675_v21, %v10037_v6  ;;  %v8472_v7 = vrot.slane %v2900_v4, 4 }
 0x2e3   : > { %v5984_v31 = vpop.eup %5983  ;;  %5991 = vpow2.f32 %v2141_v53  ;;  %v3678_v38 = vmul.f32 1.442695, %v3649_v8  ;;  %v3680_v35 = vmul.f32 1.442695, %v3650_v10  ;;  %v2404_v12 = vadd.f32 %v5665_v46, %v10132_v24 }
 0x2e4   : > { %10130 = vst [vmem:[#allocation65_spill] sm:$0xff] %v8469_v14  ;;  %v2219_v63 = vmul.f32 %v5984_v31, %v8369_v29  ;;  %v5986_v43 = vpop.eup %5985  ;;  %v2442_v17 = vpack.c.bf16 %v8458_v3, %v8458_v3  ;;  %v1477_v23 = vpack.c.bf16 %v1450_v9, %v1450_v9  ;;  %v1478_v15 = vpack.c.bf16 %v1451_v54, %v1451_v54 }
 0x2e5   : > { %5993 = vpow2.f32 %v3678_v38  ;;  %v2444_v39 = vpack.c.bf16 %v2408_v22, %v2408_v22  ;;  %v2171_v6 = vadd.f32 1.0, %v5986_v43  ;;  %v2093_v53 = vsub.f32 0.0, %v8469_v14 }
 0x2e6   : > { %5995 = vpow2.f32 %v3680_v35  ;;  %v2443_v4 = vpack.c.bf16 %v2407_v61, %v2407_v61  ;;  %v5695_v8 = vunpack.i.l.bf16 %v8263_v26  ;;  %v8481_v10 = vunpack.c.l.b16 %v1477_v23 }
 0x2e7   : > { %v5988_v21 = vpop.eup %5987  ;;  %v8483_v46 = vunpack.c.l.b16 %v1478_v15  ;;  %v2440_v31 = vpack.c.bf16 %v2404_v12, %v2404_v12  ;;  %v2246_v38 = vpack.c.bf16 %v2219_v63, %v2219_v63  ;;  %5997 = vrcp.f32 %v2171_v6  ;;  %v10135_v63 = vld [vmem:[#allocation20_spill] sm:$0xff] }
 0x2e8   : > { %10133 = vst [vmem:[#allocation33_spill] sm:$0xff] %v8481_v10  ;;  %v5990_v29 = vpop.eup %5989  ;;  %v2220_v3 = vmul.f32 %v5988_v21, %v8386_v28  ;;  %v5686_v54 = vunpack.i.h.bf16 %v8213_v57  ;;  %v5685_v43 = vunpack.i.l.bf16 %v8213_v57  ;;  %5999 = vpow2.f32 %v1350_v58  ;;  %v10137_v10 = vld [vmem:[#allocation10_spill] sm:$0xff] }
 0x2e9   : > { %10134 = vst [vmem:[#allocation54_spill] sm:$0xff] %v8483_v46  ;;  %v5992_v9 = vpop.eup %5991  ;;  %v5681_v26 = vunpack.i.h.bf16 %v8223_v62  ;;  %v5680_v61 = vunpack.i.l.bf16 %v8223_v62  ;;  %v2480_v23 = vunpack.c.l.bf16 %v2444_v39  ;;  %v2479_v28 = vunpack.c.l.bf16 %v2443_v4  ;;  %v3975_v57 = vpop.permute.xlu0 %3974 }
 0x2ea   : > { %v2247_v35 = vpack.c.bf16 %v2220_v3, %v2220_v3  ;;  %v2172_v24 = vadd.f32 1.0, %v5992_v9  ;;  %v2410_v15 = vadd.f32 %v5695_v8, %v10135_v63  ;;  %v2145_v6 = vmul.f32 1.442695, %v2093_v53  ;;  %v10147_v63 = vld [vmem:[#allocation24_spill] sm:$0xff] }
 0x2eb   : > { %v5994_v12 = vpop.eup %5993  ;;  %v3947_v2 = vunpack.c.l.b16 %v2246_v38  ;;  %v8494_v22 = vadd.f32 %v5686_v54, %v10136_v60  ;;  %v8497_v46 = vadd.f32 %v5685_v43, %v10137_v10  ;;  %v10138_v39 = vor.u32 %v8243_v45, %v8239_v55 }
 0x2ec   : > { %v5996_v21 = vpop.eup %5995  ;;  %v3948_v47 = vunpack.c.l.b16 %v2247_v35  ;;  %6001 = vrcp.f32 %v2172_v24  ;;  %v3730_v58 = vadd.f32 1.0, %v5994_v12  ;;  %v10139_v4 = vrot.slane %v10054_v1, 4  ;;  %v10146_v12 = vld [vmem:[#allocation25_spill] sm:$0xff] }
 0x2ed   : > { %v3731_v62 = vadd.f32 1.0, %v5996_v21  ;;  %v5998_v8 = vpop.eup %5997  ;;  %v2623_v3 = vadd.f32 %v5680_v61, %v2479_v28  ;;  %v2624_v38 = vadd.f32 %v5681_v26, %v2480_v23  ;;  %v8508_v60 = vunpack.c.l.bf16 %v2442_v17  ;;  %v10142_v17 = vld [vmem:[#allocation100_spill] sm:$0xff] }
 0x2ee   : > { %v1908_v53 = vsel %vm6921_vm6, %v10139_v4, %v10138_v39  ;;  %v3966_v9 = vpack.c.b16 %v3948_v47, %v3947_v2  ;;  %6003 = vrcp.f32 %v3730_v58  ;;  %v8506_v35 = vpop.eup %5999  ;;  %v2446_v10 = vpack.c.bf16 %v2410_v15, %v2410_v15 }
 0x2ef   : > { %10140 = vst [vmem:[#allocation23_spill] sm:$0xff] %v8506_v35  ;;  %v2225_v54 = vmul.f32 %v5998_v8, %v8408_v13  ;;  %6005 = vrcp.f32 %v3731_v62  ;;  %v8511_v43 = vunpack.c.l.bf16 %v2440_v31  ;;  %v8513_v55 = vadd.f32 1.0, %v5990_v29 }
 0x2f0   : > { %3988 = vrot.lane.b32.xlu0 %v3966_v9, %s6311_s26  ;;  %v2032_v1 = vunpack.c.l.bf16 %v1908_v53  ;;  %6007 = vpow2.f32 %v2145_v6  ;;  %v2445_v45 = vpack.c.bf16 %v8494_v22, %v8494_v22  ;;  %v2441_v47 = vpack.c.bf16 %v8497_v46, %v8497_v46 }
 0x2f1   : > { %10141 = vst [vmem:[#allocation56_spill] sm:$0xff] %v8513_v55  ;;  %v2252_v2 = vpack.c.bf16 %v2225_v54, %v2225_v54  ;;  %v10143_v26 = vrot.slane %v10142_v17, 5  ;;  %v8525_v29 = vpack.c.bf16 %v2623_v3, %v2623_v3  ;;  %v8527_v61 = vpack.c.bf16 %v2624_v38, %v2624_v38 }
 0x2f2   : > { %v6002_v31 = vpop.eup %6001  ;;  %v3592_v23 = vunpack.c.l.bf16 %v10146_v12  ;;  %v2482_v28 = vunpack.c.l.bf16 %v2446_v10  ;;  %v5700_v22 = vunpack.i.l.bf16 %v8311_v37  ;;  %v1926_v15 = vsel %vm6921_vm6, %v10147_v63, %v8269_v36  ;;  %v5649_v21 = vpop.permute.xlu0 %5648  ;;  %v10148_v10 = vld [vmem:[#allocation15_spill] sm:$0xff] }
 0x2f3   : > { %v3486_v13 = vsel %vm7518_vm9, %v8423_v20, %v10143_v26  ;;  %10144 = vst [vmem:[#allocation17_spill] sm:$0xff] %v8525_v29  ;;  %v2226_v46 = vmul.f32 %v6002_v31, %v8412_v49  ;;  %v3953_v20 = vunpack.c.l.b16 %v2252_v2  ;;  %v8543_v39 = vadd.f32 %v8366_v42, %v2032_v1  ;;  %v10149_v26 = vld [vmem:[#allocation7_spill] sm:$0xff] }
 0x2f4   : > { %10145 = vst [vmem:[#allocation11_spill] sm:$0xff] %v8527_v61  ;;  %v3591_v24 = vunpack.c.l.bf16 %v3486_v13  ;;  %v6004_v6 = vpop.eup %6003  ;;  %v8540_v62 = vadd.f32 %v10128_v44, %v3592_v23  ;;  %v5651_v53 = vunpack.i.h.bf16 %v5649_v21  ;;  %v5650_v8 = vunpack.i.l.bf16 %v5649_v21  ;;  %v10150_v13 = vld [vmem:[#allocation5_spill] sm:$0xff] }
 0x2f5   : > { %v6006_v37 = vpop.eup %6005  ;;  %v2253_v4 = vpack.c.bf16 %v2226_v46, %v2226_v46  ;;  %v3784_v49 = vmul.f32 %v6004_v6, %v8452_v32  ;;  %v3593_v54 = vunpack.c.l.bf16 %v10148_v10  ;;  %v10151_v32 = vpack.c.b16 %v8371_v25, %v8353_v18 }
 0x2f6   : > { %v8537_v58 = vadd.f32 %v10128_v44, %v3591_v24  ;;  %v6008_v3 = vpop.eup %6007  ;;  %v3785_v36 = vmul.f32 %v6006_v37, %v8455_v0  ;;  %v3652_v9 = vsub.f32 0.0, %v8540_v62  ;;  %v2403_v1 = vadd.f32 %v5651_v53, %v10149_v26  ;;  %v10155_v26 = vld [vmem:[#allocation35_spill] sm:$0xff] }
 0x2f7   : > { %v3954_v2 = vunpack.c.l.b16 %v2253_v4  ;;  %v3811_v17 = vpack.c.bf16 %v3784_v49, %v3784_v49  ;;  %v2402_v31 = vadd.f32 %v5650_v8, %v10150_v13  ;;  %v4169_v24 = vsel %vm450_vm1, %v10151_v32, %v3975_v57  ;;  %v10152_v49 = vld [vmem:[#allocation45_spill] sm:$0xff]  ;;  %v10153_v8 = vld [vmem:[#allocation62_spill] sm:$0xff]  ;;  %v10157_v13 = vld [vmem:[#allocation48_spill] sm:$0xff] }
 0x2f8   : > { %v3651_v38 = vsub.f32 0.0, %v8537_v58  ;;  %v3812_v12 = vpack.c.bf16 %v3785_v36, %v3785_v36  ;;  %v3684_v0 = vmul.f32 1.442695, %v3652_v9  ;;  %v2951_v46 = vshrl.u32 %v8525_v29, 16 }
 0x2f9   : > { %v2626_v63 = vadd.f32 %v5700_v22, %v2482_v28  ;;  %v3969_v6 = vpack.c.b16 %v3954_v2, %v3953_v20  ;;  %v2438_v21 = vpack.c.bf16 %v2402_v31, %v2402_v31  ;;  %v4125_v37 = vunpack.c.l.b16 %v3811_v17 }
 0x2fa   : > { %v3682_v23 = vmul.f32 1.442695, %v3651_v38  ;;  %v4126_v4 = vunpack.c.l.b16 %v3812_v12  ;;  %v3594_v53 = vunpack.c.l.bf16 %v10152_v49  ;;  %v4210_v18 = vsel %vm4206_vm10, %v4169_v24, %v10153_v8  ;;  %v3977_v28 = vpop.permute.xlu0 %3976 }
 0x2fb   : > { %3994 = vrot.lane.b32.xlu0 %v3969_v6, %s6311_s26  ;;  %v2439_v25 = vpack.c.bf16 %v2403_v1, %v2403_v1  ;;  %v8562_v57 = vadd.f32 %v10128_v44, %v3593_v54  ;;  %v2474_v38 = vunpack.c.l.bf16 %v2438_v21  ;;  %v2033_v22 = vunpack.c.l.bf16 %v1926_v15  ;;  %v10156_v1 = vld [vmem:[#allocation57_spill] sm:$0xff] }
 0x2fc   : > { %6009 = vpow2.f32 %v3682_v23  ;;  %v4151_v36 = vpack.c.b16 %v4126_v4, %v4125_v37  ;;  %v2088_v20 = vsub.f32 0.0, %v8543_v39  ;;  %v2954_v9 = vshll.u32 %v8525_v29, 16  ;;  %v10176_v29 = vld [vmem:[#allocation53_spill] sm:$0xff] }
 0x2fd   : > { %6011 = vpow2.f32 %v3684_v0  ;;  %v2961_v10 = vshrl.u32 %v8527_v61, 16  ;;  %v2964_v2 = vshll.u32 %v8527_v61, 16  ;;  %v8568_v17 = vpack.c.bf16 %v2626_v63, %v2626_v63 }
 0x2fe   : > { %v10158_v31 = vpack.c.b16 %v10156_v1, %v10157_v13  ;;  %v4239_v32 = vsel %vm4235_vm11, %v4210_v18, %v4151_v36  ;;  %v8579_v15 = vadd.f32 %v10128_v44, %v3594_v53  ;;  %v8581_v24 = vadd.f32 1.0, %v6008_v3  ;;  %v10162_v36 = vld [vmem:[#allocation19_spill] sm:$0xff] }
 0x2ff   : > { %10154 = vst [vmem:[#allocation93_spill] sm:$0xff] %v8568_v17  ;;  %v8583_v12 = vunpack.c.l.bf16 %v2445_v45  ;;  %v8585_v23 = vunpack.c.l.bf16 %v2441_v47  ;;  %5235 = vmatmul.msk.bf16.gmra.mxu1 %vm4272_vm12, %v4239_v32  ;;  %v2475_v0 = vunpack.c.l.bf16 %v2439_v25  ;;  %v3653_v63 = vsub.f32 0.0, %v8562_v57  ;;  %v10161_v25 = vld [vmem:[#allocation49_spill] sm:$0xff] }
 0x300   : > { %v8575_v54 = vsel %vm450_vm1, %v10158_v31, %v10155_v26  ;;  %10159 = vst [vmem:[#allocation91_spill] sm:$0xff] %v8581_v24  ;;  %v2953_v21 = vrot.slane %v2951_v46, 5  ;;  %v10160_v37 = vunpack.i.l.bf16 %v8107_v11  ;;  %v8592_v49 = vadd.f32 %v8366_v42, %v2033_v22  ;;  %v10163_v26 = vld [vmem:[#allocation75_spill] sm:$0xff] }
 0x301   : > { %v2135_v53 = vmul.f32 1.442695, %v2088_v20  ;;  %v2956_v8 = vrot.slane %v2954_v9, 6  ;;  %v8594_v45 = vrot.slane %v2961_v10, 5  ;;  %v8596_v47 = vrot.slane %v2964_v2, 6 }
 0x302   : > { %v6010_v6 = vpop.eup %6009  ;;  %v2618_v4 = vadd.f32 %v10160_v37, %v2474_v38  ;;  %v2979_v18 = vshrl.u32 %v8568_v17, 16  ;;  %v10164_v1 = vpack.c.b16 %v10162_v36, %v10163_v26  ;;  %v2982_v38 = vshll.u32 %v8568_v17, 16 }
 0x303   : > { %v6012_v3 = vpop.eup %6011  ;;  %v3732_v22 = vadd.f32 1.0, %v6010_v6  ;;  %v3654_v20 = vsub.f32 0.0, %v8579_v15  ;;  %v2989_v9 = vshrl.u32 %v8326_v5, 16  ;;  %v2992_v10 = vshll.u32 %v8326_v5, 16 }
 0x304   : > { %v8604_v46 = vsel %vm450_vm1, %v10164_v1, %v10161_v25  ;;  %v10165_v2 = vunpack.i.h.bf16 %v8107_v11  ;;  %v3686_v31 = vmul.f32 1.442695, %v3653_v63  ;;  %v8612_v32 = vpack.c.bf16 %v2618_v4, %v2618_v4  ;;  %v8621_v1 = vpop.permute.xlu0 %5668  ;;  %v10167_v63 = vld [vmem:[#allocation64_spill] sm:$0xff] }
 0x305   : > { %v3733_v37 = vadd.f32 1.0, %v6012_v3  ;;  %v2089_v36 = vsub.f32 0.0, %v8592_v49  ;;  %6013 = vpow2.f32 %v2135_v53  ;;  %v8615_v25 = vor.u32 %v2956_v8, %v2953_v21 }
 0x306   : > { %v2619_v13 = vadd.f32 %v10165_v2, %v2475_v0  ;;  %v8619_v26 = vrot.slane %v2979_v18, 5  ;;  %6015 = vrcp.f32 %v3732_v22  ;;  %v8623_v5 = vrot.slane %v2982_v38, 6  ;;  %v8628_v0 = vld [vmem:[%s9560_s3] ss:$0 sm:$0xff]  ;;  %v10169_v22 = vld [vmem:[#allocation40_spill] sm:$0xff] }
 0x307   : > { %6017 = vrcp.f32 %v3733_v37  ;;  %v3688_v11 = vmul.f32 1.442695, %v3654_v20  ;;  %10166 = vst [vmem:[#allocation84_spill] sm:$0xff] %v8628_v0  ;;  %v10168_v21 = vunpack.c.l.bf16 %v10167_v63  ;;  %v8635_v53 = vrot.slane %v2989_v9, 5  ;;  %v10170_v20 = vld [vmem:[#allocation31_spill] sm:$0xff]  ;;  %v10171_v9 = vld [vmem:[#allocation26_spill] sm:$0xff] }
 0x308   : > { %v8637_v3 = vrot.slane %v2992_v10, 6  ;;  %v8639_v8 = vpack.c.bf16 %v2619_v13, %v2619_v13  ;;  %6019 = vpow2.f32 %v3686_v31  ;;  %v2903_v18 = vshrl.u32 %v8612_v32, 16 }
 0x309   : > { %v8633_v4 = vadd.f32 %v8628_v0, %v10168_v21  ;;  %v2906_v38 = vshll.u32 %v8612_v32, 16  ;;  %v1442_v2 = vmul.f32 %v10170_v20, %v10169_v22  ;;  %v2137_v37 = vmul.f32 1.442695, %v2089_v36 }
 0x30a   : > { %v5671_v21 = vunpack.i.h.bf16 %v8621_v1  ;;  %6021 = vpow2.f32 %v3688_v11  ;;  %v10172_v6 = vunpack.c.l.bf16 %v10171_v9  ;;  %v10173_v31 = vpack.c.b16 %v8400_v41, %v8398_v27 }
 0x30b   : > { %v6014_v13 = vpop.eup %6013  ;;  %v1443_v22 = vmul.f32 %v8447_v33, %v10174_v16  ;;  %v10175_v36 = vrot.slane %v10131_v40, 5  ;;  %v1311_v20 = vsub.f32 0.0, %v8633_v4  ;;  %v2916_v63 = vshll.u32 %v8639_v8, 16 }
 0x30c   : > { %v8650_v10 = vadd.f32 %v8628_v0, %v10172_v6  ;;  %v4172_v34 = vsel %vm450_vm1, %v10173_v31, %v3977_v28  ;;  %v6016_v9 = vpop.eup %6015  ;;  %v2913_v6 = vshrl.u32 %v8639_v8, 16  ;;  %6023 = vpow2.f32 %v2137_v37 }
 0x30d   : > { %v3499_v11 = vsel %vm7518_vm9, %v8433_v59, %v10175_v36  ;;  %v6018_v41 = vpop.eup %6017  ;;  %v2905_v28 = vrot.slane %v2903_v18, 5  ;;  %v2908_v31 = vrot.slane %v2906_v38, 6  ;;  %v3786_v16 = vmul.f32 %v6016_v9, %v8537_v58 }
 0x30e   : > { %v1469_v33 = vpack.c.bf16 %v1442_v2, %v1442_v2  ;;  %v6020_v40 = vpop.eup %6019  ;;  %v3787_v59 = vmul.f32 %v6018_v41, %v8540_v62  ;;  %v2622_v36 = vadd.f32 %v5671_v21, %v8508_v60  ;;  %v1312_v61 = vsub.f32 0.0, %v8650_v10  ;;  %v8674_v2 = vpop.permute.xlu0 %4074 }
 0x30f   : > { %v3813_v0 = vpack.c.bf16 %v3786_v16, %v3786_v16  ;;  %v4212_v27 = vsel %vm4206_vm10, %v4172_v34, %v10176_v29  ;;  %v1470_v37 = vpack.c.bf16 %v1443_v22, %v1443_v22  ;;  %v1352_v14 = vmul.f32 1.442695, %v1311_v20 }
 0x310   : > { %v6022_v18 = vpop.eup %6021  ;;  %v2915_v38 = vrot.slane %v2913_v6, 5  ;;  %v2918_v35 = vrot.slane %v2916_v63, 6  ;;  %v3814_v58 = vpack.c.bf16 %v3787_v59, %v3787_v59  ;;  %v10177_v9 = vrot.slane %v8612_v32, 5 }
 0x311   : > { %v10178_v62 = vrot.slane %v8391_v50, 9  ;;  %v2909_v21 = vor.u32 %v2908_v31, %v2905_v28  ;;  %v3734_v41 = vadd.f32 1.0, %v6020_v40  ;;  %v8682_v16 = vunpack.c.l.b16 %v1469_v33 }
 0x312   : > { %v2169_v34 = vadd.f32 1.0, %v6014_v13  ;;  %v6024_v29 = vpop.eup %6023  ;;  %v4127_v22 = vunpack.c.l.b16 %v3813_v0  ;;  %v4128_v20 = vunpack.c.l.b16 %v3814_v58  ;;  %v8684_v6 = vpack.c.bf16 %v2622_v36, %v2622_v36 }
 0x313   : > { %v3503_v60 = vsel %vm7518_vm9, %v10178_v62, %v10177_v9  ;;  %v3735_v63 = vadd.f32 1.0, %v6022_v18  ;;  %6025 = vrcp.f32 %v3734_v41  ;;  %v8686_v59 = vunpack.c.l.b16 %v1470_v37 }
 0x314   : > { %v3595_v17 = vunpack.c.l.bf16 %v3499_v11  ;;  %v3596_v24 = vunpack.c.l.bf16 %v3503_v60  ;;  %v8688_v50 = vor.u32 %v2918_v35, %v2915_v38  ;;  %v4152_v55 = vpack.c.b16 %v4128_v20, %v4127_v22 }
 0x315   : > { %v5670_v28 = vunpack.i.l.bf16 %v8621_v1  ;;  %6027 = vrcp.f32 %v3735_v63  ;;  %v3895_v13 = vpack.c.b16 %v8686_v59, %v8682_v16  ;;  %v2170_v33 = vadd.f32 1.0, %v6024_v29  ;;  %v4079_v59 = vpop.permute.xlu1 %4078 }
 0x316   : > { %v8694_v0 = vadd.f32 %v10128_v44, %v3595_v17  ;;  %v8697_v31 = vadd.f32 %v10128_v44, %v3596_v24  ;;  %v4241_v40 = vsel %vm4235_vm11, %v4212_v27, %v4152_v55  ;;  %v2941_v11 = vshrl.u32 %v8684_v6, 16 }
 0x317   : > { %v2944_v35 = vshll.u32 %v8684_v6, 16  ;;  %6029 = vrcp.f32 %v2169_v34  ;;  %5236 = vmatmul.msk.bf16.gmra.mxu1 %vm4272_vm12, %v4241_v40  ;;  %v2910_v17 = vsel %vm6921_vm6, %v8472_v7, %v2909_v21  ;;  %v2911_v24 = vrot.slane %v2909_v21, 4  ;;  %v5689_v21 = vpop.permute.xlu0 %5688 }
 0x318   : > { %v3655_v1 = vsub.f32 0.0, %v8694_v0  ;;  %v3656_v36 = vsub.f32 0.0, %v8697_v31  ;;  %v8710_v37 = vor.u32 %v8637_v3, %v8635_v53  ;;  %v2620_v55 = vadd.f32 %v5670_v28, %v8511_v43 }
 0x319   : > { %v3052_v27 = vunpack.c.l.bf16 %v2910_v17  ;;  %v1354_v18 = vmul.f32 1.442695, %v1312_v61  ;;  %v6026_v38 = vpop.eup %6025  ;;  %v2920_v62 = vsel %vm6921_vm6, %v2911_v24, %v8688_v50  ;;  %6031 = vrcp.f32 %v2170_v33  ;;  %v10179_v61 = vld [vmem:[#allocation34_spill] sm:$0xff] }
 0x31a   : > { %v3690_v58 = vmul.f32 1.442695, %v3655_v1  ;;  %v3692_v9 = vmul.f32 1.442695, %v3656_v36  ;;  %v2943_v41 = vrot.slane %v2941_v11, 5  ;;  %v3788_v7 = vmul.f32 %v6026_v38, %v8562_v57 }
 0x31b   : > { %v6028_v60 = vpop.eup %6027  ;;  %v3053_v34 = vunpack.c.l.bf16 %v2920_v62  ;;  %6033 = vpow2.f32 %v1352_v14  ;;  %v2946_v53 = vrot.slane %v2944_v35, 6  ;;  %v8719_v3 = vadd.f32 %v10179_v61, %v3052_v27 }
 0x31c   : > { %v3789_v43 = vmul.f32 %v6028_v60, %v8579_v15  ;;  %6035 = vpow2.f32 %v3690_v58  ;;  %v2959_v22 = vrot.slane %v8615_v25, 4  ;;  %v10180_v20 = vshrl.u32 %v8336_v48, 16 }
 0x31d   : > { %v6030_v29 = vpop.eup %6029  ;;  %v3815_v28 = vpack.c.bf16 %v3788_v7, %v3788_v7  ;;  %6037 = vpow2.f32 %v3692_v9  ;;  %v10181_v57 = vshll.u32 %v8336_v48, 16  ;;  %v5691_v40 = vunpack.i.h.bf16 %v5689_v21 }
 0x31e   : > { %v8724_v63 = vrot.slane %v10180_v20, 5  ;;  %v3816_v14 = vpack.c.bf16 %v3789_v43, %v3789_v43  ;;  %v8731_v15 = vadd.f32 %v10179_v61, %v3053_v34  ;;  %v8733_v11 = vpack.c.bf16 %v2620_v55, %v2620_v55 }
 0x31f   : > { %v8728_v33 = vrot.slane %v10181_v57, 6  ;;  %v4129_v35 = vunpack.c.l.b16 %v3815_v28  ;;  %v3112_v1 = vsub.f32 0.0, %v8719_v3  ;;  %6039 = vpow2.f32 %v1354_v18  ;;  %v6032_v36 = vpop.eup %6031 }
 0x320   : > { %v8738_v17 = vor.u32 %v8623_v5, %v8619_v26  ;;  %v2997_v48 = vrot.slane %v8710_v37, 4  ;;  %v8741_v24 = vor.u32 %v2946_v53, %v2943_v41  ;;  %v4130_v27 = vunpack.c.l.b16 %v3816_v14 }
 0x321   : > { %v6034_v38 = vpop.eup %6033  ;;  %v3505_v58 = vrot.slane %v8639_v8, 5  ;;  %v4214_v55 = vsel %vm4206_vm10, %v8575_v54, %v8674_v2  ;;  %v3113_v9 = vsub.f32 0.0, %v8731_v15  ;;  %v2223_v18 = vmul.f32 %v6030_v29, %v8543_v39 }
 0x322   : > { %v6036_v62 = vpop.eup %6035  ;;  %v3005_v5 = vor.u32 %v8728_v33, %v8724_v63  ;;  %v4153_v26 = vpack.c.b16 %v4130_v27, %v4129_v35  ;;  %v2625_v60 = vadd.f32 %v5691_v40, %v8583_v12  ;;  %v5690_v41 = vunpack.i.l.bf16 %v5689_v21  ;;  %v10183_v27 = vld [vmem:[#allocation70_spill] sm:$0xff] }
 0x323   : > { %v6038_v7 = vpop.eup %6037  ;;  %v10182_v34 = vrot.slane %v8612_v32, 5  ;;  %v3508_v53 = vrot.slane %v8733_v11, 5  ;;  %v3736_v43 = vadd.f32 1.0, %v6036_v62  ;;  %v3157_v54 = vmul.f32 1.442695, %v3112_v1 }
 0x324   : > { %v2949_v2 = vrot.slane %v8741_v24, 4  ;;  %v4243_v39 = vsel %vm4235_vm11, %v4214_v55, %v4153_v26  ;;  %v3737_v29 = vadd.f32 1.0, %v6038_v7  ;;  %v3159_v20 = vmul.f32 1.442695, %v3113_v9  ;;  %v10184_v55 = vld [vmem:[#allocation69_spill] sm:$0xff] }
 0x325   : > { %v3504_v8 = vrot.slane %v10182_v34, 4  ;;  %v6040_v28 = vpop.eup %6039  ;;  %v3507_v57 = vrot.slane %v3505_v58, 4  ;;  %6041 = vrcp.f32 %v3736_v43  ;;  %v2224_v12 = vmul.f32 %v6032_v36, %v8592_v49 }
 0x326   : > { %v2250_v21 = vpack.c.bf16 %v2223_v18, %v2223_v18  ;;  %v8758_v14 = vpack.c.bf16 %v2625_v60, %v2625_v60  ;;  %v2621_v32 = vadd.f32 %v5690_v41, %v8585_v23  ;;  %6043 = vrcp.f32 %v3737_v29 }
 0x327   : > { %v1392_v40 = vadd.f32 1.0, %v6034_v38  ;;  %v3509_v35 = vsel %vm7518_vm9, %v3507_v57, %v3508_v53  ;;  %6045 = vpow2.f32 %v3157_v54  ;;  %v2251_v1 = vpack.c.bf16 %v2224_v12, %v2224_v12  ;;  %5237 = vmatmul.msk.bf16.gmra.mxu1 %vm4272_vm12, %v4243_v39 }
 0x328   : > { %v10185_v9 = vor.u32 %v10183_v27, %v10184_v55  ;;  %v10186_v62 = vrot.slane %v10123_v19, 4  ;;  %6047 = vpow2.f32 %v3159_v20  ;;  %v2958_v23 = vsel %vm6921_vm6, %v2949_v2, %v8615_v25 }
 0x329   : > { %v10187_v36 = vor.u32 %v8596_v47, %v8594_v45  ;;  %v1393_v18 = vadd.f32 1.0, %v6040_v28  ;;  %v8781_v26 = vunpack.c.l.b16 %v2250_v21  ;;  %v8783_v19 = vunpack.c.l.b16 %v2251_v1 }
 0x32a   : > { %v8770_v49 = vsel %vm6921_vm6, %v10186_v62, %v10185_v9  ;;  %v3056_v60 = vunpack.c.l.bf16 %v2958_v23  ;;  %v2970_v7 = vshrl.u32 %v8758_v14, 16  ;;  %v8786_v34 = vpack.c.bf16 %v2621_v32, %v2621_v32 }
 0x32b   : > { %v2968_v38 = vsel %vm6921_vm6, %v2959_v22, %v10187_v36  ;;  %6049 = vrcp.f32 %v1392_v40  ;;  %v2038_v25 = vunpack.c.l.bf16 %v8770_v49  ;;  %v6042_v53 = vpop.eup %6041  ;;  %v2973_v45 = vshll.u32 %v8758_v14, 16  ;;  %v4077_v49 = vpop.permute.xlu0 %4076 }
 0x32c   : > { %v3057_v41 = vunpack.c.l.bf16 %v2968_v38  ;;  %v3968_v47 = vpack.c.b16 %v8783_v19, %v8781_v26  ;;  %v8793_v22 = vadd.f32 %v10179_v61, %v3056_v60  ;;  %v6044_v54 = vpop.eup %6043  ;;  %v3790_v2 = vmul.f32 %v6042_v53, %v8694_v0 }
 0x32d   : > { %v3506_v39 = vsel %vm7518_vm9, %v3504_v8, %v3505_v58  ;;  %v3598_v29 = vunpack.c.l.bf16 %v3509_v35  ;;  %6051 = vrcp.f32 %v1393_v18  ;;  %v6046_v20 = vpop.eup %6045  ;;  %v3791_v28 = vmul.f32 %v6044_v54, %v8697_v31 }
 0x32e   : > { %v8796_v43 = vadd.f32 %v10179_v61, %v3057_v41  ;;  %v3116_v57 = vsub.f32 0.0, %v8793_v22  ;;  %v3597_v21 = vunpack.c.l.bf16 %v3506_v39  ;;  %v6048_v32 = vpop.eup %6047  ;;  %v2972_v40 = vrot.slane %v2970_v7, 5 }
 0x32f   : > { %v3817_v1 = vpack.c.bf16 %v3790_v2, %v3790_v2  ;;  %v3193_v27 = vadd.f32 1.0, %v6046_v20  ;;  %v8805_v55 = vadd.f32 %v10128_v44, %v3598_v29  ;;  %v3818_v0 = vpack.c.bf16 %v3791_v28, %v3791_v28 }
 0x330   : > { %v3117_v12 = vsub.f32 0.0, %v8796_v43  ;;  %v3194_v9 = vadd.f32 1.0, %v6048_v32  ;;  %v3165_v58 = vmul.f32 1.442695, %v3116_v57  ;;  %v2975_v62 = vrot.slane %v2973_v45, 6 }
 0x331   : > { %v6050_v35 = vpop.eup %6049  ;;  %6053 = vrcp.f32 %v3193_v27  ;;  %v8808_v31 = vadd.f32 %v10128_v44, %v3597_v21  ;;  %v3658_v23 = vsub.f32 0.0, %v8805_v55  ;;  %v4131_v36 = vunpack.c.l.b16 %v3817_v1 }
 0x332   : > { %v3167_v8 = vmul.f32 1.442695, %v3117_v12  ;;  %v4132_v38 = vunpack.c.l.b16 %v3818_v0  ;;  %6055 = vrcp.f32 %v3194_v9  ;;  %v3006_v18 = vsel %vm6921_vm6, %v2997_v48, %v3005_v5 }
 0x333   : > { %v6052_v60 = vpop.eup %6051  ;;  %6057 = vpow2.f32 %v3165_v58  ;;  %v3657_v41 = vsub.f32 0.0, %v8808_v31  ;;  %v3696_v7 = vmul.f32 1.442695, %v3658_v23  ;;  %v3060_v53 = vunpack.c.l.bf16 %v3006_v18 }
 0x334   : > { %v4216_v45 = vsel %vm4206_vm10, %v8604_v46, %v4077_v49  ;;  %v4154_v54 = vpack.c.b16 %v4132_v38, %v4131_v36  ;;  %6059 = vpow2.f32 %v3167_v8  ;;  %v1446_v2 = vmul.f32 %v6050_v35, %v8633_v4 }
 0x335   : > { %v3694_v39 = vmul.f32 1.442695, %v3657_v41  ;;  %6061 = vpow2.f32 %v3696_v7  ;;  %v8823_v63 = vadd.f32 %v10179_v61, %v3060_v53  ;;  %v1964_v33 = vsel %vm6921_vm6, %v8428_v52, %v10124_v30 }
 0x336   : > { %v2987_v48 = vrot.slane %v8738_v17, 4  ;;  %v2976_v5 = vor.u32 %v2975_v62, %v2972_v40  ;;  %v4245_v29 = vsel %vm4235_vm11, %v4216_v45, %v4154_v54  ;;  %v2036_v46 = vunpack.c.l.bf16 %v1964_v33 }
 0x337   : > { %v6054_v20 = vpop.eup %6053  ;;  %v2923_v28 = vshrl.u32 %v8733_v11, 16  ;;  %6063 = vpow2.f32 %v3694_v39  ;;  %v3120_v4 = vsub.f32 0.0, %v8823_v63  ;;  %v1447_v57 = vmul.f32 %v6052_v60, %v8650_v10  ;;  %5238 = vmatmul.msk.bf16.gmra.mxu1 %vm4272_vm12, %v4245_v29 }
 0x338   : > { %v6056_v12 = vpop.eup %6055  ;;  %v3247_v21 = vmul.f32 %v6054_v20, %v8719_v3  ;;  %v8836_v32 = vadd.f32 %v8366_v42, %v2036_v46  ;;  %v1473_v52 = vpack.c.bf16 %v1446_v2, %v1446_v2  ;;  %v8839_v30 = vadd.f32 %v8366_v42, %v2038_v25 }
 0x339   : > { %v6058_v40 = vpop.eup %6057  ;;  %v2932_v1 = vshrl.u32 %v8786_v34, 16  ;;  %v2935_v27 = vshll.u32 %v8786_v34, 16  ;;  %v3248_v0 = vmul.f32 %v6056_v12, %v8731_v15  ;;  %v3173_v10 = vmul.f32 1.442695, %v3120_v4 }
 0x33a   : > { %v6060_v9 = vpop.eup %6059  ;;  %v2977_v58 = vrot.slane %v2976_v5, 4  ;;  %v3274_v3 = vpack.c.bf16 %v3247_v21, %v3247_v21  ;;  %v3197_v8 = vadd.f32 1.0, %v6058_v40  ;;  %v1474_v35 = vpack.c.bf16 %v1447_v57, %v1447_v57  ;;  %v10188_v21 = vld [vmem:[#allocation56_spill] sm:$0xff] }
 0x33b   : > { %v6062_v62 = vpop.eup %6061  ;;  %v3275_v49 = vpack.c.bf16 %v3248_v0, %v3248_v0  ;;  %v3198_v23 = vadd.f32 1.0, %v6060_v9  ;;  %6065 = vpow2.f32 %v3173_v10  ;;  %v2092_v42 = vsub.f32 0.0, %v8836_v32  ;;  %v10190_v0 = vld [vmem:[#allocation94_spill] sm:$0xff]  ;;  %v10191_v9 = vld [vmem:[#allocation96_spill] sm:$0xff] }
 0x33c   : > { %v2926_v25 = vshll.u32 %v8733_v11, 16  ;;  %v4045_v36 = vunpack.c.l.b16 %v3274_v3  ;;  %6067 = vrcp.f32 %v3197_v8  ;;  %v8847_v38 = vunpack.c.l.b16 %v1473_v52 }
 0x33d   : > { %v6064_v18 = vpop.eup %6063  ;;  %v4046_v15 = vunpack.c.l.b16 %v3275_v49  ;;  %6069 = vrcp.f32 %v3198_v23  ;;  %v3739_v60 = vadd.f32 1.0, %v6062_v62  ;;  %v2143_v41 = vmul.f32 1.442695, %v2092_v42 }
 0x33e   : > { %v2934_v7 = vrot.slane %v2932_v1, 5  ;;  %v2937_v53 = vrot.slane %v2935_v27, 6  ;;  %v3738_v45 = vadd.f32 1.0, %v6064_v18  ;;  %v2094_v54 = vsub.f32 0.0, %v8839_v30  ;;  %v10189_v27 = vld [vmem:[#allocation91_spill] sm:$0xff] }
 0x33f   : > { %v4063_v2 = vpack.c.b16 %v4046_v15, %v4045_v36  ;;  %6071 = vrcp.f32 %v3739_v60  ;;  %v8850_v39 = vunpack.c.l.b16 %v1474_v35  ;;  %v2986_v11 = vsel %vm6921_vm6, %v2977_v58, %v8738_v17 }
 0x340   : > { %v2925_v33 = vrot.slane %v2923_v28, 5  ;;  %v2928_v5 = vrot.slane %v2926_v25, 6  ;;  %6073 = vrcp.f32 %v3738_v45  ;;  %v2996_v29 = vsel %vm6921_vm6, %v2987_v48, %v8710_v37 }
 0x341   : > { %v6066_v46 = vpop.eup %6065  ;;  %4086 = vrot.lane.b32.xlu0 %v4063_v2, %s6309_s11  ;;  %6075 = vpow2.f32 %v2143_v41  ;;  %v3897_v20 = vpack.c.b16 %v8850_v39, %v8847_v38  ;;  %v3058_v4 = vunpack.c.l.bf16 %v2986_v11  ;;  %v3059_v57 = vunpack.c.l.bf16 %v2996_v29 }
 0x342   : > { %v6068_v12 = vpop.eup %6067  ;;  %6077 = vrcp.f32 %v10188_v21  ;;  %v2938_v17 = vor.u32 %v2937_v53, %v2934_v7  ;;  %v3201_v28 = vadd.f32 1.0, %v6066_v46  ;;  %v2147_v52 = vmul.f32 1.442695, %v2094_v54 }
 0x343   : > { %v6070_v40 = vpop.eup %6069  ;;  %v3251_v1 = vmul.f32 %v6068_v12, %v8793_v22  ;;  %6079 = vrcp.f32 %v10189_v27  ;;  %v8865_v37 = vadd.f32 %v10179_v61, %v3058_v4  ;;  %v8868_v48 = vadd.f32 %v10179_v61, %v3059_v57  ;;  %v3983_v22 = vpop.permute.xlu0 %3982  ;;  %v10192_v12 = vld [vmem:[#allocation23_spill] sm:$0xff] }
 0x344   : > { %v8871_v10 = vadd.f32 1.0, %v10190_v0  ;;  %v8874_v58 = vadd.f32 1.0, %v10191_v9  ;;  %v3252_v3 = vmul.f32 %v6070_v40, %v8796_v43  ;;  %6081 = vrcp.f32 %v3201_v28  ;;  %v10193_v28 = vld [vmem:[#allocation65_spill] sm:$0xff] }
 0x345   : > { %v6072_v8 = vpop.eup %6071  ;;  %v2929_v35 = vor.u32 %v2928_v5, %v2925_v33  ;;  %v3278_v62 = vpack.c.bf16 %v3251_v1, %v3251_v1  ;;  %v3118_v49 = vsub.f32 0.0, %v8865_v37  ;;  %v3119_v23 = vsub.f32 0.0, %v8868_v48 }
 0x346   : > { %v6074_v42 = vpop.eup %6073  ;;  %v2939_v25 = vrot.slane %v2938_v17, 4  ;;  %v3279_v36 = vpack.c.bf16 %v3252_v3, %v3252_v3  ;;  %v3793_v18 = vmul.f32 %v6072_v8, %v8805_v55  ;;  %6083 = vpow2.f32 %v2147_v52 }
 0x347   : > { %v6076_v15 = vpop.eup %6075  ;;  %v4049_v60 = vunpack.c.l.b16 %v3278_v62  ;;  %v3792_v41 = vmul.f32 %v6074_v42, %v8808_v31  ;;  %v3169_v43 = vmul.f32 1.442695, %v3118_v49  ;;  %v2921_v7 = vrot.slane %v8688_v50, 4 }
 0x348   : > { %v8882_v53 = vpop.eup %6077  ;;  %v3512_v45 = vrot.slane %v8684_v6, 5  ;;  %v4050_v54 = vunpack.c.l.b16 %v3279_v36  ;;  %v3820_v2 = vpack.c.bf16 %v3793_v18, %v3793_v18  ;;  %v3171_v11 = vmul.f32 1.442695, %v3119_v23 }
 0x349   : > { %v6080_v33 = vpop.eup %6079  ;;  %3992 = vrot.lane.b32.xlu0 %v3968_v47, %s6311_s26  ;;  %v3819_v55 = vpack.c.bf16 %v3792_v41, %v3792_v41  ;;  %v2173_v5 = vadd.f32 1.0, %v6076_v15  ;;  %6085 = vpow2.f32 %v3169_v43  ;;  %v2930_v31 = vsel %vm6921_vm6, %v2921_v7, %v2929_v35 }
 0x34a   : > { %v6082_v50 = vpop.eup %6081  ;;  %v5225_v29 = vrot.slane %v8786_v34, 9  ;;  %v4181_v6 = vsel %vm450_vm1, %v3895_v13, %v3983_v22  ;;  %v4065_v46 = vpack.c.b16 %v4050_v54, %v4049_v60  ;;  %v4134_v4 = vunpack.c.l.b16 %v3820_v2 }
 0x34b   : > { %v4133_v57 = vunpack.c.l.b16 %v3819_v55  ;;  %v3255_v26 = vmul.f32 %v6082_v50, %v8823_v63  ;;  %6087 = vrcp.f32 %v2173_v5  ;;  %v2948_v19 = vsel %vm6921_vm6, %v2939_v25, %v8741_v24  ;;  %v10194_v63 = vld [vmem:[#allocation17_spill] sm:$0xff]  ;;  %v8910_v9 = vpop.permute.xlu0 %5713 }
 0x34c   : > { %v6084_v47 = vpop.eup %6083  ;;  %v1391_v21 = vadd.f32 1.0, %v10192_v12  ;;  %v3514_v17 = vrot.slane %v3512_v45, 4  ;;  %4090 = vrot.lane.b32.xlu1 %v4065_v46, %s6309_s11  ;;  %6089 = vpow2.f32 %v3171_v11  ;;  %v3054_v16 = vunpack.c.l.bf16 %v2930_v31  ;;  %v10195_v55 = vld [vmem:[#allocation13_spill] sm:$0xff]  ;;  %v10197_v31 = vld [vmem:[#allocation84_spill] sm:$0xff]  ;;  %v10200_v12 = vld [vmem:[#allocation11_spill] sm:$0xff] }
 0x34d   : > { %v4155_v13 = vpack.c.b16 %v4134_v4, %v4133_v57  ;;  %v3282_v34 = vpack.c.bf16 %v3255_v26, %v3255_v26  ;;  %v2228_v52 = vmul.f32 %v6080_v33, %v10193_v28  ;;  %v3055_v40 = vunpack.c.l.bf16 %v2948_v19  ;;  %v8940_v57 = vpop.permute.xlu2 %3984 }
 0x34e   : > { %v3515_v1 = vrot.slane %v10194_v63, 5  ;;  %v3513_v56 = vsel %vm7518_vm9, %v5225_v29, %v3512_v45  ;;  %v4218_v24 = vsel %vm4206_vm10, %v4181_v6, %v4079_v59  ;;  %v8908_v27 = vadd.f32 %v10179_v61, %v3054_v16  ;;  %v10198_v29 = vld [vmem:[#allocation32_spill] sm:$0xff] }
 0x34f   : > { %v6086_v0 = vpop.eup %6085  ;;  %v4247_v3 = vsel %vm4235_vm11, %v4218_v24, %v4155_v13  ;;  %v4053_v8 = vunpack.c.l.b16 %v3282_v34  ;;  %v8914_v35 = vadd.f32 %v10179_v61, %v3055_v40  ;;  %v2175_v22 = vadd.f32 1.0, %v6084_v47 }
 0x350   : > { %6091 = vrcp.f32 %v1391_v21  ;;  %5239 = vmatmul.msk.bf16.gmra.mxu1 %vm4272_vm12, %v4247_v3  ;;  %v3199_v62 = vadd.f32 1.0, %v6086_v0  ;;  %v3114_v49 = vsub.f32 0.0, %v8908_v27  ;;  %v3516_v23 = vsel %vm7518_vm9, %v3514_v17, %v3515_v1 }
 0x351   : > { %v6088_v42 = vpop.eup %6087  ;;  %v4067_v25 = vpack.c.b16 %v4053_v8, %v4053_v8  ;;  %v2255_v36 = vpack.c.bf16 %v2228_v52, %v2228_v52  ;;  %v3115_v18 = vsub.f32 0.0, %v8914_v35  ;;  %v3599_v15 = vunpack.c.l.bf16 %v3513_v56 }
 0x352   : > { %v6090_v60 = vpop.eup %6089  ;;  %v2227_v61 = vmul.f32 %v6088_v42, %v8836_v32  ;;  %6093 = vrcp.f32 %v3199_v62  ;;  %v3161_v41 = vmul.f32 1.442695, %v3114_v49  ;;  %v3600_v43 = vunpack.c.l.bf16 %v3516_v23 }
 0x353   : > { %4094 = vrot.lane.b32.xlu0 %v4067_v25, %s6309_s11  ;;  %v3200_v7 = vadd.f32 1.0, %v6090_v60  ;;  %v3163_v45 = vmul.f32 1.442695, %v3115_v18  ;;  %v8924_v54 = vadd.f32 %v10128_v44, %v3599_v15  ;;  %6095 = vrcp.f32 %v2175_v22  ;;  %v8951_v24 = vpop.permute.xlu0 %4080  ;;  %v10203_v15 = vld [vmem:[#allocation66_spill] sm:$0xff] }
 0x354   : > { %v3517_v2 = vrot.slane %v3515_v1, 4  ;;  %v2254_v11 = vpack.c.bf16 %v2227_v61, %v2227_v61  ;;  %6097 = vpow2.f32 %v3161_v41  ;;  %v8927_v33 = vadd.f32 %v10128_v44, %v3600_v43  ;;  %v10201_v1 = vld [vmem:[#allocation93_spill] sm:$0xff] }
 0x355   : > { %6099 = vrcp.f32 %v3200_v7  ;;  %v3659_v32 = vsub.f32 0.0, %v8924_v54  ;;  %v10196_v5 = vunpack.c.l.bf16 %v10195_v55  ;;  %v10199_v6 = vunpack.c.l.bf16 %v10198_v29 }
 0x356   : > { %v6092_v4 = vpop.eup %6091  ;;  %v3955_v26 = vunpack.c.l.b16 %v2254_v11  ;;  %v3956_v19 = vunpack.c.l.b16 %v2255_v36  ;;  %6101 = vpow2.f32 %v3163_v45  ;;  %v3660_v47 = vsub.f32 0.0, %v8927_v33  ;;  %v10202_v36 = vld [vmem:[#allocation44_spill] sm:$0xff]  ;;  %v8966_v11 = vpop.permute.xlu2 %5728 }
 0x357   : > { %v8933_v50 = vadd.f32 %v10197_v31, %v10196_v5  ;;  %v8938_v46 = vadd.f32 %v10197_v31, %v10199_v6  ;;  %v3518_v21 = vrot.slane %v10200_v12, 5  ;;  %v5226_v17 = vrot.slane %v8758_v14, 9  ;;  %v10204_v6 = vld [vmem:[#allocation76_spill] sm:$0xff] }
 0x358   : > { %v3698_v16 = vmul.f32 1.442695, %v3659_v32  ;;  %v6094_v13 = vpop.eup %6093  ;;  %6103 = vrcp.f32 %v8871_v10  ;;  %v3970_v34 = vpack.c.b16 %v3956_v19, %v3955_v26  ;;  %v3700_v28 = vmul.f32 1.442695, %v3660_v47 }
 0x359   : > { %v1313_v59 = vsub.f32 0.0, %v8933_v50  ;;  %v1314_v52 = vsub.f32 0.0, %v8938_v46  ;;  %v6096_v40 = vpop.eup %6095  ;;  %v3519_v63 = vsel %vm7518_vm9, %v3517_v2, %v3518_v21  ;;  %v3522_v56 = vrot.slane %v10201_v1, 5 }
 0x35a   : > { %v3253_v14 = vmul.f32 %v6094_v13, %v8865_v37  ;;  %6105 = vpow2.f32 %v3698_v16  ;;  %v6098_v0 = vpop.eup %6097  ;;  %3996 = vrot.lane.b32.xlu1 %v3970_v34, %s6311_s26  ;;  %v2229_v37 = vmul.f32 %v6096_v40, %v8839_v30  ;;  %v3601_v25 = vunpack.c.l.bf16 %v3519_v63  ;;  %v10205_v34 = vld [vmem:[#allocation46_spill] sm:$0xff] }
 0x35b   : > { %6107 = vpow2.f32 %v3700_v28  ;;  %v1356_v10 = vmul.f32 1.442695, %v1313_v59  ;;  %v1358_v3 = vmul.f32 1.442695, %v1314_v52  ;;  %v6100_v8 = vpop.eup %6099  ;;  %v3523_v22 = vsel %vm7518_vm9, %v5226_v17, %v3522_v56  ;;  %v8973_v17 = vpop.f32.mrf.mxu1 }
 0x35c   : > { %6109 = vrcp.f32 %v8874_v58  ;;  %v3280_v62 = vpack.c.bf16 %v3253_v14, %v3253_v14  ;;  %v3195_v49 = vadd.f32 1.0, %v6098_v0  ;;  %v6102_v23 = vpop.eup %6101  ;;  %v3254_v42 = vmul.f32 %v6100_v8, %v8868_v48  ;;  %v8980_v40 = vpop.permute.xlu0 %5733 }
 0x35d   : > { %6111 = vpow2.f32 %v1356_v10  ;;  %v1444_v18 = vmul.f32 %v8882_v53, %v10202_v36  ;;  %v1445_v60 = vmul.f32 %v6092_v4, %v10203_v15  ;;  %v3196_v61 = vadd.f32 1.0, %v6102_v23 }
 0x35e   : > { %6113 = vrcp.f32 %v3195_v49  ;;  %v6104_v58 = vpop.eup %6103  ;;  %v3281_v41 = vpack.c.bf16 %v3254_v42, %v3254_v42  ;;  %v4051_v43 = vunpack.c.l.b16 %v3280_v62  ;;  %v3602_v7 = vunpack.c.l.bf16 %v3523_v22  ;;  %v10208_v62 = vld [vmem:[#allocation80_spill] sm:$0xff] }
 0x35f   : > { %6115 = vpow2.f32 %v1358_v3  ;;  %v3524_v2 = vrot.slane %v3522_v56, 4  ;;  %v8964_v48 = vadd.f32 %v10128_v44, %v3601_v25  ;;  %v2256_v55 = vpack.c.bf16 %v2229_v37, %v2229_v37  ;;  %v10207_v3 = vld [vmem:[#allocation82_spill] sm:$0xff] }
 0x360   : > { %v6106_v45 = vpop.eup %6105  ;;  %6117 = vrcp.f32 %v3196_v61  ;;  %v4052_v32 = vunpack.c.l.b16 %v3281_v41  ;;  %v8969_v5 = vadd.f32 %v10128_v44, %v3602_v7  ;;  %v1262_v4 = vunpack.c.l.bf16 %v10204_v6  ;;  %v10210_v7 = vld [vmem:[#allocation102_spill] sm:$0xff] }
 0x361   : > { %v6108_v30 = vpop.eup %6107  ;;  %v3740_v53 = vadd.f32 1.0, %v6106_v45  ;;  %v1471_v26 = vpack.c.bf16 %v1444_v18, %v1444_v18  ;;  %v3661_v47 = vsub.f32 0.0, %v8964_v48  ;;  %v1472_v21 = vpack.c.bf16 %v1445_v60, %v1445_v60  ;;  %v10209_v18 = vld [vmem:[#allocation79_spill] sm:$0xff] }
 0x362   : > { %v6110_v29 = vpop.eup %6109  ;;  %v3741_v19 = vadd.f32 1.0, %v6108_v30  ;;  %v4066_v16 = vpack.c.b16 %v4052_v32, %v4051_v43  ;;  %v3662_v59 = vsub.f32 0.0, %v8969_v5  ;;  %v10206_v28 = vrot.slane %v10205_v34, 5 }
 0x363   : > { %v6112_v12 = vpop.eup %6111  ;;  %6119 = vrcp.f32 %v3740_v53  ;;  %v3702_v1 = vmul.f32 1.442695, %v3661_v47  ;;  %v3957_v0 = vunpack.c.l.b16 %v2256_v55  ;;  %v1454_v8 = vmul.f32 %v6110_v29, %v10207_v3  ;;  %v8995_v55 = vpop.permute.xlu2 %5743 }
 0x364   : > { %v6114_v13 = vpop.eup %6113  ;;  %v3526_v52 = vsel %vm7518_vm9, %v3524_v2, %v10206_v28  ;;  %6121 = vrcp.f32 %v3741_v19  ;;  %v1394_v63 = vadd.f32 1.0, %v6112_v12  ;;  %4092 = vrot.lane.b32.xlu2 %v4066_v16, %s6309_s11  ;;  %v3704_v10 = vmul.f32 1.442695, %v3662_v59  ;;  %v9006_v34 = vpop.f32.mrf.mxu1 }
 0x365   : > { %v6116_v56 = vpop.eup %6115  ;;  %v3249_v14 = vmul.f32 %v6114_v13, %v8908_v27  ;;  %v1261_v49 = vunpack.c.l.bf16 %v10208_v62  ;;  %v3875_v23 = vunpack.c.l.b16 %v1471_v26  ;;  %v3876_v37 = vunpack.c.l.b16 %v1472_v21  ;;  %v9004_v13 = vpop.permute.xlu1 %5718 }
 0x366   : > { %v6118_v22 = vpop.eup %6117  ;;  %v1395_v42 = vadd.f32 1.0, %v6116_v56  ;;  %6123 = vrcp.f32 %v1394_v63  ;;  %v1455_v15 = vmul.f32 %v6104_v58, %v10209_v18  ;;  %v1481_v60 = vpack.c.bf16 %v1454_v8, %v1454_v8  ;;  %v3987_v56 = vpop.permute.xlu0 %3986 }
 0x367   : > { %v3250_v25 = vmul.f32 %v6118_v22, %v8914_v35  ;;  %v3276_v36 = vpack.c.bf16 %v3249_v14, %v3249_v14  ;;  %6125 = vpow2.f32 %v3702_v1  ;;  %v3603_v27 = vunpack.c.l.bf16 %v3526_v52 }
 0x368   : > { %6127 = vrcp.f32 %v1395_v42  ;;  %v3971_v43 = vpack.c.b16 %v3957_v0, %v3957_v0  ;;  %v3604_v45 = vunpack.c.l.bf16 %v10210_v7  ;;  %v1482_v32 = vpack.c.bf16 %v1455_v15, %v1455_v15 }
 0x369   : > { %v6120_v61 = vpop.eup %6119  ;;  %v3277_v41 = vpack.c.bf16 %v3250_v25, %v3250_v25  ;;  %6129 = vpow2.f32 %v3704_v10  ;;  %v8990_v53 = vunpack.c.l.b16 %v1481_v60  ;;  %v8993_v35 = vadd.f32 %v10128_v44, %v3603_v27 }
 0x36a   : > { %v6122_v2 = vpop.eup %6121  ;;  %v3794_v30 = vmul.f32 %v6120_v61, %v8924_v54  ;;  %v4047_v58 = vunpack.c.l.b16 %v3276_v36  ;;  %v8999_v19 = vadd.f32 %v10128_v44, %v3604_v45  ;;  %v3896_v12 = vpack.c.b16 %v3876_v37, %v3875_v23 }
 0x36b   : > { %v4048_v29 = vunpack.c.l.b16 %v3277_v41  ;;  %v3795_v26 = vmul.f32 %v6122_v2, %v8927_v33  ;;  %v9001_v16 = vunpack.c.l.b16 %v1482_v32  ;;  %v3663_v54 = vsub.f32 0.0, %v8993_v35  ;;  %v4083_v27 = vpop.permute.xlu2 %4082 }
 0x36c   : > { %v6124_v47 = vpop.eup %6123  ;;  %v3821_v21 = vpack.c.bf16 %v3794_v30, %v3794_v30  ;;  %3998 = vrot.lane.b32.xlu2 %v3971_v43, %s6311_s26  ;;  %v3664_v63 = vsub.f32 0.0, %v8999_v19  ;;  %v4404_v37 = vrot.slane %v9006_v34, 1  ;;  %v4403_v43 = vrot.slane %v8973_v17, 1  ;;  %s5075_s26 = sshll.u32 %s6290_s18, 4 }
 0x36d   : > { %v6126_v59 = vpop.eup %6125  ;;  %v4064_v28 = vpack.c.b16 %v4048_v29, %v4047_v58  ;;  %v3822_v52 = vpack.c.bf16 %v3795_v26, %v3795_v26  ;;  %v1448_v33 = vmul.f32 %v6124_v47, %v8933_v50  ;;  %v3901_v10 = vpack.c.b16 %v9001_v16, %v8990_v53  ;;  %v5724_v30 = vpop.permute.xlu1 %5723  ;;  %p241_p6 = scmp.lt.s32.totalorder %s5075_s26, 31 }
 0x36e   : > { %v6128_v1 = vpop.eup %6127  ;;  %v4135_v14 = vunpack.c.l.b16 %v3821_v21  ;;  %v3742_v0 = vadd.f32 1.0, %v6126_v59  ;;  %v3706_v3 = vmul.f32 1.442695, %v3663_v54  ;;  %v3708_v42 = vmul.f32 1.442695, %v3664_v63  ;;  %v9044_v29 = vpop.permute.xlu0 %5753 }
 0x36f   : > { %v6130_v8 = vpop.eup %6129  ;;  %4088 = vrot.lane.b32.xlu1 %v4064_v28, %s6309_s11  ;;  %v4136_v22 = vunpack.c.l.b16 %v3822_v52  ;;  %v1449_v62 = vmul.f32 %v6128_v1, %v8938_v46  ;;  %v1475_v23 = vpack.c.bf16 %v1448_v33, %v1448_v33  ;;  %v4184_v50 = vsel %vm450_vm1, %v3896_v12, %v8940_v57  ;;  %s6312_s11 = smov 112   ;;  %s10242_s26 = smov (!%p241_p6, %s5075_s26), 31 }
 0x370   : > { %v3743_v25 = vadd.f32 1.0, %v6130_v8  ;;  %6131 = vrcp.f32 %v3742_v0  ;;  %v4220_v60 = vsel %vm4206_vm10, %v4184_v50, %v8951_v24  ;;  %v9023_v46 = vadd.f32 %v10197_v31, %v1261_v49  ;;  %s244_s18 = sadd.s32 %s5076_s27, %s10242_s26 }
 0x371   : > { %v4156_v36 = vpack.c.b16 %v4136_v22, %v4135_v14  ;;  %v1476_v18 = vpack.c.bf16 %v1449_v62, %v1449_v62  ;;  %v9018_v15 = vunpack.c.l.b16 %v1475_v23  ;;  %6133 = vpow2.f32 %v3706_v3  ;;  %s5077_s28 = sshll.u32 %s244_s18, 3 }
 0x372   : > { %6135 = vrcp.f32 %v3743_v25  ;;  %v9028_v57 = vadd.f32 %v10197_v31, %v1262_v4  ;;  %v1317_v24 = vsub.f32 0.0, %v9023_v46  ;;  %v4405_v31 = vsel %vm816_vm2, %v4403_v43, %v4404_v37  ;;  %s9295_s30 = scalar_lea.vmem %s9562_s5, %s5077_s28 }
 0x373   : > { %v4249_v61 = vsel %vm4235_vm11, %v4220_v60, %v4156_v36  ;;  %v9031_v41 = vunpack.c.l.b16 %v1476_v18  ;;  %6137 = vpow2.f32 %v3708_v42  ;;  %v5725_v21 = vunpack.i.l.bf16 %v5724_v30  ;;  %v9047_v52 = vpop.permute.xlu2 %5758  ;;  %v10212_v36 = vld [vmem:[#allocation29_spill] sm:$0xff] }
 0x374   : > { %5240 = vmatmul.msk.bf16.gmra.mxu1 %vm4272_vm12, %v4249_v61  ;;  %v1318_v49 = vsub.f32 0.0, %v9028_v57  ;;  %v1364_v4 = vmul.f32 1.442695, %v1317_v24  ;;  %v5730_v1 = vunpack.i.l.bf16 %v8966_v11  ;;  %v5726_v14 = vunpack.i.h.bf16 %v5724_v30 }
 0x375   : > { %v3898_v6 = vpack.c.b16 %v9031_v41, %v9018_v15  ;;  %v5715_v23 = vunpack.i.l.bf16 %v8910_v9  ;;  %v10213_v15 = vld [vmem:[#allocation27_spill] sm:$0xff] }
 0x376   : > { %v6132_v7 = vpop.eup %6131  ;;  %v1366_v45 = vmul.f32 1.442695, %v1318_v49  ;;  %6139 = vpow2.f32 %v1364_v4  ;;  %v3329_v18 = vadd.f32 %v5730_v1, %v10212_v36  ;;  %v3327_v60 = vadd.f32 %v5726_v14, %v10213_v15  ;;  %v3989_v41 = vpop.permute.xlu0 %3988 }
 0x377   : > { %v6134_v2 = vpop.eup %6133  ;;  %4443 = vrot.lane.b32.xlu1 %v4405_v31, %s6312_s11  ;;  %v3796_v32 = vmul.f32 %v6132_v7, %v8964_v48  ;;  %v4187_v48 = vsel %vm450_vm1, %v3897_v20, %v3987_v56  ;;  %v10214_v7 = vld [vmem:[#allocation39_spill] sm:$0xff]  ;;  %v4190_v4 = vsel %vm450_vm1, %v3898_v6, %v3989_v41  ;;  %v5745_v1 = vunpack.i.l.bf16 %v8995_v55 }
 0x378   : > { %v6136_v58 = vpop.eup %6135  ;;  %v3744_v26 = vadd.f32 1.0, %v6134_v2  ;;  %6141 = vpow2.f32 %v1366_v45  ;;  %v4222_v42 = vsel %vm4206_vm10, %v4187_v48, %v4083_v27  ;;  %v3333_v31 = vadd.f32 %v5715_v23, %v10214_v7 }
 0x379   : > { %v6138_v47 = vpop.eup %6137  ;;  %v3797_v12 = vmul.f32 %v6136_v58, %v8969_v5  ;;  %v3823_v59 = vpack.c.bf16 %v3796_v32, %v3796_v32  ;;  %v10211_v5 = vld [vmem:[#allocation28_spill] sm:$0xff]  ;;  %v3339_v30 = vpack.c.bf16 %v3327_v60, %v3327_v60 }
 0x37a   : > { %v3745_v54 = vadd.f32 1.0, %v6138_v47  ;;  %6143 = vrcp.f32 %v3744_v26  ;;  %v3328_v0 = vadd.f32 %v5725_v21, %v10211_v5  ;;  %v3341_v26 = vpack.c.bf16 %v3329_v18, %v3329_v18  ;;  %v9091_v18 = vpop.permute.xlu1 %5738 }
 0x37b   : > { %v3824_v28 = vpack.c.bf16 %v3797_v12, %v3797_v12  ;;  %v4137_v8 = vunpack.c.l.b16 %v3823_v59  ;;  %v4085_v47 = vpop.permute.xlu2 %4084  ;;  %v5736_v21 = vunpack.i.h.bf16 %v8980_v40  ;;  %v3345_v48 = vpack.c.bf16 %v3333_v31, %v3333_v31 }
 0x37c   : > { %6145 = vrcp.f32 %v3745_v54  ;;  %v6140_v63 = vpop.eup %6139  ;;  %v4315_v50 = vpop.f32.mrf.mxu1  ;;  %v3340_v61 = vpack.c.bf16 %v3328_v0, %v3328_v0  ;;  %v4224_v59 = vsel %vm4206_vm10, %v4190_v4, %v4085_v47  ;;  %v10216_v0 = vld [vmem:[#allocation43_spill] sm:$0xff]  ;;  %v10218_v4 = vld [vmem:[#allocation36_spill] sm:$0xff] }
 0x37d   : > { %v4138_v33 = vunpack.c.l.b16 %v3824_v28  ;;  %v1398_v22 = vadd.f32 1.0, %v6140_v63  ;;  %v4406_v20 = vrot.slane %v4315_v50, 1  ;;  %v3351_v63 = vunpack.c.l.bf16 %v3339_v30 }
 0x37e   : > { %v6142_v3 = vpop.eup %6141  ;;  %v3352_v32 = vunpack.c.l.bf16 %v3340_v61  ;;  %v9096_v61 = vld [vmem:[%s9560_s3] ss:$0 sm:$0xff] }
 0x37f   : > { %v1399_v25 = vadd.f32 1.0, %v6142_v3  ;;  %v4157_v38 = vpack.c.b16 %v4138_v33, %v4137_v8  ;;  %6147 = vrcp.f32 %v1398_v22  ;;  %v4407_v49 = vsel %vm816_vm2, %v4404_v37, %v4406_v20  ;;  %v10217_v8 = vld [vmem:[#allocation41_spill] sm:$0xff] }
 0x380   : > { %v6144_v62 = vpop.eup %6143  ;;  %4445 = vrot.lane.b32.xlu2 %v4407_v49, %s6312_s11  ;;  %v1265_v3 = vunpack.c.l.bf16 %v10216_v0  ;;  %v1266_v22 = vunpack.c.l.bf16 %v10217_v8  ;;  %v10219_v0 = vld [vmem:[#allocation2_spill] sm:$0xff] }
 0x381   : > { %v3798_v39 = vmul.f32 %v6144_v62, %v8993_v35  ;;  %6149 = vrcp.f32 %v1399_v25  ;;  %v4251_v43 = vsel %vm4235_vm11, %v4222_v42, %v4157_v38  ;;  %v5735_v35 = vunpack.i.l.bf16 %v8980_v40 }
 0x382   : > { %v6146_v56 = vpop.eup %6145  ;;  %v3407_v42 = vadd.f32 %v5736_v21, %v3351_v63  ;;  %v5720_v25 = vunpack.i.l.bf16 %v9004_v13  ;;  %v3357_v38 = vunpack.c.l.bf16 %v3345_v48  ;;  %v9099_v41 = vadd.f32 %v9096_v61, %v1265_v3 }
 0x383   : > { %v3799_v24 = vmul.f32 %v6146_v56, %v8999_v19  ;;  %v3825_v27 = vpack.c.bf16 %v3798_v39, %v3798_v39  ;;  %v5716_v19 = vunpack.i.h.bf16 %v8910_v9  ;;  %v3408_v54 = vadd.f32 %v5735_v35, %v3352_v32  ;;  %v10215_v9 = vld [vmem:[#allocation42_spill] sm:$0xff] }
 0x384   : > { %5241 = vmatmul.msk.bf16.gmra.mxu1 %vm4272_vm12, %v4251_v43  ;;  %v9080_v62 = vpop.f32.mrf.mxu1  ;;  %v3419_v15 = vpack.c.bf16 %v3407_v42, %v3407_v42  ;;  %v9102_v43 = vadd.f32 %v9096_v61, %v1266_v22  ;;  %v1321_v7 = vsub.f32 0.0, %v9099_v41 }
 0x385   : > { %v3826_v45 = vpack.c.bf16 %v3799_v24, %v3799_v24  ;;  %v4139_v2 = vunpack.c.l.b16 %v3825_v27  ;;  %v6148_v58 = vpop.eup %6147  ;;  %v3334_v14 = vadd.f32 %v5716_v19, %v10215_v9  ;;  %v3420_v50 = vpack.c.bf16 %v3408_v54, %v3408_v54 }
 0x386   : > { %v1452_v28 = vmul.f32 %v6148_v58, %v9023_v46  ;;  %v3353_v46 = vunpack.c.l.bf16 %v3341_v26  ;;  %v5721_v24 = vunpack.i.h.bf16 %v9004_v13  ;;  %v3413_v27 = vadd.f32 %v5720_v25, %v3357_v38 }
 0x387   : > { %v4140_v37 = vunpack.c.l.b16 %v3826_v45  ;;  %v6150_v12 = vpop.eup %6149  ;;  %v3346_v56 = vpack.c.bf16 %v3334_v14, %v3334_v14  ;;  %v3532_v60 = vrot.slane %v3420_v50, 5  ;;  %v1322_v31 = vsub.f32 0.0, %v9102_v43 }
 0x388   : > { %v1453_v33 = vmul.f32 %v6150_v12, %v9028_v57  ;;  %v1479_v5 = vpack.c.bf16 %v1452_v28, %v1452_v28  ;;  %4509 = vrot.lane.b32.xlu2 %v9080_v62, %s6313_s13  ;;  %v3409_v20 = vadd.f32 %v5745_v1, %v3353_v46  ;;  %v3424_v45 = vpack.c.bf16 %v10218_v4, %v10218_v4  ;;  %v9124_v28 = vpop.permute.xlu1 %5748 }
 0x389   : > { %v4158_v6 = vpack.c.b16 %v4140_v37, %v4139_v2  ;;  %v3358_v35 = vunpack.c.l.bf16 %v3346_v56  ;;  %v5227_v2 = vrot.slane %v3419_v15, 9  ;;  %v3534_v30 = vrot.slane %v3532_v60, 4  ;;  %v10220_v56 = vld [vmem:[#allocation3_spill] sm:$0xff] }
 0x38a   : > { %v1480_v23 = vpack.c.bf16 %v1453_v33, %v1453_v33  ;;  %v9084_v57 = vunpack.c.l.b16 %v1479_v5  ;;  %v3421_v49 = vpack.c.bf16 %v3409_v20, %v3409_v20  ;;  %v1372_v32 = vmul.f32 1.442695, %v1321_v7 }
 0x38b   : > { %v4253_v40 = vsel %vm4235_vm11, %v4224_v59, %v4158_v6  ;;  %v1374_v19 = vmul.f32 1.442695, %v1322_v31  ;;  %v3425_v58 = vpack.c.bf16 %v3413_v27, %v3413_v27  ;;  %v3414_v13 = vadd.f32 %v5721_v24, %v3358_v35  ;;  %v10221_v31 = vld [vmem:[#allocation38_spill] sm:$0xff] }
 0x38c   : > { %v9087_v39 = vunpack.c.l.b16 %v1480_v23  ;;  %v9110_v26 = vrot.slane %v3421_v49, 5  ;;  %6151 = vpow2.f32 %v1372_v32  ;;  %v9114_v37 = vrot.slane %v3424_v45, 5 }
 0x38d   : > { %6153 = vpow2.f32 %v1374_v19  ;;  %v3533_v12 = vsel %vm7518_vm9, %v5227_v2, %v3532_v60  ;;  %v5731_v54 = vunpack.i.h.bf16 %v8966_v11  ;;  %v3545_v59 = vrot.slane %v3425_v58, 5 }
 0x38e   : > { %v3900_v36 = vpack.c.b16 %v9087_v39, %v9084_v57  ;;  %v3536_v21 = vsel %vm7518_vm9, %v3534_v30, %v9110_v26  ;;  %v3426_v48 = vpack.c.bf16 %v3414_v13, %v3414_v13  ;;  %v3605_v6 = vunpack.c.l.bf16 %v3533_v12 }
 0x38f   : > { %v3606_v33 = vunpack.c.l.bf16 %v3536_v21  ;;  %v3544_v9 = vrot.slane %v9114_v37, 4  ;;  %v5741_v14 = vunpack.i.h.bf16 %v9091_v18  ;;  %v3336_v3 = vadd.f32 %v5731_v54, %v10219_v0 }
 0x390   : > { %v3547_v8 = vrot.slane %v3545_v59, 4  ;;  %v4408_v22 = vrot.slane %v9080_v62, 1  ;;  %v5756_v23 = vunpack.i.h.bf16 %v9044_v29  ;;  %v5755_v46 = vunpack.i.l.bf16 %v9044_v29  ;;  %v3314_v58 = vpop.permute.xlu1 %3313 }
 0x391   : > { %v9135_v38 = vadd.f32 %v10128_v44, %v3605_v6  ;;  %v9138_v20 = vadd.f32 %v10128_v44, %v3606_v33  ;;  %v3337_v15 = vadd.f32 %v5741_v14, %v10220_v56  ;;  %v5740_v60 = vunpack.i.l.bf16 %v9091_v18  ;;  %v10222_v18 = vld [vmem:[#allocation30_spill] sm:$0xff] }
 0x392   : > { %v6152_v1 = vpop.eup %6151  ;;  %v3546_v29 = vsel %vm7518_vm9, %v3544_v9, %v3545_v59  ;;  %v3348_v7 = vpack.c.bf16 %v3336_v3, %v3336_v3  ;;  %v3331_v4 = vadd.f32 %v5756_v23, %v10221_v31  ;;  %v3330_v2 = vadd.f32 %v5755_v46, %v10222_v18  ;;  %v10223_v59 = vld [vmem:[#allocation52_spill] sm:$0xff] }
 0x393   : > { %v6154_v5 = vpop.eup %6153  ;;  %v1402_v11 = vadd.f32 1.0, %v6152_v1  ;;  %v3665_v49 = vsub.f32 0.0, %v9135_v38  ;;  %v3666_v35 = vsub.f32 0.0, %v9138_v20  ;;  %v5746_v19 = vunpack.i.h.bf16 %v8995_v55  ;;  %v10224_v9 = vld [vmem:[#allocation4_spill] sm:$0xff] }
 0x394   : > { %5242 = vmatmul.msk.bf16.gmra.mxu1 %vm4272_vm12, %v4253_v40  ;;  %v9112_v47 = vpop.f32.mrf.mxu1  ;;  %v3548_v40 = vrot.slane %v3426_v48, 5  ;;  %v1403_v42 = vadd.f32 1.0, %v6154_v5  ;;  %v3609_v13 = vunpack.c.l.bf16 %v3546_v29  ;;  %v3349_v54 = vpack.c.bf16 %v3337_v15, %v3337_v15 }
 0x395   : > { %4511 = vrot.lane.b32.xlu0 %v9112_v47, %s6313_s13  ;;  %v4409_v63 = vrot.slane %v9112_v47, 1  ;;  %6155 = vrcp.f32 %v1402_v11  ;;  %v3710_v30 = vmul.f32 1.442695, %v3665_v49  ;;  %v3712_v32 = vmul.f32 1.442695, %v3666_v35 }
 0x396   : > { %6157 = vrcp.f32 %v1403_v42  ;;  %v3549_v27 = vsel %vm7518_vm9, %v3547_v8, %v3548_v40  ;;  %v3335_v48 = vadd.f32 %v5740_v60, %v10223_v59  ;;  %v3360_v33 = vunpack.c.l.bf16 %v3348_v7 }
 0x397   : > { %v4410_v25 = vsel %vm816_vm2, %v4408_v22, %v4409_v63  ;;  %v3610_v12 = vunpack.c.l.bf16 %v3549_v27  ;;  %6159 = vpow2.f32 %v3710_v30  ;;  %v3343_v1 = vpack.c.bf16 %v3331_v4, %v3331_v4 }
 0x398   : > { %6161 = vpow2.f32 %v3712_v32  ;;  %v3338_v14 = vadd.f32 %v3314_v58, %v10224_v9  ;;  %v3342_v5 = vpack.c.bf16 %v3330_v2, %v3330_v2  ;;  %v3416_v3 = vadd.f32 %v5746_v19, %v3360_v33 }
 0x399   : > { %v9162_v8 = vadd.f32 %v10128_v44, %v3609_v13  ;;  %v9165_v22 = vadd.f32 %v10128_v44, %v3610_v12  ;;  %v3361_v11 = vunpack.c.l.bf16 %v3349_v54  ;;  %v3347_v40 = vpack.c.bf16 %v3335_v48, %v3335_v48  ;;  %v9182_v54 = vpop.permute.xlu0 %3994 }
 0x39a   : > { %v5751_v46 = vunpack.i.h.bf16 %v9124_v28  ;;  %v3355_v42 = vunpack.c.l.bf16 %v3343_v1  ;;  %v3350_v15 = vpack.c.bf16 %v3338_v14, %v3338_v14  ;;  %v5750_v27 = vunpack.i.l.bf16 %v9124_v28 }
 0x39b   : > { %v6156_v21 = vpop.eup %6155  ;;  %v5761_v49 = vunpack.i.h.bf16 %v9047_v52  ;;  %v3359_v31 = vunpack.c.l.bf16 %v3347_v40  ;;  %v5760_v4 = vunpack.i.l.bf16 %v9047_v52  ;;  %v3428_v28 = vpack.c.bf16 %v3416_v3, %v3416_v3 }
 0x39c   : > { %v4322_v50 = vpop.f32.mrf.mxu1  ;;  %v6158_v6 = vpop.eup %6157  ;;  %v3417_v30 = vadd.f32 %v5751_v46, %v3361_v11  ;;  %v3362_v58 = vunpack.c.l.bf16 %v3350_v15 }
 0x39d   : > { %v4411_v24 = vrot.slane %v4322_v50, 1  ;;  %4447 = vrot.lane.b32.xlu0 %v4410_v25, %s6312_s11  ;;  %v1457_v55 = vmul.f32 %v6158_v6, %v9102_v43  ;;  %v3669_v50 = vsub.f32 0.0, %v9162_v8  ;;  %v3670_v43 = vsub.f32 0.0, %v9165_v22  ;;  %v6160_v56 = vpop.eup %6159  ;;  %v3991_v46 = vpop.permute.xlu2 %3990 }
 0x39e   : > { %v6162_v29 = vpop.eup %6161  ;;  %v3746_v35 = vadd.f32 1.0, %v6160_v56  ;;  %v3411_v32 = vadd.f32 %v5761_v49, %v3355_v42  ;;  %v3429_v59 = vpack.c.bf16 %v3417_v30, %v3417_v30  ;;  %v10227_v30 = vld [vmem:[#allocation33_spill] sm:$0xff] }
 0x39f   : > { %v4412_v45 = vsel %vm816_vm2, %v4409_v63, %v4411_v24  ;;  %v1456_v63 = vmul.f32 %v6156_v21, %v9099_v41  ;;  %v1484_v23 = vpack.c.bf16 %v1457_v55, %v1457_v55  ;;  %v3718_v7 = vmul.f32 1.442695, %v3669_v50 }
 0x3a0   : > { %4449 = vrot.lane.b32.xlu1 %v4412_v45, %s6312_s11  ;;  %v3747_v18 = vadd.f32 1.0, %v6162_v29  ;;  %6163 = vrcp.f32 %v3746_v35  ;;  %v3720_v19 = vmul.f32 1.442695, %v3670_v43  ;;  %v3415_v21 = vadd.f32 %v5750_v27, %v3359_v31 }
 0x3a1   : > { %v1483_v41 = vpack.c.bf16 %v1456_v63, %v1456_v63  ;;  %v9173_v24 = vunpack.c.l.b16 %v1484_v23  ;;  %v3423_v48 = vpack.c.bf16 %v3411_v32, %v3411_v32  ;;  %v3552_v63 = vrot.slane %v3428_v28, 5 }
 0x3a2   : > { %6165 = vrcp.f32 %v3747_v18  ;;  %v3427_v9 = vpack.c.bf16 %v3415_v21, %v3415_v21  ;;  %v3555_v40 = vrot.slane %v3429_v59, 5  ;;  %v10226_v18 = vld [vmem:[#allocation54_spill] sm:$0xff] }
 0x3a3   : > { %v9171_v60 = vunpack.c.l.b16 %v1483_v41  ;;  %6167 = vpow2.f32 %v3718_v7  ;;  %v5228_v41 = vrot.slane %v3423_v48, 9  ;;  %v3554_v29 = vrot.slane %v3552_v63, 4  ;;  %v10225_v7 = vld [vmem:[#allocation95_spill] sm:$0xff] }
 0x3a4   : > { %v9157_v0 = vpop.f32.mrf.mxu1  ;;  %6169 = vpow2.f32 %v3720_v19  ;;  %v5229_v27 = vrot.slane %v3427_v9, 9 }
 0x3a5   : > { %4579 = vrot.lane.b32.xlu0 %v4410_v25, %s6314_s16  ;;  %v3354_v25 = vunpack.c.l.bf16 %v3342_v5  ;;  %v3902_v2 = vpack.c.b16 %v9173_v24, %v9171_v60  ;;  %v4413_v55 = vrot.slane %v9157_v0, 1 }
 0x3a6   : > { %v6164_v1 = vpop.eup %6163 }
 0x3a7   : > { %v3410_v13 = vadd.f32 %v5760_v4, %v3354_v25  ;;  %v3800_v3 = vmul.f32 %v6164_v1, %v9135_v38  ;;  %v3537_v25 = vrot.slane %v9110_v26, 4  ;;  %v3557_v4 = vrot.slane %v3555_v40, 4 }
 0x3a8   : > { %4581 = vrot.lane.b32.xlu1 %v4412_v45, %s6314_s16  ;;  %v3394_v45 = vpop.permute.xlu1 %3393  ;;  %v6166_v14 = vpop.eup %6165  ;;  %v3543_v26 = vsel %vm7518_vm9, %v5228_v41, %v9114_v37 }
 0x3a9   : > { %v3418_v52 = vadd.f32 %v3394_v45, %v3362_v58  ;;  %v3422_v6 = vpack.c.bf16 %v3410_v13, %v3410_v13  ;;  %v6168_v11 = vpop.eup %6167  ;;  %v3801_v23 = vmul.f32 %v6166_v14, %v9138_v20  ;;  %v3827_v43 = vpack.c.bf16 %v3800_v3, %v3800_v3 }
 0x3aa   : > { %v3750_v56 = vadd.f32 1.0, %v6168_v11  ;;  %v6170_v15 = vpop.eup %6169  ;;  %v1267_v20 = vunpack.c.l.bf16 %v10225_v7  ;;  %v10228_v45 = vpack.c.b16 %v10226_v18, %v10227_v30  ;;  %v3608_v37 = vunpack.c.l.bf16 %v3543_v26 }
 0x3ab   : > { %v3430_v5 = vpack.c.bf16 %v3418_v52, %v3418_v52  ;;  %v3538_v42 = vrot.slane %v3422_v6, 5  ;;  %v3828_v38 = vpack.c.bf16 %v3801_v23, %v3801_v23  ;;  %v3751_v31 = vadd.f32 1.0, %v6170_v15 }
 0x3ac   : > { %v9180_v12 = vpop.f32.mrf.mxu1  ;;  %6171 = vrcp.f32 %v3750_v56  ;;  %v4193_v32 = vsel %vm450_vm1, %v10228_v45, %v3991_v46  ;;  %v4141_v19 = vunpack.c.l.b16 %v3827_v43  ;;  %v3556_v52 = vsel %vm7518_vm9, %v3554_v29, %v3555_v40 }
 0x3ad   : > { %4515 = vrot.lane.b32.xlu2 %v9180_v12, %s6313_s13  ;;  %v4414_v33 = vrot.slane %v9180_v12, 1  ;;  %v3558_v35 = vrot.slane %v3430_v5, 5  ;;  %v4142_v58 = vunpack.c.l.b16 %v3828_v38  ;;  %v3539_v13 = vsel %vm7518_vm9, %v3537_v25, %v3538_v42 }
 0x3ae   : > { %6173 = vrcp.f32 %v3751_v31  ;;  %v9213_v48 = vadd.f32 %v9096_v61, %v1267_v20  ;;  %v3553_v6 = vsel %vm7518_vm9, %v5229_v27, %v3552_v63  ;;  %v3607_v1 = vunpack.c.l.bf16 %v3539_v13 }
 0x3af   : > { %v4415_v50 = vsel %vm816_vm2, %v4413_v55, %v4414_v33  ;;  %v4159_v21 = vpack.c.b16 %v4142_v58, %v4141_v19  ;;  %v3559_v59 = vsel %vm7518_vm9, %v3557_v4, %v3558_v35  ;;  %v3611_v11 = vunpack.c.l.bf16 %v3553_v6 }
 0x3b0   : > { %4513 = vrot.lane.b32.xlu1 %v9157_v0, %s6313_s13  ;;  %v3613_v5 = vunpack.c.l.bf16 %v3559_v59  ;;  %v3612_v40 = vunpack.c.l.bf16 %v3556_v52  ;;  %v1323_v61 = vsub.f32 0.0, %v9213_v48  ;;  %v3640_v41 = vadd.f32 %v10128_v44, %v3607_v1 }
 0x3b1   : > { %v3641_v23 = vadd.f32 %v10128_v44, %v3608_v37 }
 0x3b2   : > { %v6172_v14 = vpop.eup %6171  ;;  %v9226_v46 = vadd.f32 %v10128_v44, %v3613_v5  ;;  %v1376_v15 = vmul.f32 1.442695, %v1323_v61  ;;  %v3645_v25 = vadd.f32 %v10128_v44, %v3612_v40 }
 0x3b3   : > { %v4087_v49 = vpop.permute.xlu0 %4086  ;;  %v3804_v55 = vmul.f32 %v6172_v14, %v9162_v8  ;;  %v3668_v56 = vsub.f32 0.0, %v3641_v23  ;;  %v4199_v8 = vsel %vm450_vm1, %v3901_v10, %v9182_v54 }
 0x3b4   : > { %v4226_v28 = vsel %vm4206_vm10, %v4193_v32, %v4087_v49  ;;  %v6174_v3 = vpop.eup %6173  ;;  %v3672_v20 = vsub.f32 0.0, %v3645_v25  ;;  %v3673_v31 = vsub.f32 0.0, %v9226_v46 }
 0x3b5   : > { %4451 = vrot.lane.b32.xlu2 %v4415_v50, %s6312_s11  ;;  %v4255_v9 = vsel %vm4235_vm11, %v4226_v28, %v4159_v21  ;;  %v3805_v51 = vmul.f32 %v6174_v3, %v9165_v22  ;;  %v3831_v63 = vpack.c.bf16 %v3804_v55, %v3804_v55  ;;  %v3644_v22 = vadd.f32 %v10128_v44, %v3611_v11 }
 0x3b6   : > { %5243 = vmatmul.msk.bf16.gmra.mxu1 %vm4272_vm12, %v4255_v9  ;;  %v3716_v38 = vmul.f32 1.442695, %v3668_v56  ;;  %v3724_v16 = vmul.f32 1.442695, %v3672_v20  ;;  %v3726_v44 = vmul.f32 1.442695, %v3673_v31 }
 0x3b7   : > { %v3832_v43 = vpack.c.bf16 %v3805_v51, %v3805_v51  ;;  %v4145_v29 = vunpack.c.l.b16 %v3831_v63  ;;  %v3671_v7 = vsub.f32 0.0, %v3644_v22 }
 0x3b9   : > { %v4146_v27 = vunpack.c.l.b16 %v3832_v43  ;;  %v3722_v53 = vmul.f32 1.442695, %v3671_v7 }
 0x3bb   : > { %v4161_v4 = vpack.c.b16 %v4146_v27, %v4145_v29 }
 0x3bd   : > { %4583 = vrot.lane.b32.xlu2 %v4415_v50, %s6314_s16  ;;  %v3667_v50 = vsub.f32 0.0, %v3640_v41 }
 0x3be   : > { %v4091_v42 = vpop.permute.xlu1 %4090 }
 0x3bf   : > { %v3714_v49 = vmul.f32 1.442695, %v3667_v50  ;;  %v4230_v35 = vsel %vm4206_vm10, %v4199_v8, %v4091_v42  ;;  %v3993_v42 = vpop.permute.xlu0 %3992 }
 0x3c0   : > { %v4259_v10 = vsel %vm4235_vm11, %v4230_v35, %v4161_v4 }
 0x3c1   : > { %6175 = vpow2.f32 %v3714_v49  ;;  %5245 = vmatmul.msk.bf16.vlgmr.msrb.gmra.mxu3 %vm4272_vm12, %v4259_v10 }
 0x3c2   : > { %6177 = vpow2.f32 %v3716_v38 }
 0x3c3   : > { %6179 = vpow2.f32 %v1376_v15  ;;  %v4196_v15 = vsel %vm450_vm1, %v3900_v36, %v3993_v42 }
 0x3c4   : > { %6181 = vpow2.f32 %v3722_v53 }
 0x3c5   : > { %6183 = vpow2.f32 %v3724_v16 }
 0x3c6   : > { %6185 = vpow2.f32 %v3726_v44 }
 0x3c7   : > { %v6176_v54 = vpop.eup %6175 }
 0x3c8   : > { %v6178_v18 = vpop.eup %6177  ;;  %v3748_v30 = vadd.f32 1.0, %v6176_v54 }
 0x3c9   : > { %v6180_v45 = vpop.eup %6179  ;;  %v3749_v32 = vadd.f32 1.0, %v6178_v18 }
 0x3ca   : > { %v6182_v19 = vpop.eup %6181  ;;  %6187 = vrcp.f32 %v3748_v30  ;;  %v1404_v28 = vadd.f32 1.0, %v6180_v45 }
 0x3cb   : > { %v6184_v58 = vpop.eup %6183  ;;  %6189 = vrcp.f32 %v3749_v32  ;;  %v3752_v26 = vadd.f32 1.0, %v6182_v19 }
 0x3cc   : > { %v3753_v13 = vadd.f32 1.0, %v6184_v58  ;;  %v6186_v21 = vpop.eup %6185  ;;  %v3997_v59 = vpop.permute.xlu1 %3996 }
 0x3cd   : > { %6191 = vrcp.f32 %v3752_v26  ;;  %v3754_v1 = vadd.f32 1.0, %v6186_v21  ;;  %v4202_v43 = vsel %vm450_vm1, %v3902_v2, %v3997_v59  ;;  %v9264_v58 = vpop.f32.mrf.mxu1 }
 0x3ce   : > { %6193 = vrcp.f32 %v3753_v13  ;;  %v9269_v13 = vld [vmem:[%s9561_s4] ss:$0 sm:$0xff] }
 0x3cf   : > { %6195 = vrcp.f32 %v1404_v28 }
 0x3d0   : > { %v6188_v52 = vpop.eup %6187  ;;  %6197 = vrcp.f32 %v3754_v1 }
 0x3d1   : > { %v6190_v6 = vpop.eup %6189  ;;  %v3802_v37 = vmul.f32 %v6188_v52, %v3640_v41 }
 0x3d2   : > { %v3803_v9 = vmul.f32 %v6190_v6, %v3641_v23  ;;  %v4093_v23 = vpop.permute.xlu2 %4092 }
 0x3d3   : > { %v6192_v14 = vpop.eup %6191  ;;  %v3829_v5 = vpack.c.bf16 %v3802_v37, %v3802_v37  ;;  %v4232_v29 = vsel %vm4206_vm10, %v4202_v43, %v4093_v23 }
 0x3d4   : > { %v6194_v55 = vpop.eup %6193  ;;  %v3830_v3 = vpack.c.bf16 %v3803_v9, %v3803_v9  ;;  %v3806_v11 = vmul.f32 %v6192_v14, %v3644_v22 }
 0x3d5   : > { %v3807_v40 = vmul.f32 %v6194_v55, %v3645_v25  ;;  %v4143_v61 = vunpack.c.l.b16 %v3829_v5  ;;  %v6196_v50 = vpop.eup %6195  ;;  %v9278_v55 = vpop.f32.mrf.mxu1 }
 0x3d6   : > { %v4144_v51 = vunpack.c.l.b16 %v3830_v3  ;;  %v3833_v63 = vpack.c.bf16 %v3806_v11, %v3806_v11  ;;  %v1458_v27 = vmul.f32 %v6196_v50, %v9213_v48  ;;  %v6198_v2 = vpop.eup %6197  ;;  %v4095_v48 = vpop.permute.xlu0 %4094 }
 0x3d7   : > { %v3834_v41 = vpack.c.bf16 %v3807_v40, %v3807_v40  ;;  %v3808_v39 = vmul.f32 %v6198_v2, %v9226_v46 }
 0x3d8   : > { %v4147_v56 = vunpack.c.l.b16 %v3833_v63  ;;  %v4160_v25 = vpack.c.b16 %v4144_v51, %v4143_v61  ;;  %v1485_v57 = vpack.c.bf16 %v1458_v27, %v1458_v27 }
 0x3d9   : > { %v4148_v8 = vunpack.c.l.b16 %v3834_v41  ;;  %v3835_v35 = vpack.c.bf16 %v3808_v39, %v3808_v39 }
 0x3da   : > { %v3889_v36 = vunpack.c.l.b16 %v1485_v57  ;;  %v3999_v7 = vpop.permute.xlu2 %3998 }
 0x3db   : > { %v4162_v24 = vpack.c.b16 %v4148_v8, %v4147_v56  ;;  %v4149_v31 = vunpack.c.l.b16 %v3835_v35 }
 0x3dc   : > { %v3903_v20 = vpack.c.b16 %v3889_v36, %v3889_v36 }
 0x3dd   : > { %v4261_v38 = vsel %vm4235_vm11, %v4232_v29, %v4162_v24  ;;  %v4163_v16 = vpack.c.b16 %v4149_v31, %v4149_v31  ;;  %v9283_v41 = vpop.f32.mrf.mxu1 }
 0x3de   : > { %5246 = vmatmul.msk.bf16.gmra.mxu3 %vm4272_vm12, %v4261_v38  ;;  %v4205_v4 = vsel %vm450_vm1, %v3903_v20, %v3999_v7 }
 0x3df   : > { %v4234_v53 = vsel %vm4206_vm10, %v4205_v4, %v4095_v48 }
 0x3e0   : > { %v4263_v10 = vsel %vm4235_vm11, %v4234_v53, %v4163_v16 }
 0x3e1   : > { %v4089_v22 = vpop.permute.xlu1 %4088 }
 0x3e2   : > { %v4228_v60 = vsel %vm4206_vm10, %v4196_v15, %v4089_v22  ;;  %v4446_v44 = vpop.permute.xlu2 %4445 }
 0x3e3   : > { %v4257_v49 = vsel %vm4235_vm11, %v4228_v60, %v4160_v25  ;;  %v4492_v52 = vadd.f32 %v4446_v44, %v9006_v34 }
 0x3e4   : > { %5244 = vmatmul.msk.bf16.gmra.mxu1 %vm4272_vm12, %v4257_v49 }
 0x3e5   : > { %v9290_v60 = vpop.f32.mrf.mxu1 }
 0x3e9   : > { %v4444_v18 = vpop.permute.xlu1 %4443 }
 0x3ea   : > { %v4510_v30 = vpop.permute.xlu2 %4509  ;;  %v4491_v19 = vadd.f32 %v4444_v18, %v8973_v17 }
 0x3ec   : > { %v4557_v26 = vadd.f32 %v4510_v30, %v4491_v19 }
 0x3ee   : > { %5247 = vmatmul.msk.bf16.gmra.mxu3 %vm4272_vm12, %v4263_v10 }
 0x407   : > { %v4512_v54 = vpop.permute.xlu0 %4511  ;;  %v9259_v45 = vpop.permute.xlu2 %4515 }
 0x408   : > { %v4558_v6 = vadd.f32 %v4512_v54, %v4492_v52  ;;  %v9299_v54 = vpop.f32.mrf.mxu1 }
 0x40f   : > { %v4448_v46 = vpop.permute.xlu0 %4447  ;;  %v9273_v37 = vpop.permute.xlu2 %4451 }
 0x410   : > { %v4493_v34 = vadd.f32 %v4448_v46, %v9080_v62 }
 0x412   : > { %v9261_v32 = vpop.permute.xlu1 %4449 }
 0x417   : > { %v4580_v28 = vpop.permute.xlu0 %4579  ;;  %v4584_v63 = vpop.permute.xlu2 %4583 }
 0x418   : > { %v4627_v21 = vadd.f32 %v4580_v28, %v4557_v26 }
 0x41a   : > { %v4647_v59 = vadd.f32 %v9269_v13, %v4627_v21  ;;  %v4582_v9 = vpop.permute.xlu1 %4581 }
 0x41b   : > { %v4628_v17 = vadd.f32 %v4582_v9, %v4558_v6  ;;  %v9304_v6 = vpop.f32.mrf.mxu1 }
 0x41c   : > { %v4663_v1 = vsub.f32 0.0, %v4647_v59 }
 0x41d   : > { %v9276_v5 = vadd.f32 %v9269_v13, %v4628_v17 }
 0x41e   : > { %v4679_v14 = vmul.f32 1.442695, %v4663_v1 }
 0x41f   : > { %v4664_v3 = vsub.f32 0.0, %v9276_v5 }
 0x420   : > { %6199 = vpow2.f32 %v4679_v14 }
 0x421   : > { %v4681_v11 = vmul.f32 1.442695, %v4664_v3  ;;  %v4416_v3 = vrot.slane %v9264_v58, 1 }
 0x422   : > { %v4514_v40 = vpop.permute.xlu1 %4513 }
 0x423   : > { %6201 = vpow2.f32 %v4681_v11  ;;  %v4559_v61 = vadd.f32 %v4514_v40, %v4493_v34  ;;  %v4345_v34 = vpop.f32.mrf.mxu1  ;;  %v4417_v40 = vsel %vm816_vm2, %v4414_v33, %v4416_v3 }
 0x425   : > { %v4629_v43 = vadd.f32 %v4584_v63, %v4559_v61 }
 0x426   : > { %v6200_v51 = vpop.eup %6199 }
 0x427   : > { %v4711_v42 = vadd.f32 1.0, %v6200_v51  ;;  %v9286_v50 = vadd.f32 %v9269_v13, %v4629_v43 }
 0x429   : > { %6203 = vrcp.f32 %v4711_v42  ;;  %v6202_v56 = vpop.eup %6201  ;;  %v4665_v62 = vsub.f32 0.0, %v9286_v50  ;;  %v4738_v29 = vand.u32 2147483648, %v4711_v42  ;;  %v4736_v2 = vand.u32 2147483647, %v4711_v42 }
 0x42a   : > { %v4712_v23 = vadd.f32 1.0, %v6202_v56  ;;  %vm4732_vm14 = vweird.f32 %v4711_v42 }
 0x42b   : > { %v4683_v15 = vmul.f32 1.442695, %v4665_v62  ;;  %v4739_v39 = vor.u32 1.1754944e-38, %v4738_v29  ;;  %vm4737_vm0 = vcmp.eq.f32.partialorder %v4736_v2, 8.507059e+37  ;;  %v4421_v62 = vrot.slane %v9290_v60, 1 }
 0x42c   : > { %6205 = vrcp.f32 %v4712_v23  ;;  %v4753_v7 = vand.u32 2147483648, %v4712_v23  ;;  %v4751_v4 = vand.u32 2147483647, %v4712_v23  ;;  %vm4747_vm3 = vweird.f32 %v4712_v23 }
 0x42d   : > { %6207 = vpow2.f32 %v4683_v15  ;;  %v4418_v15 = vrot.slane %v9278_v55, 1 }
 0x42e   : > { %v4754_v10 = vor.u32 1.1754944e-38, %v4753_v7  ;;  %vm4752_vm5 = vcmp.eq.f32.partialorder %v4751_v4, 8.507059e+37 }
 0x42f   : > { %v6204_v8 = vpop.eup %6203 }
 0x430   : > { %v4728_v22 = vmul.f32 %v6204_v8, %v4711_v42  ;;  %vm4733_vm13 = vweird.f32 %v6204_v8  ;;  %v9324_v42 = vpop.f32.mrf.mxu1 }
 0x431   : > { %vm4734_vm15 = vmor %vm4732_vm14, %vm4733_vm13  ;;  %v4428_v7 = vrot.slane %v9324_v42, 1 }
 0x432   : > { %v4729_v25 = vsub.f32 1.0, %v4728_v22  ;;  %v6206_v27 = vpop.eup %6205 }
 0x433   : > { %v4743_v49 = vmul.f32 %v6206_v27, %v4712_v23  ;;  %v6208_v57 = vpop.eup %6207  ;;  %vm4748_vm1 = vweird.f32 %v6206_v27  ;;  %v4419_v23 = vrot.slane %v9283_v41, 1 }
 0x434   : > { %v4730_v24 = vmul.f32 %v6204_v8, %v4729_v25  ;;  %v4713_v20 = vadd.f32 1.0, %v6208_v57  ;;  %vm4749_vm4 = vmor %vm4747_vm3, %vm4748_vm1 }
 0x435   : > { %v4744_v36 = vsub.f32 1.0, %v4743_v49  ;;  %v4422_v29 = vsel %vm816_vm2, %v4419_v23, %v4421_v62  ;;  %v4426_v49 = vrot.slane %v4345_v34, 1 }
 0x436   : > { %v4731_v38 = vadd.f32 %v6204_v8, %v4730_v24  ;;  %6209 = vrcp.f32 %v4713_v20  ;;  %v4768_v28 = vand.u32 2147483648, %v4713_v20  ;;  %v4766_v52 = vand.u32 2147483647, %v4713_v20 }
 0x437   : > { %v4745_v31 = vmul.f32 %v6206_v27, %v4744_v36  ;;  %vm4762_vm7 = vweird.f32 %v4713_v20 }
 0x438   : > { %v4735_v35 = vsel %vm4734_vm15, %v6204_v8, %v4731_v38  ;;  %v4769_v1 = vor.u32 1.1754944e-38, %v4768_v28  ;;  %vm4767_vm9 = vcmp.eq.f32.partialorder %v4766_v52, 8.507059e+37  ;;  %v9331_v33 = vpop.f32.mrf.mxu1  ;;  %v4423_v8 = vrot.slane %v9299_v54, 1 }
 0x439   : > { %v4740_v48 = vsel %vm4737_vm0, %v4739_v39, %v4735_v35  ;;  %v4746_v16 = vadd.f32 %v6206_v27, %v4745_v31  ;;  %v4429_v38 = vrot.slane %v9331_v33, 1 }
 0x43a   : > { %v4741_v53 = vmul.f32 %v4740_v48, %v4647_v59 }
 0x43b   : > { %v4750_v44 = vsel %vm4749_vm4, %v6206_v27, %v4746_v16  ;;  %v4420_v27 = vsel %vm816_vm2, %v4418_v15, %v4419_v23  ;;  %v4430_v48 = vsel %vm816_vm2, %v4428_v7, %v4429_v38 }
 0x43c   : > { %4967 = vst.msk [vmem:[%s9295_s30] sm:$0xff] %vm4272_vm12, %v4741_v53  ;;  %v4755_v18 = vsel %vm4752_vm5, %v4754_v10, %v4750_v44  ;;  %v6210_v46 = vpop.eup %6209 }
 0x43d   : > { %v4756_v30 = vmul.f32 %v4755_v18, %v9276_v5  ;;  %v4758_v19 = vmul.f32 %v6210_v46, %v4713_v20  ;;  %vm4763_vm6 = vweird.f32 %v6210_v46 }
 0x43e   : > { %vm4764_vm8 = vmor %vm4762_vm7, %vm4763_vm6 }
 0x43f   : > { %4968 = vst.msk [vmem:[%s9295_s30 + $0x8] sm:$0xff] %vm4272_vm12, %v4756_v30  ;;  %v4759_v26 = vsub.f32 1.0, %v4758_v19 }
 0x440   : > { %v4352_v56 = vpop.f32.mrf.mxu1 }
 0x441   : > { %v4760_v21 = vmul.f32 %v6210_v46, %v4759_v26  ;;  %v4431_v2 = vrot.slane %v4352_v56, 1 }
 0x443   : > { %v4761_v59 = vadd.f32 %v6210_v46, %v4760_v21  ;;  %v4432_v39 = vsel %vm816_vm2, %v4429_v38, %v4431_v2 }
 0x444   : > { %v9307_v5 = vpop.f32.mrf.mxu3 }
 0x445   : > { %v4765_v9 = vsel %vm4764_vm8, %v6210_v46, %v4761_v59  ;;  %4535 = vrot.lane.b32.xlu0 %v9307_v5, %s6313_s13  ;;  %v4439_v61 = vrot.slane %v9307_v5, 1 }
 0x446   : > { %v4770_v17 = vsel %vm4767_vm9, %v4769_v1, %v4765_v9  ;;  %v4494_v1 = vadd.f32 %v9261_v32, %v9112_v47 }
 0x447   : > { %v4771_v14 = vmul.f32 %v4770_v17, %v9286_v50  ;;  %v4424_v50 = vrot.slane %v9304_v6, 1 }
 0x448   : > { %v9354_v24 = vpop.f32.mrf.mxu1  ;;  %v4560_v9 = vadd.f32 %v9259_v45, %v4494_v1 }
 0x449   : > { %4969 = vst.msk [vmem:[%s9295_s30 + $0x10] sm:$0xff] %vm4272_vm12, %v4771_v14  ;;  %v4425_v22 = vsel %vm816_vm2, %v4423_v8, %v4424_v50  ;;  %v4427_v36 = vsel %vm816_vm2, %v4424_v50, %v4426_v49  ;;  %v4433_v10 = vrot.slane %v9354_v24, 1 }
 0x44c   : > { %v4367_v11 = vpop.f32.mrf.mxu3 }
 0x44d   : > { %v4441_v51 = vrot.slane %v4367_v11, 1  ;;  %4453 = vrot.lane.b32.xlu0 %v4417_v40, %s6312_s11 }
 0x44f   : > { %v9320_v63 = vsel %vm816_vm2, %v4439_v61, %v4441_v51 }
 0x450   : > { %4473 = vrot.lane.b32.xlu1 %v9320_v63, %s6312_s11  ;;  %v9360_v57 = vpop.f32.mrf.mxu1 }
 0x451   : > { %v4434_v53 = vrot.slane %v9360_v57, 1 }
 0x453   : > { %v4435_v18 = vsel %vm816_vm2, %v4433_v10, %v4434_v53 }
 0x455   : > { %4585 = vrot.lane.b32.xlu0 %v4417_v40, %s6314_s16 }
 0x45d   : > { %4517 = vrot.lane.b32.xlu0 %v9278_v55, %s6313_s13 }
 0x461   : > { %v9329_v58 = vpop.f32.mrf.mxu3  ;;  %v4360_v35 = vpop.f32.mrf.mxu1 }
 0x462   : > { %4537 = vrot.lane.b32.xlu1 %v9329_v58, %s6313_s13  ;;  %v4436_v16 = vrot.slane %v4360_v35, 1  ;;  %v4574_v26 = vrot.slane %v9329_v58, 1 }
 0x464   : > { %v4437_v44 = vsel %vm816_vm2, %v4434_v53, %v4436_v16 }
 0x465   : > { %4523 = vrot.lane.b32.xlu0 %v9304_v6, %s6313_s13 }
 0x469   : > { %v9337_v43 = vpop.f32.mrf.mxu3  ;;  %v9373_v20 = vpop.f32.mrf.mxu1 }
 0x46a   : > { %4539 = vrot.lane.b32.xlu2 %v9337_v43, %s6313_s13  ;;  %4519 = vrot.lane.b32.xlu1 %v9283_v41, %s6313_s13  ;;  %v4438_v31 = vrot.slane %v9373_v20, 1  ;;  %v4575_v46 = vrot.slane %v9337_v43, 1 }
 0x46c   : > { %v4440_v4 = vsel %vm816_vm2, %v4438_v31, %v4439_v61  ;;  %v4576_v28 = vsel %vm816_vm2, %v4574_v26, %v4575_v46 }
 0x46d   : > { %4459 = vrot.lane.b32.xlu0 %v4425_v22, %s6312_s11 }
 0x471   : > { %v4375_v25 = vpop.f32.mrf.mxu3 }
 0x472   : > { %4457 = vrot.lane.b32.xlu2 %v4422_v29, %s6312_s11  ;;  %4455 = vrot.lane.b32.xlu1 %v4420_v27, %s6312_s11  ;;  %v4577_v30 = vrot.slane %v4375_v25, 1 }
 0x474   : > { %v4578_v19 = vsel %vm816_vm2, %v4575_v46, %v4577_v30 }
 0x475   : > { %4591 = vrot.lane.b32.xlu0 %v4425_v22, %s6314_s16 }
 0x479   : > { %v4377_v60 = vpop.f32.mrf.mxu3 }
 0x47a   : > { %4589 = vrot.lane.b32.xlu2 %v4422_v29, %s6314_s16  ;;  %4587 = vrot.lane.b32.xlu1 %v4420_v27, %s6314_s16 }
 0x47d   : > { %4465 = vrot.lane.b32.xlu0 %v4432_v39, %s6312_s11 }
 0x482   : > { %4521 = vrot.lane.b32.xlu2 %v9299_v54, %s6313_s13  ;;  %4461 = vrot.lane.b32.xlu1 %v4427_v36, %s6312_s11 }
 0x485   : > { %4597 = vrot.lane.b32.xlu0 %v4432_v39, %s6314_s16  ;;  %v4495_v39 = vadd.f32 %v9273_v37, %v9157_v0 }
 0x48a   : > { %4527 = vrot.lane.b32.xlu2 %v9331_v33, %s6313_s13  ;;  %4593 = vrot.lane.b32.xlu1 %v4427_v36, %s6314_s16 }
 0x48d   : > { %4529 = vrot.lane.b32.xlu0 %v9354_v24, %s6313_s13 }
 0x492   : > { %4463 = vrot.lane.b32.xlu2 %v4430_v48, %s6312_s11  ;;  %4525 = vrot.lane.b32.xlu1 %v9324_v42, %s6313_s13 }
 0x495   : > { %4471 = vrot.lane.b32.xlu0 %v4440_v4, %s6312_s11 }
 0x49a   : > { %4595 = vrot.lane.b32.xlu2 %v4430_v48, %s6314_s16  ;;  %4531 = vrot.lane.b32.xlu1 %v9360_v57, %s6313_s13 }
 0x49d   : > { %4603 = vrot.lane.b32.xlu0 %v4440_v4, %s6314_s16 }
 0x4a2   : > { %4469 = vrot.lane.b32.xlu2 %v4437_v44, %s6312_s11  ;;  %4467 = vrot.lane.b32.xlu1 %v4435_v18, %s6312_s11 }
 0x4a5   : > { %4609 = vrot.lane.b32.xlu0 %v4578_v19, %s6314_s16 }
 0x4aa   : > { %4601 = vrot.lane.b32.xlu2 %v4437_v44, %s6314_s16  ;;  %4599 = vrot.lane.b32.xlu1 %v4435_v18, %s6314_s16 }
 0x4b2   : > { %4533 = vrot.lane.b32.xlu2 %v9373_v20, %s6313_s13  ;;  %4605 = vrot.lane.b32.xlu1 %v9320_v63, %s6314_s16 }
 0x4b7   : > { %v9406_v21 = vpop.permute.xlu0 %4535 }
 0x4ba   : > { %4607 = vrot.lane.b32.xlu2 %v4576_v28, %s6314_s16 }
 0x4bf   : > { %v4454_v52 = vpop.permute.xlu0 %4453 }
 0x4c0   : > { %v4496_v47 = vadd.f32 %v4454_v52, %v9180_v12 }
 0x4c2   : > { %v9413_v17 = vpop.permute.xlu1 %4473 }
 0x4c4   : > { %v9408_v59 = vpop.permute.xlu2 %4539 }
 0x4c7   : > { %v4586_v14 = vpop.permute.xlu0 %4585 }
 0x4c8   : > { %v4630_v3 = vadd.f32 %v4586_v14, %v4560_v9 }
 0x4ca   : > { %v4650_v11 = vadd.f32 %v9269_v13, %v4630_v3 }
 0x4cc   : > { %v9415_v34 = vpop.permute.xlu2 %4457  ;;  %v4666_v40 = vsub.f32 0.0, %v4650_v11 }
 0x4ce   : > { %v4685_v61 = vmul.f32 1.442695, %v4666_v40 }
 0x4cf   : > { %v4518_v43 = vpop.permute.xlu0 %4517 }
 0x4d0   : > { %6211 = vpow2.f32 %v4685_v61  ;;  %v4561_v48 = vadd.f32 %v4518_v43, %v4495_v39 }
 0x4d4   : > { %v4590_v51 = vpop.permute.xlu2 %4589  ;;  %v9418_v63 = vpop.permute.xlu1 %4537 }
 0x4d6   : > { %v6212_v58 = vpop.eup %6211 }
 0x4d7   : > { %v4714_v50 = vadd.f32 1.0, %v6212_v58  ;;  %v4524_v25 = vpop.permute.xlu0 %4523 }
 0x4d9   : > { %6213 = vrcp.f32 %v4714_v50  ;;  %v4783_v49 = vand.u32 2147483648, %v4714_v50  ;;  %v4781_v38 = vand.u32 2147483647, %v4714_v50  ;;  %vm4777_vm10 = vweird.f32 %v4714_v50 }
 0x4db   : > { %v4784_v35 = vor.u32 1.1754944e-38, %v4783_v49  ;;  %vm4782_vm13 = vcmp.eq.f32.partialorder %v4781_v38, 8.507059e+37 }
 0x4dc   : > { %v4522_v45 = vpop.permute.xlu2 %4521  ;;  %v4520_v32 = vpop.permute.xlu1 %4519 }
 0x4dd   : > { %v4562_v56 = vadd.f32 %v4520_v32, %v4496_v47  ;;  %v4498_v32 = vadd.f32 %v9415_v34, %v9283_v41 }
 0x4df   : > { %v4632_v23 = vadd.f32 %v4590_v51, %v4562_v56  ;;  %v6214_v8 = vpop.eup %6213  ;;  %v9429_v31 = vpop.permute.xlu0 %4459 }
 0x4e0   : > { %v4773_v15 = vmul.f32 %v6214_v8, %v4714_v50  ;;  %vm4778_vm2 = vweird.f32 %v6214_v8 }
 0x4e1   : > { %v9422_v62 = vadd.f32 %v9269_v13, %v4632_v23  ;;  %vm4779_vm11 = vmor %vm4777_vm10, %vm4778_vm2 }
 0x4e2   : > { %v4774_v27 = vsub.f32 1.0, %v4773_v15  ;;  %v4564_v15 = vadd.f32 %v4524_v25, %v4498_v32 }
 0x4e3   : > { %v4668_v22 = vsub.f32 0.0, %v9422_v62 }
 0x4e4   : > { %v4456_v29 = vpop.permute.xlu1 %4455  ;;  %v9425_v2 = vpop.permute.xlu2 %4527  ;;  %v4775_v12 = vmul.f32 %v6214_v8, %v4774_v27 }
 0x4e5   : > { %v4689_v60 = vmul.f32 1.442695, %v4668_v22  ;;  %v4497_v30 = vadd.f32 %v4456_v29, %v9278_v55 }
 0x4e6   : > { %v4776_v36 = vadd.f32 %v6214_v8, %v4775_v12 }
 0x4e7   : > { %6215 = vpow2.f32 %v4689_v60  ;;  %v4563_v19 = vadd.f32 %v4522_v45, %v4497_v30  ;;  %v4592_v28 = vpop.permute.xlu0 %4591 }
 0x4e8   : > { %v4780_v7 = vsel %vm4779_vm11, %v6214_v8, %v4776_v36 }
 0x4e9   : > { %v4785_v4 = vsel %vm4782_vm13, %v4784_v35, %v4780_v7  ;;  %v4633_v52 = vadd.f32 %v4592_v28, %v4563_v19 }
 0x4ea   : > { %v4786_v10 = vmul.f32 %v4785_v4, %v4650_v11 }
 0x4eb   : > { %v9441_v9 = vadd.f32 %v9269_v13, %v4633_v52 }
 0x4ec   : > { %v4588_v53 = vpop.permute.xlu1 %4587  ;;  %4970 = vst.msk [vmem:[%s9295_s30 + $0x18] sm:$0xff] %vm4272_vm12, %v4786_v10  ;;  %v9434_v0 = vpop.permute.xlu2 %4463 }
 0x4ed   : > { %v6216_v16 = vpop.eup %6215  ;;  %v4631_v44 = vadd.f32 %v4588_v53, %v4561_v48  ;;  %v4669_v14 = vsub.f32 0.0, %v9441_v9 }
 0x4ee   : > { %v4716_v18 = vadd.f32 1.0, %v6216_v16 }
 0x4ef   : > { %v9437_v37 = vadd.f32 %v9269_v13, %v4631_v44  ;;  %v4691_v51 = vmul.f32 1.442695, %v4669_v14  ;;  %v9444_v45 = vpop.permute.xlu0 %4465 }
 0x4f0   : > { %6217 = vrcp.f32 %v4716_v18  ;;  %v4813_v61 = vand.u32 2147483648, %v4716_v18  ;;  %v4811_v50 = vand.u32 2147483647, %v4716_v18  ;;  %vm4807_vm15 = vweird.f32 %v4716_v18 }
 0x4f1   : > { %v4667_v46 = vsub.f32 0.0, %v9437_v37 }
 0x4f2   : > { %v4814_v23 = vor.u32 1.1754944e-38, %v4813_v61  ;;  %vm4812_vm1 = vcmp.eq.f32.partialorder %v4811_v50, 8.507059e+37 }
 0x4f3   : > { %v4687_v26 = vmul.f32 1.442695, %v4667_v46 }
 0x4f4   : > { %v4462_v3 = vpop.permute.xlu1 %4461  ;;  %v4596_v40 = vpop.permute.xlu2 %4595 }
 0x4f5   : > { %6219 = vpow2.f32 %v4687_v26  ;;  %v4500_v12 = vadd.f32 %v4462_v3, %v9304_v6 }
 0x4f6   : > { %v6218_v1 = vpop.eup %6217  ;;  %6221 = vpow2.f32 %v4691_v51 }
 0x4f7   : > { %v4803_v55 = vmul.f32 %v6218_v1, %v4716_v18  ;;  %vm4808_vm14 = vweird.f32 %v6218_v1  ;;  %v4566_v35 = vadd.f32 %v9425_v2, %v4500_v12  ;;  %v4499_v18 = vadd.f32 %v9429_v31, %v9299_v54 }
 0x4f8   : > { %vm4809_vm0 = vmor %vm4807_vm15, %vm4808_vm14 }
 0x4f9   : > { %v4804_v11 = vsub.f32 1.0, %v4803_v55 }
 0x4fb   : > { %v6220_v58 = vpop.eup %6219  ;;  %v4805_v43 = vmul.f32 %v6218_v1, %v4804_v11 }
 0x4fc   : > { %v4715_v47 = vadd.f32 1.0, %v6220_v58  ;;  %v4594_v29 = vpop.permute.xlu1 %4593  ;;  %v6222_v49 = vpop.eup %6221 }
 0x4fd   : > { %v4806_v56 = vadd.f32 %v6218_v1, %v4805_v43  ;;  %v4634_v60 = vadd.f32 %v4594_v29, %v4564_v15  ;;  %v4717_v38 = vadd.f32 1.0, %v6222_v49  ;;  %v9452_v41 = vpop.permute.xlu2 %4469 }
 0x4fe   : > { %6223 = vrcp.f32 %v4715_v47  ;;  %v4798_v48 = vand.u32 2147483648, %v4715_v47  ;;  %v4796_v16 = vand.u32 2147483647, %v4715_v47  ;;  %vm4792_vm4 = vweird.f32 %v4715_v47 }
 0x4ff   : > { %v4810_v8 = vsel %vm4809_vm0, %v6218_v1, %v4806_v56  ;;  %v9455_v34 = vadd.f32 %v9269_v13, %v4634_v60  ;;  %6225 = vrcp.f32 %v4717_v38  ;;  %v4828_v61 = vand.u32 2147483648, %v4717_v38 }
 0x500   : > { %v4815_v22 = vsel %vm4812_vm1, %v4814_v23, %v4810_v8  ;;  %v4799_v2 = vor.u32 1.1754944e-38, %v4798_v48  ;;  %vm4797_vm6 = vcmp.eq.f32.partialorder %v4796_v16, 8.507059e+37  ;;  %v4826_v58 = vand.u32 2147483647, %v4717_v38 }
 0x501   : > { %v4816_v27 = vmul.f32 %v4815_v22, %v9422_v62  ;;  %v4670_v25 = vsub.f32 0.0, %v9455_v34  ;;  %v4598_v62 = vpop.permute.xlu0 %4597  ;;  %vm4822_vm8 = vweird.f32 %v4717_v38  ;;  %v4829_v32 = vor.u32 1.1754944e-38, %v4828_v61 }
 0x502   : > { %v4636_v6 = vadd.f32 %v4598_v62, %v4566_v35  ;;  %vm4827_vm2 = vcmp.eq.f32.partialorder %v4826_v58, 8.507059e+37 }
 0x503   : > { %4972 = vst.msk [vmem:[%s9295_s30 + $0x28] sm:$0xff] %vm4272_vm12, %v4816_v27  ;;  %v4693_v4 = vmul.f32 1.442695, %v4670_v25 }
 0x504   : > { %v6224_v39 = vpop.eup %6223  ;;  %v9460_v10 = vadd.f32 %v9269_v13, %v4636_v6  ;;  %v4526_v26 = vpop.permute.xlu1 %4525 }
 0x505   : > { %v4788_v36 = vmul.f32 %v6224_v39, %v4715_v47  ;;  %vm4793_vm3 = vweird.f32 %v6224_v39  ;;  %6227 = vpow2.f32 %v4693_v4  ;;  %v6226_v44 = vpop.eup %6225  ;;  %v4602_v52 = vpop.permute.xlu2 %4601  ;;  %v4565_v1 = vadd.f32 %v4526_v26, %v4499_v18 }
 0x506   : > { %vm4794_vm5 = vmor %vm4792_vm4, %vm4793_vm3  ;;  %v4818_v46 = vmul.f32 %v6226_v44, %v4717_v38  ;;  %v4672_v19 = vsub.f32 0.0, %v9460_v10  ;;  %vm4823_vm7 = vweird.f32 %v6226_v44 }
 0x507   : > { %v4789_v7 = vsub.f32 1.0, %v4788_v36  ;;  %v4635_v54 = vadd.f32 %v4596_v40, %v4565_v1  ;;  %vm4824_vm9 = vmor %vm4822_vm8, %vm4823_vm7  ;;  %v4502_v40 = vadd.f32 %v9444_v45, %v9331_v33 }
 0x508   : > { %v4819_v14 = vsub.f32 1.0, %v4818_v46  ;;  %v4697_v3 = vmul.f32 1.442695, %v4672_v19 }
 0x509   : > { %v4790_v53 = vmul.f32 %v6224_v39, %v4789_v7  ;;  %v9469_v50 = vadd.f32 %v9269_v13, %v4635_v54  ;;  %v9474_v23 = vpop.permute.xlu0 %4529 }
 0x50a   : > { %v4820_v51 = vmul.f32 %v6226_v44, %v4819_v14  ;;  %6229 = vpow2.f32 %v4697_v3 }
 0x50b   : > { %v4791_v30 = vadd.f32 %v6224_v39, %v4790_v53  ;;  %v6228_v31 = vpop.eup %6227  ;;  %v4671_v56 = vsub.f32 0.0, %v9469_v50 }
 0x50c   : > { %v4718_v43 = vadd.f32 1.0, %v6228_v31  ;;  %v4821_v47 = vadd.f32 %v6226_v44, %v4820_v51  ;;  %v4532_v15 = vpop.permute.xlu1 %4531 }
 0x50d   : > { %v4795_v28 = vsel %vm4794_vm5, %v6224_v39, %v4791_v30  ;;  %v4695_v27 = vmul.f32 1.442695, %v4671_v56  ;;  %v4568_v60 = vadd.f32 %v4532_v15, %v4502_v40  ;;  %v4534_v12 = vpop.permute.xlu2 %4533 }
 0x50e   : > { %v4800_v55 = vsel %vm4797_vm6, %v4799_v2, %v4795_v28  ;;  %6231 = vrcp.f32 %v4718_v43  ;;  %v4843_v62 = vand.u32 2147483648, %v4718_v43  ;;  %v4841_v4 = vand.u32 2147483647, %v4718_v43 }
 0x50f   : > { %v4801_v11 = vmul.f32 %v4800_v55, %v9437_v37  ;;  %v4825_v37 = vsel %vm4824_vm9, %v6226_v44, %v4821_v47  ;;  %6233 = vpow2.f32 %v4695_v27  ;;  %v4638_v38 = vadd.f32 %v4602_v52, %v4568_v60 }
 0x510   : > { %v4830_v8 = vsel %vm4827_vm2, %v4829_v32, %v4825_v37  ;;  %v6230_v22 = vpop.eup %6229  ;;  %vm4837_vm11 = vweird.f32 %v4718_v43  ;;  %v4844_v2 = vor.u32 1.1754944e-38, %v4843_v62  ;;  %vm4842_vm14 = vcmp.eq.f32.partialorder %v4841_v4, 8.507059e+37 }
 0x511   : > { %4971 = vst.msk [vmem:[%s9295_s30 + $0x20] sm:$0xff] %vm4272_vm12, %v4801_v11  ;;  %v4831_v29 = vmul.f32 %v4830_v8, %v9441_v9  ;;  %v4720_v49 = vadd.f32 1.0, %v6230_v22  ;;  %v9480_v45 = vadd.f32 %v9269_v13, %v4638_v38  ;;  %v4472_v35 = vpop.permute.xlu0 %4471 }
 0x512   : > { %v4505_v9 = vadd.f32 %v4472_v35, %v9373_v20 }
 0x513   : > { %4973 = vst.msk [vmem:[%s9295_s30 + $0x30] sm:$0xff] %vm4272_vm12, %v4831_v29  ;;  %6235 = vrcp.f32 %v4720_v49  ;;  %v4674_v25 = vsub.f32 0.0, %v9480_v45  ;;  %v4871_v52 = vand.u32 2147483647, %v4720_v49  ;;  %v4873_v1 = vand.u32 2147483648, %v4720_v49 }
 0x514   : > { %v6232_v39 = vpop.eup %6231  ;;  %v4571_v44 = vadd.f32 %v9418_v63, %v4505_v9  ;;  %vm4867_vm0 = vweird.f32 %v4720_v49  ;;  %v4468_v54 = vpop.permute.xlu1 %4467 }
 0x515   : > { %v4833_v33 = vmul.f32 %v6232_v39, %v4718_v43  ;;  %v6234_v7 = vpop.eup %6233  ;;  %vm4838_vm10 = vweird.f32 %v6232_v39  ;;  %v4701_v6 = vmul.f32 1.442695, %v4674_v25  ;;  %v4608_v46 = vpop.permute.xlu2 %4607  ;;  %v4874_v51 = vor.u32 1.1754944e-38, %v4873_v1 }
 0x516   : > { %v4719_v16 = vadd.f32 1.0, %v6234_v7  ;;  %vm4839_vm13 = vmor %vm4837_vm11, %vm4838_vm10  ;;  %v4641_v26 = vadd.f32 %v4608_v46, %v4571_v44  ;;  %vm4872_vm3 = vcmp.eq.f32.partialorder %v4871_v52, 8.507059e+37  ;;  %v4506_v44 = vadd.f32 %v9413_v17, %v9307_v5 }
 0x517   : > { %v4834_v36 = vsub.f32 1.0, %v4833_v33  ;;  %6237 = vpow2.f32 %v4701_v6  ;;  %v4501_v33 = vadd.f32 %v9434_v0, %v9324_v42 }
 0x518   : > { %6239 = vrcp.f32 %v4719_v16  ;;  %v9487_v63 = vadd.f32 %v9269_v13, %v4641_v26  ;;  %v4858_v15 = vand.u32 2147483648, %v4719_v16  ;;  %v4856_v27 = vand.u32 2147483647, %v4719_v16 }
 0x519   : > { %v4835_v48 = vmul.f32 %v6232_v39, %v4834_v36  ;;  %v6236_v53 = vpop.eup %6235  ;;  %v4604_v8 = vpop.permute.xlu0 %4603  ;;  %vm4852_vm5 = vweird.f32 %v4719_v16  ;;  %v4567_v7 = vadd.f32 %v9474_v23, %v4501_v33  ;;  %v4572_v26 = vadd.f32 %v9408_v59, %v4506_v44 }
 0x51a   : > { %v4863_v30 = vmul.f32 %v6236_v53, %v4720_v49  ;;  %vm4868_vm15 = vweird.f32 %v6236_v53  ;;  %v4677_v61 = vsub.f32 0.0, %v9487_v63  ;;  %v4859_v38 = vor.u32 1.1754944e-38, %v4858_v15 }
 0x51b   : > { %v4836_v18 = vadd.f32 %v6232_v39, %v4835_v48  ;;  %vm4869_vm1 = vmor %vm4867_vm0, %vm4868_vm15  ;;  %vm4857_vm7 = vcmp.eq.f32.partialorder %v4856_v27, 8.507059e+37 }
 0x51c   : > { %v4864_v20 = vsub.f32 1.0, %v4863_v30  ;;  %v4707_v32 = vmul.f32 1.442695, %v4677_v61  ;;  %v4600_v4 = vpop.permute.xlu1 %4599 }
 0x51d   : > { %v4840_v19 = vsel %vm4839_vm13, %v6232_v39, %v4836_v18  ;;  %v6238_v3 = vpop.eup %6237  ;;  %v4637_v0 = vadd.f32 %v4600_v4, %v4567_v7 }
 0x51e   : > { %v4845_v28 = vsel %vm4842_vm14, %v4844_v2, %v4840_v19  ;;  %v4865_v14 = vmul.f32 %v6236_v53, %v4864_v20  ;;  %v6240_v31 = vpop.eup %6239  ;;  %v4722_v58 = vadd.f32 1.0, %v6238_v3 }
 0x51f   : > { %v4846_v55 = vmul.f32 %v4845_v28, %v9455_v34  ;;  %v4503_v34 = vadd.f32 %v4468_v54, %v9354_v24  ;;  %v4848_v47 = vmul.f32 %v6240_v31, %v4719_v16  ;;  %vm4853_vm4 = vweird.f32 %v6240_v31 }
 0x520   : > { %v4866_v11 = vadd.f32 %v6236_v53, %v4865_v14  ;;  %6241 = vrcp.f32 %v4722_v58  ;;  %vm4854_vm6 = vmor %vm4852_vm5, %vm4853_vm4  ;;  %v4901_v6 = vand.u32 2147483647, %v4722_v58  ;;  %vm4897_vm9 = vweird.f32 %v4722_v58 }
 0x521   : > { %4974 = vst.msk [vmem:[%s9295_s30 + $0x38] sm:$0xff] %vm4272_vm12, %v4846_v55  ;;  %v4849_v56 = vsub.f32 1.0, %v4848_v47  ;;  %6243 = vpow2.f32 %v4707_v32  ;;  %v4569_v22 = vadd.f32 %v4534_v12, %v4503_v34  ;;  %v4610_v46 = vpop.permute.xlu0 %4609  ;;  %v4504_v55 = vadd.f32 %v9452_v41, %v9360_v57 }
 0x522   : > { %v4870_v43 = vsel %vm4869_vm1, %v6236_v53, %v4866_v11  ;;  %v4903_v53 = vand.u32 2147483648, %v4722_v58  ;;  %vm4902_vm10 = vcmp.eq.f32.partialorder %v4901_v6, 8.507059e+37  ;;  %v4642_v52 = vadd.f32 %v4610_v46, %v4572_v26 }
 0x523   : > { %v4875_v37 = vsel %vm4872_vm3, %v4874_v51, %v4870_v43  ;;  %v4850_v29 = vmul.f32 %v6240_v31, %v4849_v56  ;;  %v4639_v60 = vadd.f32 %v4604_v8, %v4569_v22  ;;  %v4570_v57 = vadd.f32 %v9406_v21, %v4504_v55 }
 0x524   : > { %v4876_v40 = vmul.f32 %v4875_v37, %v9460_v10  ;;  %v4904_v23 = vor.u32 1.1754944e-38, %v4903_v53  ;;  %v9519_v61 = vadd.f32 %v9269_v13, %v4642_v52  ;;  %v4606_v51 = vpop.permute.xlu1 %4605 }
 0x525   : > { %v4851_v24 = vadd.f32 %v6240_v31, %v4850_v29  ;;  %v9497_v39 = vadd.f32 %v9269_v13, %v4639_v60  ;;  %v4640_v47 = vadd.f32 %v4606_v51, %v4570_v57 }
 0x526   : > { %4976 = vst.msk [vmem:[%s9295_s30 + $0x48] sm:$0xff] %vm4272_vm12, %v4876_v40  ;;  %v6242_v49 = vpop.eup %6241 }
 0x527   : > { %v6244_v10 = vpop.eup %6243  ;;  %v4855_v12 = vsel %vm4854_vm6, %v6240_v31, %v4851_v24  ;;  %v4893_v36 = vmul.f32 %v6242_v49, %v4722_v58  ;;  %v4675_v62 = vsub.f32 0.0, %v9497_v39  ;;  %vm4898_vm8 = vweird.f32 %v6242_v49 }
 0x528   : > { %v4860_v25 = vsel %vm4857_vm7, %v4859_v38, %v4855_v12  ;;  %v4725_v35 = vadd.f32 1.0, %v6244_v10  ;;  %vm4899_vm2 = vmor %vm4897_vm9, %vm4898_vm8  ;;  %v4678_v31 = vsub.f32 0.0, %v9519_v61  ;;  %v9525_v56 = vadd.f32 %v9269_v13, %v4640_v47 }
 0x529   : > { %v4861_v9 = vmul.f32 %v4860_v25, %v9469_v50  ;;  %v4894_v48 = vsub.f32 1.0, %v4893_v36  ;;  %v4703_v42 = vmul.f32 1.442695, %v4675_v62  ;;  %v9509_v50 = vadd.f32 %v9269_v13, %v4637_v0 }
 0x52a   : > { %6245 = vrcp.f32 %v4725_v35  ;;  %v4948_v3 = vand.u32 2147483648, %v4725_v35  ;;  %v4946_v59 = vand.u32 2147483647, %v4725_v35  ;;  %vm4942_vm13 = vweird.f32 %v4725_v35 }
 0x52b   : > { %4975 = vst.msk [vmem:[%s9295_s30 + $0x40] sm:$0xff] %vm4272_vm12, %v4861_v9  ;;  %v4895_v16 = vmul.f32 %v6242_v49, %v4894_v48  ;;  %6247 = vpow2.f32 %v4703_v42  ;;  %v4673_v2 = vsub.f32 0.0, %v9509_v50  ;;  %v4709_v43 = vmul.f32 1.442695, %v4678_v31 }
 0x52c   : > { %v4949_v41 = vor.u32 1.1754944e-38, %v4948_v3  ;;  %vm4947_vm15 = vcmp.eq.f32.partialorder %v4946_v59, 8.507059e+37  ;;  %v4676_v15 = vsub.f32 0.0, %v9525_v56 }
 0x52d   : > { %v4896_v18 = vadd.f32 %v6242_v49, %v4895_v16  ;;  %v4699_v28 = vmul.f32 1.442695, %v4673_v2 }
 0x52e   : > { %v4705_v29 = vmul.f32 1.442695, %v4676_v15 }
 0x52f   : > { %v4900_v30 = vsel %vm4899_vm2, %v6242_v49, %v4896_v18  ;;  %6249 = vpow2.f32 %v4699_v28 }
 0x530   : > { %v6246_v19 = vpop.eup %6245  ;;  %v4905_v20 = vsel %vm4902_vm10, %v4904_v23, %v4900_v30 }
 0x531   : > { %v4906_v5 = vmul.f32 %v4905_v20, %v9480_v45  ;;  %v4938_v17 = vmul.f32 %v6246_v19, %v4725_v35  ;;  %v6248_v1 = vpop.eup %6247  ;;  %vm4943_vm11 = vweird.f32 %v6246_v19 }
 0x532   : > { %v4723_v11 = vadd.f32 1.0, %v6248_v1  ;;  %vm4944_vm14 = vmor %vm4942_vm13, %vm4943_vm11 }
 0x533   : > { %4978 = vst.msk [vmem:[%s9295_s30 + $0x58] sm:$0xff] %vm4272_vm12, %v4906_v5  ;;  %v4939_v14 = vsub.f32 1.0, %v4938_v17 }
 0x534   : > { %6251 = vrcp.f32 %v4723_v11  ;;  %v4918_v27 = vand.u32 2147483648, %v4723_v11  ;;  %v4916_v49 = vand.u32 2147483647, %v4723_v11  ;;  %vm4912_vm1 = vweird.f32 %v4723_v11 }
 0x535   : > { %v4940_v54 = vmul.f32 %v6246_v19, %v4939_v14  ;;  %v6250_v58 = vpop.eup %6249  ;;  %6253 = vpow2.f32 %v4709_v43 }
 0x536   : > { %v4721_v37 = vadd.f32 1.0, %v6250_v58  ;;  %v4919_v33 = vor.u32 1.1754944e-38, %v4918_v27  ;;  %vm4917_vm4 = vcmp.eq.f32.partialorder %v4916_v49, 8.507059e+37 }
 0x537   : > { %v4941_v45 = vadd.f32 %v6246_v19, %v4940_v54 }
 0x538   : > { %6255 = vrcp.f32 %v4721_v37  ;;  %v4888_v35 = vand.u32 2147483648, %v4721_v37  ;;  %v4886_v48 = vand.u32 2147483647, %v4721_v37  ;;  %vm4882_vm6 = vweird.f32 %v4721_v37 }
 0x539   : > { %v4945_v34 = vsel %vm4944_vm14, %v6246_v19, %v4941_v45  ;;  %6257 = vpow2.f32 %v4705_v29 }
 0x53a   : > { %v4950_v32 = vsel %vm4947_vm15, %v4949_v41, %v4945_v34  ;;  %v6252_v8 = vpop.eup %6251  ;;  %v4889_v16 = vor.u32 1.1754944e-38, %v4888_v35  ;;  %vm4887_vm8 = vcmp.eq.f32.partialorder %v4886_v48, 8.507059e+37 }
 0x53b   : > { %v4951_v40 = vmul.f32 %v4950_v32, %v9487_v63  ;;  %v4908_v21 = vmul.f32 %v6252_v8, %v4723_v11  ;;  %v6254_v60 = vpop.eup %6253  ;;  %vm4913_vm0 = vweird.f32 %v6252_v8 }
 0x53c   : > { %v4726_v38 = vadd.f32 1.0, %v6254_v60  ;;  %vm4914_vm3 = vmor %vm4912_vm1, %vm4913_vm0 }
 0x53d   : > { %4981 = vst.msk [vmem:[%s9295_s30 + $0x70] sm:$0xff] %vm4272_vm12, %v4951_v40  ;;  %v4909_v22 = vsub.f32 1.0, %v4908_v21 }
 0x53e   : > { %v6256_v63 = vpop.eup %6255  ;;  %6259 = vrcp.f32 %v4726_v38  ;;  %v4963_v23 = vand.u32 2147483648, %v4726_v38  ;;  %v4961_v2 = vand.u32 2147483647, %v4726_v38  ;;  %vm4957_vm2 = vweird.f32 %v4726_v38 }
 0x53f   : > { %v4910_v24 = vmul.f32 %v6252_v8, %v4909_v22  ;;  %v4878_v13 = vmul.f32 %v6256_v63, %v4721_v37  ;;  %v6258_v62 = vpop.eup %6257  ;;  %vm4883_vm5 = vweird.f32 %v6256_v63 }
 0x540   : > { %v4724_v4 = vadd.f32 1.0, %v6258_v62  ;;  %vm4884_vm7 = vmor %vm4882_vm6, %vm4883_vm5  ;;  %v4964_v26 = vor.u32 1.1754944e-38, %v4963_v23  ;;  %vm4962_vm11 = vcmp.eq.f32.partialorder %v4961_v2, 8.507059e+37 }
 0x541   : > { %v4911_v10 = vadd.f32 %v6252_v8, %v4910_v24  ;;  %v4879_v36 = vsub.f32 1.0, %v4878_v13 }
 0x542   : > { %6261 = vrcp.f32 %v4724_v4  ;;  %v4931_v55 = vand.u32 2147483647, %v4724_v4  ;;  %vm4927_vm14 = vweird.f32 %v4724_v4 }
 0x543   : > { %v4915_v12 = vsel %vm4914_vm3, %v6252_v8, %v4911_v10  ;;  %v4880_v7 = vmul.f32 %v6256_v63, %v4879_v36 }
 0x544   : > { %v4920_v25 = vsel %vm4917_vm4, %v4919_v33, %v4915_v12  ;;  %v6260_v53 = vpop.eup %6259  ;;  %vm4932_vm0 = vcmp.eq.f32.partialorder %v4931_v55, 8.507059e+37 }
 0x545   : > { %v4921_v9 = vmul.f32 %v4920_v25, %v9497_v39  ;;  %v4881_v6 = vadd.f32 %v6256_v63, %v4880_v7  ;;  %v4953_v0 = vmul.f32 %v6260_v53, %v4726_v38  ;;  %vm4958_vm9 = vweird.f32 %v6260_v53 }
 0x546   : > { %vm4959_vm10 = vmor %vm4957_vm2, %vm4958_vm9 }
 0x547   : > { %4979 = vst.msk [vmem:[%s9295_s30 + $0x60] sm:$0xff] %vm4272_vm12, %v4921_v9  ;;  %v4885_v42 = vsel %vm4884_vm7, %v6256_v63, %v4881_v6  ;;  %v4954_v39 = vsub.f32 1.0, %v4953_v0 }
 0x548   : > { %v4890_v44 = vsel %vm4887_vm8, %v4889_v16, %v4885_v42  ;;  %v6262_v46 = vpop.eup %6261 }
 0x549   : > { %v4891_v18 = vmul.f32 %v4890_v44, %v9509_v50  ;;  %v4955_v30 = vmul.f32 %v6260_v53, %v4954_v39  ;;  %v4923_v20 = vmul.f32 %v6262_v46, %v4724_v4  ;;  %v4933_v50 = vand.u32 2147483648, %v4724_v4 }
 0x54a   : > { %vm4928_vm13 = vweird.f32 %v6262_v46 }
 0x54b   : > { %4977 = vst.msk [vmem:[%s9295_s30 + $0x50] sm:$0xff] %vm4272_vm12, %v4891_v18  ;;  %v4956_v19 = vadd.f32 %v6260_v53, %v4955_v30  ;;  %v4924_v17 = vsub.f32 1.0, %v4923_v20  ;;  %vm4929_vm15 = vmor %vm4927_vm14, %vm4928_vm13  ;;  %v4934_v3 = vor.u32 1.1754944e-38, %v4933_v50 }
 0x54d   : > { %v4960_v5 = vsel %vm4959_vm10, %v6260_v53, %v4956_v19  ;;  %v4925_v1 = vmul.f32 %v6262_v46, %v4924_v17 }
 0x54e   : > { %v4965_v28 = vsel %vm4962_vm11, %v4964_v26, %v4960_v5 }
 0x54f   : > { %v4966_v52 = vmul.f32 %v4965_v28, %v9519_v61  ;;  %v4926_v14 = vadd.f32 %v6262_v46, %v4925_v1 }
 0x551   : > { %4982 = vst.msk [vmem:[%s9295_s30 + $0x78] sm:$0xff] %vm4272_vm12, %v4966_v52  ;;  %v4930_v11 = vsel %vm4929_vm15, %v6262_v46, %v4926_v14 }
 0x552   : > { %v4935_v54 = vsel %vm4932_vm0, %v4934_v3, %v4930_v11 }
 0x553   : > { %v4936_v59 = vmul.f32 %v4935_v54, %v9525_v56 }
 0x555   : > { %4980 = vst.msk [vmem:[%s9295_s30 + $0x68] sm:$0xff] %vm4272_vm12, %v4936_v59 }
 0x556 PF: > { %s15_s22 = sadd.s32 1, %s6306_s22   ;;  %s10229_s18 = smov %s6298_s20 }
 0x557   : > { %p12_p7 = scmp.ge.s32.totalorder %s15_s22, 6   ;;  %s10230_s19 = smov %s6302_s21 }
 0x558   : > { %s10231_s20 = smov %s10234_s23  ;;  %s10232_s21 = smov %s10238_s24 }
 0x559   :  { %14 = sbr.rel (!%p12_p7) target bundleno = 3 (0x3), region = 71 }

</bundles_post_ra>
